<compile_context>
chip_gen: v7x
topology: tpu7x:2x2x1
jax: 0.10.0
libtpu: 0.0.40
codegen_flags: <defaults>
</compile_context>

<pallas_src>
import jax
import jax.numpy as jnp
from jax.experimental import pallas as pl
from jax.experimental.pallas import tpu as pltpu


# ----------------------------------------------------------------------------
# Pallas kernel 1: one M-tile of  out = relu(A @ W + bias)
# ----------------------------------------------------------------------------
def _mm_bias_relu_kernel(a_ref, w_ref, b_ref, o_ref):
    acc = jnp.dot(a_ref[...], w_ref[...], preferred_element_type=jnp.float32)
    o_ref[...] = jnp.maximum(acc + b_ref[...], 0.0).astype(o_ref.dtype)


def matmul_bias_relu(a, w, bias):
    """a: (M, K) f32, w: (K, N) f32, bias: (N,) f32 -> relu(a @ w + bias).

    M (already a multiple of 8 for every conv layer) is split into at most two
    blocks along a "parallel" grid axis so v7x's two TensorCores both work;
    weights/bias stay VMEM-resident across the (tiny) grid.  No M padding.
    """
    M, K = a.shape
    K2, N = w.shape
    assert K == K2
    grid_m = 2 if (M % 2 == 0 and (M // 2) % 8 == 0) else 1
    bm = M // grid_m
    return pl.pallas_call(
        _mm_bias_relu_kernel,
        out_shape=jax.ShapeDtypeStruct((M, N), jnp.float32),
        grid=(grid_m,),
        in_specs=[
            pl.BlockSpec((bm, K), lambda i: (i, 0)),   # A tile (full K)
            pl.BlockSpec((K, N), lambda i: (0, 0)),    # weight, resident
            pl.BlockSpec((1, N), lambda i: (0, 0)),    # bias, resident
        ],
        out_specs=pl.BlockSpec((bm, N), lambda i: (i, 0)),
        compiler_params=pltpu.CompilerParams(
            dimension_semantics=("parallel",)),
    )(a, w, bias.reshape(1, N))


# ----------------------------------------------------------------------------
# Pallas kernel 2: fused FC head  out = relu(x @ W1 + b1) @ W23 + b23
# (fc1 + concatenated fc2/fc3 in one call; h never leaves VMEM)
# ----------------------------------------------------------------------------
def _fc_head_kernel(x_ref, w1_ref, b1_ref, w2_ref, b2_ref, o_ref):
    h = jnp.dot(x_ref[...], w1_ref[...], preferred_element_type=jnp.float32)
    h = jnp.maximum(h + b1_ref[...], 0.0)
    o = jnp.dot(h, w2_ref[...], preferred_element_type=jnp.float32)
    o_ref[...] = (o + b2_ref[...]).astype(o_ref.dtype)


def fc_head(x, w1, b1, w2, b2):
    """x: (B, K1) -> relu(x@w1+b1) @ w2 + b2, one fused kernel, no M padding."""
    B, K1 = x.shape
    _, N1 = w1.shape
    _, N2 = w2.shape
    return pl.pallas_call(
        _fc_head_kernel,
        out_shape=jax.ShapeDtypeStruct((B, N2), jnp.float32),
        grid=(1,),
        in_specs=[
            pl.BlockSpec((B, K1), lambda i: (0, 0)),
            pl.BlockSpec((K1, N1), lambda i: (0, 0)),
            pl.BlockSpec((1, N1), lambda i: (0, 0)),
            pl.BlockSpec((N1, N2), lambda i: (0, 0)),
            pl.BlockSpec((1, N2), lambda i: (0, 0)),
        ],
        out_specs=pl.BlockSpec((B, N2), lambda i: (0, 0)),
    )(x, w1, b1.reshape(1, N1), w2, b2.reshape(1, N2))


# ----------------------------------------------------------------------------
# Channels-last im2col for Conv2d(k=3, stride=2, pad=1) — pure reshape/slice
# ----------------------------------------------------------------------------
def _im2col_s2_k3_nhwc(x):
    """x: (B, H, W, Cin) NHWC (H, W even) -> patches (B*Ho*Wo, 9*Cin).

    Column ordering is (kh, kw, cin) to match the weight layout from
    `_prep_params`.  Built from pad + a column-pairing reshape + slices/concat
    only — no transposes, so activations never leave NHWC.
    """
    B, H, W, Cin = x.shape
    assert H % 2 == 0 and W % 2 == 0, "stride-2 k3 p1 conv: even H, W expected"
    # TODO(synk): odd H/W (PyTorch ceil output size) not supported.
    Ho, Wo = H // 2, W // 2
    xp = jnp.pad(x, ((0, 0), (1, 1), (1, 1), (0, 0)))            # (B, H+2, W+2, Cin)
    xr = xp.reshape(B, H + 2, Wo + 1, 2 * Cin)                   # pair W columns
    # per input row: the 3-wide kw window of every output column (kw, cin) order
    row_win = jnp.concatenate(
        [xr[:, :, :Wo, :], xr[:, :, 1:, :Cin]], axis=-1)         # (B, H+2, Wo, 3*Cin)
    # gather the three kh rows (2*oh + kh) for every output row
    patches = jnp.concatenate(
        [row_win[:, kh:kh + 2 * Ho:2] for kh in range(3)], axis=-1)  # (B,Ho,Wo,9*Cin)
    return patches.reshape(B * Ho * Wo, 9 * Cin), (B, Ho, Wo)


def conv3x3_s2_relu_nhwc(x, wmat, bias):
    """x: (B,H,W,Cin) NHWC; wmat: (9*Cin, Cout); bias: (Cout,) -> NHWC output."""
    patches, (B, Ho, Wo) = _im2col_s2_k3_nhwc(x)
    y = matmul_bias_relu(patches, wmat, bias)                    # (B*Ho*Wo, Cout)
    return y.reshape(B, Ho, Wo, wmat.shape[1])


# ----------------------------------------------------------------------------
# Parameter re-layout (tiny, one-time reshapes; keeps PyTorch conventions)
# ----------------------------------------------------------------------------
def _prep_params(params):
    def conv_w(w):  # (Cout, Cin, 3, 3) -> (9*Cin, Cout), row order (kh, kw, cin)
        return w.transpose(2, 3, 1, 0).reshape(-1, w.shape[0])

    c_out = params["w3"].shape[0]
    fc1_w = params["fc1_w"]                       # (128, c_out*side*side), torch (c,h,w) cols
    nfeat = fc1_w.shape[1]
    side = int(round((nfeat // c_out) ** 0.5))
    # reorder fc1 columns (c,h,w) -> (h,w,c) so the NHWC flatten needs no transpose
    w1 = (fc1_w.reshape(-1, c_out, side, side)
          .transpose(0, 2, 3, 1).reshape(-1, nfeat).T)           # (nfeat, 128)
    w23 = jnp.concatenate([params["fc2_w"].T, params["fc3_w"].T], axis=1)  # (128, 2L)
    b23 = jnp.concatenate([params["fc2_b"], params["fc3_b"]])
    return {
        "w1m": conv_w(params["w1"]), "b1": params["b1"],
        "w2m": conv_w(params["w2"]), "b2": params["b2"],
        "w3m": conv_w(params["w3"]), "b3": params["b3"],
        "fc1_w": w1, "fc1_b": params["fc1_b"],
        "fc23_w": w23, "fc23_b": b23,
    }


# ----------------------------------------------------------------------------
# Encoder forward (matches the PyTorch module semantics; input is NCHW)
# ----------------------------------------------------------------------------
def encoder_forward(params, x_nchw):
    p = _prep_params(params)
    x = x_nchw.transpose(0, 2, 3, 1)                             # NCHW -> NHWC, once
    x = conv3x3_s2_relu_nhwc(x, p["w1m"], p["b1"])               # (B, H/2, W/2, 16)
    x = conv3x3_s2_relu_nhwc(x, p["w2m"], p["b2"])               # (B, H/4, W/4, 32)
    x = conv3x3_s2_relu_nhwc(x, p["w3m"], p["b3"])               # (B, H/8, W/8, 64)
    B = x.shape[0]
    xf = x.reshape(B, -1)                                        # NHWC flatten (h, w, c)
    out = fc_head(xf, p["fc1_w"], p["fc1_b"], p["fc23_w"], p["fc23_b"])
    latent = params["fc2_w"].shape[0]
    return out[:, :latent], out[:, latent:]


def init_params(key, input_channels, latent_dim):
    ks = jax.random.split(key, 12)
    f32 = jnp.float32
    return {
        "w1": 0.05 * jax.random.normal(ks[0], (16, input_channels, 3, 3), f32),
        "b1": 0.05 * jax.random.normal(ks[1], (16,), f32),
        "w2": 0.05 * jax.random.normal(ks[2], (32, 16, 3, 3), f32),
        "b2": 0.05 * jax.random.normal(ks[3], (32,), f32),
        "w3": 0.05 * jax.random.normal(ks[4], (64, 32, 3, 3), f32),
        "b3": 0.05 * jax.random.normal(ks[5], (64,), f32),
        "fc1_w": 0.02 * jax.random.normal(ks[6], (128, 64 * 8 * 8), f32),
        "fc1_b": 0.02 * jax.random.normal(ks[7], (128,), f32),
        "fc2_w": 0.05 * jax.random.normal(ks[8], (latent_dim, 128), f32),
        "fc2_b": 0.05 * jax.random.normal(ks[9], (latent_dim,), f32),
        "fc3_w": 0.05 * jax.random.normal(ks[10], (latent_dim, 128), f32),
        "fc3_b": 0.05 * jax.random.normal(ks[11], (latent_dim,), f32),
    }


# Pure-JAX reference (PyTorch NCHW conventions) for a sanity check
def _ref_forward(params, x):
    def conv(x, w, b):
        y = jax.lax.conv_general_dilated(
            x, w, window_strides=(2, 2), padding=((1, 1), (1, 1)),
            dimension_numbers=("NCHW", "OIHW", "NCHW"))
        return jax.nn.relu(y + b[None, :, None, None])
    x = conv(x, params["w1"], params["b1"])
    x = conv(x, params["w2"], params["b2"])
    x = conv(x, params["w3"], params["b3"])
    x = x.reshape(x.shape[0], -1)                                # torch C-major flatten
    h = jax.nn.relu(x @ params["fc1_w"].T + params["fc1_b"])
    mu = h @ params["fc2_w"].T + params["fc2_b"]
    logvar = h @ params["fc3_w"].T + params["fc3_b"]
    return mu, logvar


if __name__ == "__main__":
    key = jax.random.PRNGKey(0)
    pkey, xkey = jax.random.split(key)

    input_channels, latent_dim = 4, 8
    # fc1 expects 64*8*8 features => spatial input must be 64x64 (64->32->16->8)
    B, H, W = 2, 64, 64
    x = jax.random.normal(xkey, (B, input_channels, H, W), jnp.float32)
    params = init_params(pkey, input_channels, latent_dim)

    fwd = jax.jit(encoder_forward)
    mu, logvar = jax.block_until_ready(fwd(params, x))
    assert mu.shape == (B, latent_dim) and logvar.shape == (B, latent_dim)

    mu_ref, lv_ref = _ref_forward(params, x)
    assert jnp.allclose(mu, mu_ref, atol=1e-2, rtol=1e-2)
    assert jnp.allclose(logvar, lv_ref, atol=1e-2, rtol=1e-2)

    print("KERNEL_OK")
</pallas_src>

<mosaic_0001>
module attributes {stable_mosaic.version = 11 : i64} {
  func.func @_mm_bias_relu_kernel(%arg0: i32, %arg1: memref<1024x36xf32, #tpu.memory_space<vmem>>, %arg2: memref<36x16xf32, #tpu.memory_space<vmem>>, %arg3: memref<1x16xf32, #tpu.memory_space<vmem>>, %arg4: memref<1024x16xf32, #tpu.memory_space<vmem>>) attributes {dimension_semantics = [#tpu.dimension_semantics<parallel>], iteration_bounds = array<i64: 2>, scalar_prefetch = 0 : i64, scratch_operands = 0 : i64, tpu.core_type = #tpu.core_type<tc>, window_params = [{transform_indices = @transform_0, window_bounds = array<i64: 1024, 36>}, {pipeline_mode = #tpu.pipeline_mode<synchronous>, transform_indices = @transform_1, window_bounds = array<i64: 36, 16>}, {pipeline_mode = #tpu.pipeline_mode<synchronous>, transform_indices = @transform_2, window_bounds = array<i64: 1, 16>}, {transform_indices = @transform_3, window_bounds = array<i64: 1024, 16>}]} {
    %c0 = arith.constant 0 : index
    %c0_0 = arith.constant 0 : index
    %0 = vector.load %arg1[%c0, %c0_0] : memref<1024x36xf32, #tpu.memory_space<vmem>>, vector<1024x36xf32>
    %c0_1 = arith.constant 0 : index
    %c0_2 = arith.constant 0 : index
    %1 = vector.load %arg2[%c0_1, %c0_2] : memref<36x16xf32, #tpu.memory_space<vmem>>, vector<36x16xf32>
    %cst = arith.constant dense<0.000000e+00> : vector<1024x16xf32>
    %2 = tpu.matmul %0, %1, %cst {dimension_numbers = #tpu.dot_dimension_numbers<[1], [0], [0], [1], [0, 0, 1, 1], [], []>} : vector<1024x36xf32>, vector<36x16xf32>, vector<1024x16xf32> -> vector<1024x16xf32>
    %c0_3 = arith.constant 0 : index
    %c0_4 = arith.constant 0 : index
    %3 = vector.load %arg3[%c0_3, %c0_4] : memref<1x16xf32, #tpu.memory_space<vmem>>, vector<1x16xf32>
    %4 = vector.broadcast %3 : vector<1x16xf32> to vector<1024x16xf32>
    %5 = arith.addf %2, %4 : vector<1024x16xf32>
    %cst_5 = arith.constant 0.000000e+00 : f32
    %6 = vector.broadcast %cst_5 : f32 to vector<1024x16xf32>
    %7 = arith.maximumf %5, %6 : vector<1024x16xf32>
    %c0_6 = arith.constant 0 : index
    %c0_7 = arith.constant 0 : index
    %8 = vector.load %arg4[%c0_6, %c0_7] : memref<1024x16xf32, #tpu.memory_space<vmem>>, vector<1024x16xf32>
    tpu.vector_store %arg4[%c0_6, %c0_7], %7 {strides = array<i32>} : memref<1024x16xf32, #tpu.memory_space<vmem>>, vector<1024x16xf32>,
    return
  }
  func.func @transform_0(%arg0: i32) -> (i32, i32) {
    %c0_i32 = arith.constant 0 : i32
    %c0_i32_0 = arith.constant 0 : i32
    return %arg0, %c0_i32 : i32, i32
  }
  func.func @transform_1(%arg0: i32) -> (i32, i32) {
    %c0_i32 = arith.constant 0 : i32
    %c0_i32_0 = arith.constant 0 : i32
    %c0_i32_1 = arith.constant 0 : i32
    return %c0_i32, %c0_i32_0 : i32, i32
  }
  func.func @transform_2(%arg0: i32) -> (i32, i32) {
    %c0_i32 = arith.constant 0 : i32
    %c0_i32_0 = arith.constant 0 : i32
    %c0_i32_1 = arith.constant 0 : i32
    return %c0_i32, %c0_i32_0 : i32, i32
  }
  func.func @transform_3(%arg0: i32) -> (i32, i32) {
    %c0_i32 = arith.constant 0 : i32
    %c0_i32_0 = arith.constant 0 : i32
    return %arg0, %c0_i32 : i32, i32
  }
}

module attributes {stable_mosaic.version = 11 : i64} {
  func.func @_mm_bias_relu_kernel(%arg0: i32, %arg1: memref<256x144xf32, #tpu.memory_space<vmem>>, %arg2: memref<144x32xf32, #tpu.memory_space<vmem>>, %arg3: memref<1x32xf32, #tpu.memory_space<vmem>>, %arg4: memref<256x32xf32, #tpu.memory_space<vmem>>) attributes {dimension_semantics = [#tpu.dimension_semantics<parallel>], iteration_bounds = array<i64: 2>, scalar_prefetch = 0 : i64, scratch_operands = 0 : i64, tpu.core_type = #tpu.core_type<tc>, window_params = [{transform_indices = @transform_0, window_bounds = array<i64: 256, 144>}, {pipeline_mode = #tpu.pipeline_mode<synchronous>, transform_indices = @transform_1, window_bounds = array<i64: 144, 32>}, {pipeline_mode = #tpu.pipeline_mode<synchronous>, transform_indices = @transform_2, window_bounds = array<i64: 1, 32>}, {transform_indices = @transform_3, window_bounds = array<i64: 256, 32>}]} {
    %c0 = arith.constant 0 : index
    %c0_0 = arith.constant 0 : index
    %0 = vector.load %arg1[%c0, %c0_0] : memref<256x144xf32, #tpu.memory_space<vmem>>, vector<256x144xf32>
    %c0_1 = arith.constant 0 : index
    %c0_2 = arith.constant 0 : index
    %1 = vector.load %arg2[%c0_1, %c0_2] : memref<144x32xf32, #tpu.memory_space<vmem>>, vector<144x32xf32>
    %cst = arith.constant dense<0.000000e+00> : vector<256x32xf32>
    %2 = tpu.matmul %0, %1, %cst {dimension_numbers = #tpu.dot_dimension_numbers<[1], [0], [0], [1], [0, 0, 1, 1], [], []>} : vector<256x144xf32>, vector<144x32xf32>, vector<256x32xf32> -> vector<256x32xf32>
    %c0_3 = arith.constant 0 : index
    %c0_4 = arith.constant 0 : index
    %3 = vector.load %arg3[%c0_3, %c0_4] : memref<1x32xf32, #tpu.memory_space<vmem>>, vector<1x32xf32>
    %4 = vector.broadcast %3 : vector<1x32xf32> to vector<256x32xf32>
    %5 = arith.addf %2, %4 : vector<256x32xf32>
    %cst_5 = arith.constant 0.000000e+00 : f32
    %6 = vector.broadcast %cst_5 : f32 to vector<256x32xf32>
    %7 = arith.maximumf %5, %6 : vector<256x32xf32>
    %c0_6 = arith.constant 0 : index
    %c0_7 = arith.constant 0 : index
    %8 = vector.load %arg4[%c0_6, %c0_7] : memref<256x32xf32, #tpu.memory_space<vmem>>, vector<256x32xf32>
    tpu.vector_store %arg4[%c0_6, %c0_7], %7 {strides = array<i32>} : memref<256x32xf32, #tpu.memory_space<vmem>>, vector<256x32xf32>,
    return
  }
  func.func @transform_0(%arg0: i32) -> (i32, i32) {
    %c0_i32 = arith.constant 0 : i32
    %c0_i32_0 = arith.constant 0 : i32
    return %arg0, %c0_i32 : i32, i32
  }
  func.func @transform_1(%arg0: i32) -> (i32, i32) {
    %c0_i32 = arith.constant 0 : i32
    %c0_i32_0 = arith.constant 0 : i32
    %c0_i32_1 = arith.constant 0 : i32
    return %c0_i32, %c0_i32_0 : i32, i32
  }
  func.func @transform_2(%arg0: i32) -> (i32, i32) {
    %c0_i32 = arith.constant 0 : i32
    %c0_i32_0 = arith.constant 0 : i32
    %c0_i32_1 = arith.constant 0 : i32
    return %c0_i32, %c0_i32_0 : i32, i32
  }
  func.func @transform_3(%arg0: i32) -> (i32, i32) {
    %c0_i32 = arith.constant 0 : i32
    %c0_i32_0 = arith.constant 0 : i32
    return %arg0, %c0_i32 : i32, i32
  }
}

module attributes {stable_mosaic.version = 11 : i64} {
  func.func @_mm_bias_relu_kernel(%arg0: i32, %arg1: memref<64x288xf32, #tpu.memory_space<vmem>>, %arg2: memref<288x64xf32, #tpu.memory_space<vmem>>, %arg3: memref<1x64xf32, #tpu.memory_space<vmem>>, %arg4: memref<64x64xf32, #tpu.memory_space<vmem>>) attributes {dimension_semantics = [#tpu.dimension_semantics<parallel>], iteration_bounds = array<i64: 2>, scalar_prefetch = 0 : i64, scratch_operands = 0 : i64, tpu.core_type = #tpu.core_type<tc>, window_params = [{transform_indices = @transform_0, window_bounds = array<i64: 64, 288>}, {pipeline_mode = #tpu.pipeline_mode<synchronous>, transform_indices = @transform_1, window_bounds = array<i64: 288, 64>}, {pipeline_mode = #tpu.pipeline_mode<synchronous>, transform_indices = @transform_2, window_bounds = array<i64: 1, 64>}, {transform_indices = @transform_3, window_bounds = array<i64: 64, 64>}]} {
    %c0 = arith.constant 0 : index
    %c0_0 = arith.constant 0 : index
    %0 = vector.load %arg1[%c0, %c0_0] : memref<64x288xf32, #tpu.memory_space<vmem>>, vector<64x288xf32>
    %c0_1 = arith.constant 0 : index
    %c0_2 = arith.constant 0 : index
    %1 = vector.load %arg2[%c0_1, %c0_2] : memref<288x64xf32, #tpu.memory_space<vmem>>, vector<288x64xf32>
    %cst = arith.constant dense<0.000000e+00> : vector<64x64xf32>
    %2 = tpu.matmul %0, %1, %cst {dimension_numbers = #tpu.dot_dimension_numbers<[1], [0], [0], [1], [0, 0, 1, 1], [], []>} : vector<64x288xf32>, vector<288x64xf32>, vector<64x64xf32> -> vector<64x64xf32>
    %c0_3 = arith.constant 0 : index
    %c0_4 = arith.constant 0 : index
    %3 = vector.load %arg3[%c0_3, %c0_4] : memref<1x64xf32, #tpu.memory_space<vmem>>, vector<1x64xf32>
    %4 = vector.broadcast %3 : vector<1x64xf32> to vector<64x64xf32>
    %5 = arith.addf %2, %4 : vector<64x64xf32>
    %cst_5 = arith.constant 0.000000e+00 : f32
    %6 = vector.broadcast %cst_5 : f32 to vector<64x64xf32>
    %7 = arith.maximumf %5, %6 : vector<64x64xf32>
    %c0_6 = arith.constant 0 : index
    %c0_7 = arith.constant 0 : index
    %8 = vector.load %arg4[%c0_6, %c0_7] : memref<64x64xf32, #tpu.memory_space<vmem>>, vector<64x64xf32>
    tpu.vector_store %arg4[%c0_6, %c0_7], %7 {strides = array<i32>} : memref<64x64xf32, #tpu.memory_space<vmem>>, vector<64x64xf32>,
    return
  }
  func.func @transform_0(%arg0: i32) -> (i32, i32) {
    %c0_i32 = arith.constant 0 : i32
    %c0_i32_0 = arith.constant 0 : i32
    return %arg0, %c0_i32 : i32, i32
  }
  func.func @transform_1(%arg0: i32) -> (i32, i32) {
    %c0_i32 = arith.constant 0 : i32
    %c0_i32_0 = arith.constant 0 : i32
    %c0_i32_1 = arith.constant 0 : i32
    return %c0_i32, %c0_i32_0 : i32, i32
  }
  func.func @transform_2(%arg0: i32) -> (i32, i32) {
    %c0_i32 = arith.constant 0 : i32
    %c0_i32_0 = arith.constant 0 : i32
    %c0_i32_1 = arith.constant 0 : i32
    return %c0_i32, %c0_i32_0 : i32, i32
  }
  func.func @transform_3(%arg0: i32) -> (i32, i32) {
    %c0_i32 = arith.constant 0 : i32
    %c0_i32_0 = arith.constant 0 : i32
    return %arg0, %c0_i32 : i32, i32
  }
}

module attributes {stable_mosaic.version = 11 : i64} {
  func.func @_fc_head_kernel(%arg0: i32, %arg1: memref<2x4096xf32, #tpu.memory_space<vmem>>, %arg2: memref<4096x128xf32, #tpu.memory_space<vmem>>, %arg3: memref<1x128xf32, #tpu.memory_space<vmem>>, %arg4: memref<128x16xf32, #tpu.memory_space<vmem>>, %arg5: memref<1x16xf32, #tpu.memory_space<vmem>>, %arg6: memref<2x16xf32, #tpu.memory_space<vmem>>) attributes {dimension_semantics = [#tpu.dimension_semantics<arbitrary>], iteration_bounds = array<i64: 1>, scalar_prefetch = 0 : i64, scratch_operands = 0 : i64, tpu.core_type = #tpu.core_type<tc>, window_params = [{pipeline_mode = #tpu.pipeline_mode<synchronous>, transform_indices = @transform_0, window_bounds = array<i64: 2, 4096>}, {pipeline_mode = #tpu.pipeline_mode<synchronous>, transform_indices = @transform_1, window_bounds = array<i64: 4096, 128>}, {pipeline_mode = #tpu.pipeline_mode<synchronous>, transform_indices = @transform_2, window_bounds = array<i64: 1, 128>}, {pipeline_mode = #tpu.pipeline_mode<synchronous>, transform_indices = @transform_3, window_bounds = array<i64: 128, 16>}, {pipeline_mode = #tpu.pipeline_mode<synchronous>, transform_indices = @transform_4, window_bounds = array<i64: 1, 16>}, {pipeline_mode = #tpu.pipeline_mode<synchronous>, transform_indices = @transform_5, window_bounds = array<i64: 2, 16>}]} {
    %c0 = arith.constant 0 : index
    %c0_0 = arith.constant 0 : index
    %0 = vector.load %arg1[%c0, %c0_0] : memref<2x4096xf32, #tpu.memory_space<vmem>>, vector<2x4096xf32>
    %c0_1 = arith.constant 0 : index
    %c0_2 = arith.constant 0 : index
    %1 = vector.load %arg2[%c0_1, %c0_2] : memref<4096x128xf32, #tpu.memory_space<vmem>>, vector<4096x128xf32>
    %cst = arith.constant dense<0.000000e+00> : vector<2x128xf32>
    %2 = tpu.matmul %0, %1, %cst {dimension_numbers = #tpu.dot_dimension_numbers<[1], [0], [0], [1], [0, 0, 1, 1], [], []>} : vector<2x4096xf32>, vector<4096x128xf32>, vector<2x128xf32> -> vector<2x128xf32>
    %c0_3 = arith.constant 0 : index
    %c0_4 = arith.constant 0 : index
    %3 = vector.load %arg3[%c0_3, %c0_4] : memref<1x128xf32, #tpu.memory_space<vmem>>, vector<1x128xf32>
    %4 = vector.broadcast %3 : vector<1x128xf32> to vector<2x128xf32>
    %5 = arith.addf %2, %4 : vector<2x128xf32>
    %cst_5 = arith.constant 0.000000e+00 : f32
    %6 = vector.broadcast %cst_5 : f32 to vector<2x128xf32>
    %7 = arith.maximumf %5, %6 : vector<2x128xf32>
    %c0_6 = arith.constant 0 : index
    %c0_7 = arith.constant 0 : index
    %8 = vector.load %arg4[%c0_6, %c0_7] : memref<128x16xf32, #tpu.memory_space<vmem>>, vector<128x16xf32>
    %cst_8 = arith.constant dense<0.000000e+00> : vector<2x16xf32>
    %9 = tpu.matmul %7, %8, %cst_8 {dimension_numbers = #tpu.dot_dimension_numbers<[1], [0], [0], [1], [0, 0, 1, 1], [], []>} : vector<2x128xf32>, vector<128x16xf32>, vector<2x16xf32> -> vector<2x16xf32>
    %c0_9 = arith.constant 0 : index
    %c0_10 = arith.constant 0 : index
    %10 = vector.load %arg5[%c0_9, %c0_10] : memref<1x16xf32, #tpu.memory_space<vmem>>, vector<1x16xf32>
    %11 = vector.broadcast %10 : vector<1x16xf32> to vector<2x16xf32>
    %12 = arith.addf %9, %11 : vector<2x16xf32>
    %c0_11 = arith.constant 0 : index
    %c0_12 = arith.constant 0 : index
    %13 = vector.load %arg6[%c0_11, %c0_12] : memref<2x16xf32, #tpu.memory_space<vmem>>, vector<2x16xf32>
    tpu.vector_store %arg6[%c0_11, %c0_12], %12 {strides = array<i32>} : memref<2x16xf32, #tpu.memory_space<vmem>>, vector<2x16xf32>,
    return
  }
  func.func @transform_0(%arg0: i32) -> (i32, i32) {
    %c0_i32 = arith.constant 0 : i32
    %c0_i32_0 = arith.constant 0 : i32
    %c0_i32_1 = arith.constant 0 : i32
    return %c0_i32, %c0_i32_0 : i32, i32
  }
  func.func @transform_1(%arg0: i32) -> (i32, i32) {
    %c0_i32 = arith.constant 0 : i32
    %c0_i32_0 = arith.constant 0 : i32
    %c0_i32_1 = arith.constant 0 : i32
    return %c0_i32, %c0_i32_0 : i32, i32
  }
  func.func @transform_2(%arg0: i32) -> (i32, i32) {
    %c0_i32 = arith.constant 0 : i32
    %c0_i32_0 = arith.constant 0 : i32
    %c0_i32_1 = arith.constant 0 : i32
    return %c0_i32, %c0_i32_0 : i32, i32
  }
  func.func @transform_3(%arg0: i32) -> (i32, i32) {
    %c0_i32 = arith.constant 0 : i32
    %c0_i32_0 = arith.constant 0 : i32
    %c0_i32_1 = arith.constant 0 : i32
    return %c0_i32, %c0_i32_0 : i32, i32
  }
  func.func @transform_4(%arg0: i32) -> (i32, i32) {
    %c0_i32 = arith.constant 0 : i32
    %c0_i32_0 = arith.constant 0 : i32
    %c0_i32_1 = arith.constant 0 : i32
    return %c0_i32, %c0_i32_0 : i32, i32
  }
  func.func @transform_5(%arg0: i32) -> (i32, i32) {
    %c0_i32 = arith.constant 0 : i32
    %c0_i32_0 = arith.constant 0 : i32
    %c0_i32_1 = arith.constant 0 : i32
    return %c0_i32, %c0_i32_0 : i32, i32
  }
}

</mosaic_0001>

<bundles_post_ra>
// kernel: encoder_forward.4
= control target key start
LH: loop header
LB: loop body
LE: loop exit
PB: predicated region body
PF: predicated region fallthrough
CT: control target
= control target key end

     0   :  { %s2247_s12 = smov 0   ;;  %s2939_s0 = inlined_call_operand.vmem [shape: f32[2048,36], index: 0, kind: input, shape index: {}]   ;;  %s2940_s1 = inlined_call_operand.vmem [shape: f32[36,16], index: 1, kind: input, shape index: {}]   ;;  %s2941_s2 = inlined_call_operand.vmem [shape: f32[1,16], index: 2, kind: input, shape index: {}]   ;;  %s2942_s3 = inlined_call_operand.vmem [shape: f32[2048,16], index: 3, kind: output, shape index: {}]  }
   0x1 LB: > { %s1721_s13 = sadd.s32 4294967295, %s2225_s12   ;;  %p1725_p0 = scmp.ge.s32.totalorder %s2225_s12, 1  ;;  %s2225_s12 = sphi %s2247_s12, %s13_s12  }
   0x2   : > { %p138_p1 = scmp.lt.s32.totalorder %s2225_s12, 3 }
   0x4   : > { %p139_p2 = pnand %p1725_p0, %p138_p1 }
   0x5   : > { %v302_v0 = vld [vmem:[%s2940_s1] sm:$0xff] (!%p139_p2)  ;;  %v303_v1 = vld [vmem:[%s2940_s1 + $0x8] sm:$0xff] (!%p139_p2)  ;;  %v304_v2 = vld [vmem:[%s2940_s1 + $0x10] sm:$0xff] (!%p139_p2)  ;;  %s1726_s20 = sshll.u32 (!%p139_p2), %s1721_s13, 7  ;;  %vm699_vm0 = vcmask (!%p139_p2), 1043456   ;;  %vm314_vm1 = vcmask (!%p139_p2), 293888  }
   0x6   : > { %142 = sbr.rel (%p139_p2) target bundleno = 361 (0x169), region = 32  ;;  %v2197_v3 = vpack.c.bf16 (!%p139_p2), %v303_v1, %v302_v0  ;;  %v305_v4 = vld [vmem:[%s2940_s1 + $0x18] sm:$0xff] (!%p139_p2)  ;;  %p163_p3 = scmp.lt.s32.totalorder (!%p139_p2), %s1726_s20, 255  ;;  %v306_v6 = vld [vmem:[%s2940_s1 + $0x20] sm:$0xf] (!%p139_p2)  ;;  %vm1536_vm2 = vcmask (!%p139_p2), 130048  }
   0x7   : > { %v2201_v5 = vpack.c.bf16 (!%p139_p2), %v305_v4, %v304_v2 }
   0x8   : > { %2198 = vmatprep.subr.bf16.mxu0 (!%p139_p2), %v2197_v3  ;;  %2205 = vmatprep.subr.bf16.mxu1 (!%p139_p2), %v2197_v3 }
   0x9   : > { %2200 = vmatpush3.bf16.msra.mxu0 (!%p139_p2), %v2197_v3  ;;  %2208 = vmatpush3.bf16.msra.mxu1 (!%p139_p2), %v2197_v3 }
   0xa   : > { %2202 = vmatprep.subr.bf16.mxu0 (!%p139_p2), %v2201_v5  ;;  %2206 = vmatprep.subr.bf16.mxu1 (!%p139_p2), %v2201_v5 }
   0xd   : > { %s2944_s20 = smov (!%p163_p3, %s1726_s20), 255  ;;  %2204 = vmatpush3.bf16.msra.mxu0 %v2201_v5  ;;  %2209 = vmatpush3.bf16.msra.mxu1 %v2201_v5 }
   0xe   : > { %s1727_s23 = sshll.u32 %s2944_s20, 3  ;;  %2003 = vmatprep.subr.msk.mxu0 %vm699_vm0, %v306_v6  ;;  %2207 = vmatprep.subr.msk.mxu1 %vm699_vm0, %v306_v6 }
   0xf   : > { %s2278_s28 = scalar_lea.vmem %s2939_s0, %s1727_s23  ;;  %s2552_s6 = scalar_lea.vmem %s2942_s3, %s1727_s23 }
  0x10   : > { %v174_v7 = vld [vmem:[%s2278_s28] sm:$0xff]  ;;  %v175_v9 = vld [vmem:[%s2278_s28 + $0x8] sm:$0xff]  ;;  %v176_v11 = vld [vmem:[%s2278_s28 + $0x10] sm:$0xff] }
  0x11   : > { %v238_v8 = vld [vmem:[%s2278_s28 + $0x200] sm:$0xff]  ;;  %2005 = vmatprep.mubr.msk.f32.mxu0 %vm314_vm1, %v174_v7  ;;  %v239_v10 = vld [vmem:[%s2278_s28 + $0x208] sm:$0xff]  ;;  %v240_v12 = vld [vmem:[%s2278_s28 + $0x210] sm:$0xff]  ;;  %2004 = vmatpush3.msk.msra.mxu0 %vm699_vm0, %v306_v6 }
  0x12   : > { %2101 = vmatprep.mubr.msk.f32.mxu1 %vm314_vm1, %v238_v8  ;;  %2210 = vmatpush3.msk.msra.mxu1 %vm699_vm0, %v306_v6  ;;  %v177_v13 = vld [vmem:[%s2278_s28 + $0x18] sm:$0xff]  ;;  %v178_v15 = vld [vmem:[%s2278_s28 + $0x20] sm:$0xff]  ;;  %v179_v17 = vld [vmem:[%s2278_s28 + $0x28] sm:$0xff] }
  0x13   : > { %2006 = vmatmul.mubr.msk.f32.vlgmr.msra.gmra.mrb[0].mxu0 %vm314_vm1, %v175_v9  ;;  %2102 = vmatmul.mubr.msk.f32.vlgmr.msra.gmra.mrb[0].mxu1 %vm314_vm1, %v239_v10  ;;  %v241_v14 = vld [vmem:[%s2278_s28 + $0x218] sm:$0xff]  ;;  %v242_v16 = vld [vmem:[%s2278_s28 + $0x220] sm:$0xff]  ;;  %v243_v18 = vld [vmem:[%s2278_s28 + $0x228] sm:$0xff] }
  0x14   : > { %2008 = vmatprep.mubr.msk.f32.mxu0 %vm314_vm1, %v176_v11  ;;  %2104 = vmatprep.mubr.msk.f32.mxu1 %vm314_vm1, %v240_v12  ;;  %v180_v19 = vld [vmem:[%s2278_s28 + $0x30] sm:$0xff]  ;;  %v181_v21 = vld [vmem:[%s2278_s28 + $0x38] sm:$0xff]  ;;  %v182_v23 = vld [vmem:[%s2278_s28 + $0x40] sm:$0xff] }
  0x15   : > { %v244_v20 = vld [vmem:[%s2278_s28 + $0x230] sm:$0xff]  ;;  %v245_v22 = vld [vmem:[%s2278_s28 + $0x238] sm:$0xff]  ;;  %v246_v24 = vld [vmem:[%s2278_s28 + $0x240] sm:$0xff] }
  0x16   : > { %v183_v25 = vld [vmem:[%s2278_s28 + $0x48] sm:$0xff]  ;;  %v184_v27 = vld [vmem:[%s2278_s28 + $0x50] sm:$0xff]  ;;  %v185_v29 = vld [vmem:[%s2278_s28 + $0x58] sm:$0xff] }
  0x17   : > { %2009 = vmatmul.mubr.msk.f32.gmra.mrb[2].mxu0 %vm314_vm1, %v177_v13  ;;  %2105 = vmatmul.mubr.msk.f32.gmra.mrb[2].mxu1 %vm314_vm1, %v241_v14  ;;  %v247_v26 = vld [vmem:[%s2278_s28 + $0x248] sm:$0xff]  ;;  %v248_v28 = vld [vmem:[%s2278_s28 + $0x250] sm:$0xff]  ;;  %v249_v30 = vld [vmem:[%s2278_s28 + $0x258] sm:$0xff] }
  0x18   : > { %2011 = vmatprep.mubr.msk.f32.mxu0 %vm314_vm1, %v178_v15  ;;  %2107 = vmatprep.mubr.msk.f32.mxu1 %vm314_vm1, %v242_v16  ;;  %v186_v31 = vld [vmem:[%s2278_s28 + $0x60] sm:$0xff]  ;;  %v187_v33 = vld [vmem:[%s2278_s28 + $0x68] sm:$0xff]  ;;  %v188_v35 = vld [vmem:[%s2278_s28 + $0x70] sm:$0xff] }
  0x19   : > { %v250_v32 = vld [vmem:[%s2278_s28 + $0x260] sm:$0xff]  ;;  %v251_v34 = vld [vmem:[%s2278_s28 + $0x268] sm:$0xff]  ;;  %v252_v36 = vld [vmem:[%s2278_s28 + $0x270] sm:$0xff] }
  0x1a   : > { %v189_v37 = vld [vmem:[%s2278_s28 + $0x78] sm:$0xff]  ;;  %v190_v39 = vld [vmem:[%s2278_s28 + $0x80] sm:$0xff]  ;;  %v191_v41 = vld [vmem:[%s2278_s28 + $0x88] sm:$0xff] }
  0x1b   : > { %2012 = vmatmul.mubr.msk.f32.gmra.mrb[4].mxu0 %vm314_vm1, %v179_v17  ;;  %2108 = vmatmul.mubr.msk.f32.gmra.mrb[4].mxu1 %vm314_vm1, %v243_v18  ;;  %v253_v38 = vld [vmem:[%s2278_s28 + $0x278] sm:$0xff]  ;;  %v254_v40 = vld [vmem:[%s2278_s28 + $0x280] sm:$0xff]  ;;  %v255_v42 = vld [vmem:[%s2278_s28 + $0x288] sm:$0xff] }
  0x1c   : > { %2014 = vmatprep.mubr.msk.f32.mxu0 %vm314_vm1, %v180_v19  ;;  %2110 = vmatprep.mubr.msk.f32.mxu1 %vm314_vm1, %v244_v20  ;;  %v192_v43 = vld [vmem:[%s2278_s28 + $0x90] sm:$0xff]  ;;  %v193_v45 = vld [vmem:[%s2278_s28 + $0x98] sm:$0xff]  ;;  %v194_v47 = vld [vmem:[%s2278_s28 + $0xa0] sm:$0xff] }
  0x1d   : > { %v256_v44 = vld [vmem:[%s2278_s28 + $0x290] sm:$0xff]  ;;  %v257_v46 = vld [vmem:[%s2278_s28 + $0x298] sm:$0xff]  ;;  %v258_v48 = vld [vmem:[%s2278_s28 + $0x2a0] sm:$0xff] }
  0x1e   : > { %v195_v49 = vld [vmem:[%s2278_s28 + $0xa8] sm:$0xff]  ;;  %v196_v51 = vld [vmem:[%s2278_s28 + $0xb0] sm:$0xff]  ;;  %v197_v53 = vld [vmem:[%s2278_s28 + $0xb8] sm:$0xff] }
  0x1f   : > { %2015 = vmatmul.mubr.msk.f32.gmra.mrb[6].mxu0 %vm314_vm1, %v181_v21  ;;  %2111 = vmatmul.mubr.msk.f32.gmra.mrb[6].mxu1 %vm314_vm1, %v245_v22  ;;  %v259_v50 = vld [vmem:[%s2278_s28 + $0x2a8] sm:$0xff]  ;;  %v260_v52 = vld [vmem:[%s2278_s28 + $0x2b0] sm:$0xff]  ;;  %v261_v54 = vld [vmem:[%s2278_s28 + $0x2b8] sm:$0xff] }
  0x20   : > { %2017 = vmatprep.mubr.msk.f32.mxu0 %vm314_vm1, %v182_v23  ;;  %2113 = vmatprep.mubr.msk.f32.mxu1 %vm314_vm1, %v246_v24  ;;  %v198_v55 = vld [vmem:[%s2278_s28 + $0xc0] sm:$0xff]  ;;  %v199_v57 = vld [vmem:[%s2278_s28 + $0xc8] sm:$0xff]  ;;  %v200_v59 = vld [vmem:[%s2278_s28 + $0xd0] sm:$0xff] }
  0x21   : > { %v262_v56 = vld [vmem:[%s2278_s28 + $0x2c0] sm:$0xff]  ;;  %v263_v58 = vld [vmem:[%s2278_s28 + $0x2c8] sm:$0xff]  ;;  %v264_v60 = vld [vmem:[%s2278_s28 + $0x2d0] sm:$0xff] }
  0x22   : > { %v201_v61 = vld [vmem:[%s2278_s28 + $0xd8] sm:$0xff]  ;;  %v202_v63 = vld [vmem:[%s2278_s28 + $0xe0] sm:$0xff]  ;;  %v203_v1 = vld [vmem:[%s2278_s28 + $0xe8] sm:$0xff] }
  0x23   : > { %2018 = vmatmul.mubr.msk.f32.gmra.mrb[8].mxu0 %vm314_vm1, %v183_v25  ;;  %2114 = vmatmul.mubr.msk.f32.gmra.mrb[8].mxu1 %vm314_vm1, %v247_v26  ;;  %v265_v62 = vld [vmem:[%s2278_s28 + $0x2d8] sm:$0xff]  ;;  %v266_v0 = vld [vmem:[%s2278_s28 + $0x2e0] sm:$0xff]  ;;  %v267_v2 = vld [vmem:[%s2278_s28 + $0x2e8] sm:$0xff] }
  0x24   : > { %2020 = vmatprep.mubr.msk.f32.mxu0 %vm314_vm1, %v184_v27  ;;  %2116 = vmatprep.mubr.msk.f32.mxu1 %vm314_vm1, %v248_v28  ;;  %v204_v3 = vld [vmem:[%s2278_s28 + $0xf0] sm:$0xff]  ;;  %v205_v5 = vld [vmem:[%s2278_s28 + $0xf8] sm:$0xff]  ;;  %v206_v7 = vld [vmem:[%s2278_s28 + $0x100] sm:$0xff] }
  0x25   : > { %v268_v4 = vld [vmem:[%s2278_s28 + $0x2f0] sm:$0xff]  ;;  %v269_v6 = vld [vmem:[%s2278_s28 + $0x2f8] sm:$0xff]  ;;  %v270_v8 = vld [vmem:[%s2278_s28 + $0x300] sm:$0xff] }
  0x26   : > { %v207_v9 = vld [vmem:[%s2278_s28 + $0x108] sm:$0xff]  ;;  %v208_v11 = vld [vmem:[%s2278_s28 + $0x110] sm:$0xff]  ;;  %v209_v13 = vld [vmem:[%s2278_s28 + $0x118] sm:$0xff] }
  0x27   : > { %2021 = vmatmul.mubr.msk.f32.gmra.mrb[10].mxu0 %vm314_vm1, %v185_v29  ;;  %2117 = vmatmul.mubr.msk.f32.gmra.mrb[10].mxu1 %vm314_vm1, %v249_v30  ;;  %v271_v10 = vld [vmem:[%s2278_s28 + $0x308] sm:$0xff]  ;;  %v272_v12 = vld [vmem:[%s2278_s28 + $0x310] sm:$0xff]  ;;  %v273_v14 = vld [vmem:[%s2278_s28 + $0x318] sm:$0xff] }
  0x28   : > { %2023 = vmatprep.mubr.msk.f32.mxu0 %vm314_vm1, %v186_v31  ;;  %2119 = vmatprep.mubr.msk.f32.mxu1 %vm314_vm1, %v250_v32  ;;  %v210_v15 = vld [vmem:[%s2278_s28 + $0x120] sm:$0xff]  ;;  %v211_v17 = vld [vmem:[%s2278_s28 + $0x128] sm:$0xff]  ;;  %v212_v19 = vld [vmem:[%s2278_s28 + $0x130] sm:$0xff] }
  0x29   : > { %v274_v16 = vld [vmem:[%s2278_s28 + $0x320] sm:$0xff]  ;;  %v275_v18 = vld [vmem:[%s2278_s28 + $0x328] sm:$0xff]  ;;  %v276_v20 = vld [vmem:[%s2278_s28 + $0x330] sm:$0xff] }
  0x2a   : > { %v213_v21 = vld [vmem:[%s2278_s28 + $0x138] sm:$0xff]  ;;  %v214_v23 = vld [vmem:[%s2278_s28 + $0x140] sm:$0xff]  ;;  %v215_v25 = vld [vmem:[%s2278_s28 + $0x148] sm:$0xff] }
  0x2b   : > { %2024 = vmatmul.mubr.msk.f32.gmra.mrb[12].mxu0 %vm314_vm1, %v187_v33  ;;  %2120 = vmatmul.mubr.msk.f32.gmra.mrb[12].mxu1 %vm314_vm1, %v251_v34  ;;  %v277_v22 = vld [vmem:[%s2278_s28 + $0x338] sm:$0xff]  ;;  %v278_v24 = vld [vmem:[%s2278_s28 + $0x340] sm:$0xff]  ;;  %v279_v26 = vld [vmem:[%s2278_s28 + $0x348] sm:$0xff] }
  0x2c   : > { %2026 = vmatprep.mubr.msk.f32.mxu0 %vm314_vm1, %v188_v35  ;;  %2122 = vmatprep.mubr.msk.f32.mxu1 %vm314_vm1, %v252_v36  ;;  %v216_v27 = vld [vmem:[%s2278_s28 + $0x150] sm:$0xff]  ;;  %v217_v29 = vld [vmem:[%s2278_s28 + $0x158] sm:$0xff]  ;;  %v218_v31 = vld [vmem:[%s2278_s28 + $0x160] sm:$0xff] }
  0x2d   : > { %v280_v28 = vld [vmem:[%s2278_s28 + $0x350] sm:$0xff]  ;;  %v281_v30 = vld [vmem:[%s2278_s28 + $0x358] sm:$0xff]  ;;  %v282_v32 = vld [vmem:[%s2278_s28 + $0x360] sm:$0xff] }
  0x2e   : > { %v219_v33 = vld [vmem:[%s2278_s28 + $0x168] sm:$0xff]  ;;  %v220_v35 = vld [vmem:[%s2278_s28 + $0x170] sm:$0xff] }
  0x2f   : > { %2027 = vmatmul.mubr.msk.f32.gmra.mrb[14].mxu0 %vm314_vm1, %v189_v37  ;;  %2123 = vmatmul.mubr.msk.f32.gmra.mrb[14].mxu1 %vm314_vm1, %v253_v38  ;;  %v283_v34 = vld [vmem:[%s2278_s28 + $0x368] sm:$0xff]  ;;  %v284_v36 = vld [vmem:[%s2278_s28 + $0x370] sm:$0xff]  ;;  %v221_v37 = vld [vmem:[%s2278_s28 + $0x178] sm:$0xff] }
  0x30   : > { %2029 = vmatprep.mubr.msk.f32.mxu0 %vm314_vm1, %v190_v39  ;;  %2125 = vmatprep.mubr.msk.f32.mxu1 %vm314_vm1, %v254_v40  ;;  %v285_v38 = vld [vmem:[%s2278_s28 + $0x378] sm:$0xff]  ;;  %v222_v39 = vld [vmem:[%s2278_s28 + $0x180] sm:$0xff] }
  0x31   : > { %v286_v40 = vld [vmem:[%s2278_s28 + $0x380] sm:$0xff] }
  0x33   : > { %2030 = vmatmul.mubr.msk.f32.gmra.mrb[16].mxu0 %vm314_vm1, %v191_v41  ;;  %2126 = vmatmul.mubr.msk.f32.gmra.mrb[16].mxu1 %vm314_vm1, %v255_v42  ;;  %v223_v41 = vld [vmem:[%s2278_s28 + $0x188] sm:$0xff] }
  0x34   : > { %2032 = vmatprep.mubr.msk.f32.mxu0 %vm314_vm1, %v192_v43  ;;  %2128 = vmatprep.mubr.msk.f32.mxu1 %vm314_vm1, %v256_v44  ;;  %v287_v42 = vld [vmem:[%s2278_s28 + $0x388] sm:$0xff]  ;;  %v224_v43 = vld [vmem:[%s2278_s28 + $0x190] sm:$0xff] }
  0x35   : > { %v288_v44 = vld [vmem:[%s2278_s28 + $0x390] sm:$0xff] }
  0x37   : > { %2033 = vmatmul.mubr.msk.f32.gmra.mrb[18].mxu0 %vm314_vm1, %v193_v45  ;;  %2129 = vmatmul.mubr.msk.f32.gmra.mrb[18].mxu1 %vm314_vm1, %v257_v46  ;;  %v225_v45 = vld [vmem:[%s2278_s28 + $0x198] sm:$0xff] }
  0x38   : > { %2035 = vmatprep.mubr.msk.f32.mxu0 %vm314_vm1, %v194_v47  ;;  %2131 = vmatprep.mubr.msk.f32.mxu1 %vm314_vm1, %v258_v48  ;;  %v289_v46 = vld [vmem:[%s2278_s28 + $0x398] sm:$0xff]  ;;  %v226_v47 = vld [vmem:[%s2278_s28 + $0x1a0] sm:$0xff] }
  0x39   : > { %v290_v48 = vld [vmem:[%s2278_s28 + $0x3a0] sm:$0xff] }
  0x3b   : > { %2036 = vmatmul.mubr.msk.f32.gmra.mrb[20].mxu0 %vm314_vm1, %v195_v49  ;;  %2132 = vmatmul.mubr.msk.f32.gmra.mrb[20].mxu1 %vm314_vm1, %v259_v50  ;;  %v227_v49 = vld [vmem:[%s2278_s28 + $0x1a8] sm:$0xff] }
  0x3c   : > { %2038 = vmatprep.mubr.msk.f32.mxu0 %vm314_vm1, %v196_v51  ;;  %2134 = vmatprep.mubr.msk.f32.mxu1 %vm314_vm1, %v260_v52  ;;  %v291_v50 = vld [vmem:[%s2278_s28 + $0x3a8] sm:$0xff]  ;;  %v228_v51 = vld [vmem:[%s2278_s28 + $0x1b0] sm:$0xff] }
  0x3d   : > { %v292_v52 = vld [vmem:[%s2278_s28 + $0x3b0] sm:$0xff] }
  0x3f   : > { %2039 = vmatmul.mubr.msk.f32.gmra.mrb[22].mxu0 %vm314_vm1, %v197_v53  ;;  %2135 = vmatmul.mubr.msk.f32.gmra.mrb[22].mxu1 %vm314_vm1, %v261_v54  ;;  %v229_v53 = vld [vmem:[%s2278_s28 + $0x1b8] sm:$0xff] }
  0x40   : > { %2041 = vmatprep.mubr.msk.f32.mxu0 %vm314_vm1, %v198_v55  ;;  %2137 = vmatprep.mubr.msk.f32.mxu1 %vm314_vm1, %v262_v56  ;;  %v293_v54 = vld [vmem:[%s2278_s28 + $0x3b8] sm:$0xff]  ;;  %v230_v55 = vld [vmem:[%s2278_s28 + $0x1c0] sm:$0xff] }
  0x41   : > { %v294_v56 = vld [vmem:[%s2278_s28 + $0x3c0] sm:$0xff] }
  0x43   : > { %2042 = vmatmul.mubr.msk.f32.gmra.mrb[24].mxu0 %vm314_vm1, %v199_v57  ;;  %2138 = vmatmul.mubr.msk.f32.gmra.mrb[24].mxu1 %vm314_vm1, %v263_v58  ;;  %v231_v57 = vld [vmem:[%s2278_s28 + $0x1c8] sm:$0xff] }
  0x44   : > { %2044 = vmatprep.mubr.msk.f32.mxu0 %vm314_vm1, %v200_v59  ;;  %2140 = vmatprep.mubr.msk.f32.mxu1 %vm314_vm1, %v264_v60  ;;  %v295_v58 = vld [vmem:[%s2278_s28 + $0x3c8] sm:$0xff]  ;;  %v232_v59 = vld [vmem:[%s2278_s28 + $0x1d0] sm:$0xff] }
  0x45   : > { %v296_v60 = vld [vmem:[%s2278_s28 + $0x3d0] sm:$0xff] }
  0x47   : > { %2045 = vmatmul.mubr.msk.f32.gmra.mrb[26].mxu0 %vm314_vm1, %v201_v61  ;;  %2141 = vmatmul.mubr.msk.f32.gmra.mrb[26].mxu1 %vm314_vm1, %v265_v62  ;;  %v233_v61 = vld [vmem:[%s2278_s28 + $0x1d8] sm:$0xff] }
  0x48   : > { %2047 = vmatprep.mubr.msk.f32.mxu0 %vm314_vm1, %v202_v63  ;;  %2143 = vmatprep.mubr.msk.f32.mxu1 %vm314_vm1, %v266_v0  ;;  %v297_v62 = vld [vmem:[%s2278_s28 + $0x3d8] sm:$0xff]  ;;  %v234_v63 = vld [vmem:[%s2278_s28 + $0x1e0] sm:$0xff] }
  0x49   : > { %v298_v0 = vld [vmem:[%s2278_s28 + $0x3e0] sm:$0xff] }
  0x4b   : > { %2048 = vmatmul.mubr.msk.f32.gmra.mrb[28].mxu0 %vm314_vm1, %v203_v1  ;;  %2144 = vmatmul.mubr.msk.f32.gmra.mrb[28].mxu1 %vm314_vm1, %v267_v2  ;;  %v235_v1 = vld [vmem:[%s2278_s28 + $0x1e8] sm:$0xff] }
  0x4c   : > { %2050 = vmatprep.mubr.msk.f32.mxu0 %vm314_vm1, %v204_v3  ;;  %2146 = vmatprep.mubr.msk.f32.mxu1 %vm314_vm1, %v268_v4  ;;  %v299_v2 = vld [vmem:[%s2278_s28 + $0x3e8] sm:$0xff]  ;;  %v236_v3 = vld [vmem:[%s2278_s28 + $0x1f0] sm:$0xff] }
  0x4d   : > { %v300_v4 = vld [vmem:[%s2278_s28 + $0x3f0] sm:$0xff] }
  0x4f   : > { %2051 = vmatmul.mubr.msk.f32.gmra.mrb[30].mxu0 %vm314_vm1, %v205_v5  ;;  %2147 = vmatmul.mubr.msk.f32.gmra.mrb[30].mxu1 %vm314_vm1, %v269_v6  ;;  %v237_v5 = vld [vmem:[%s2278_s28 + $0x1f8] sm:$0xff] }
  0x50   : > { %2053 = vmatprep.mubr.msk.f32.mxu0 %vm314_vm1, %v206_v7  ;;  %2149 = vmatprep.mubr.msk.f32.mxu1 %vm314_vm1, %v270_v8  ;;  %v301_v6 = vld [vmem:[%s2278_s28 + $0x3f8] sm:$0xff]  ;;  %v2543_v7 = vld [vmem:[%s2941_s2] ss:$0 sm:$0xff] }
  0x53   : > { %2054 = vmatmul.mubr.msk.f32.gmra.mrb[32].mxu0 %vm314_vm1, %v207_v9  ;;  %2150 = vmatmul.mubr.msk.f32.gmra.mrb[32].mxu1 %vm314_vm1, %v271_v10 }
  0x54   : > { %2056 = vmatprep.mubr.msk.f32.mxu0 %vm314_vm1, %v208_v11  ;;  %2152 = vmatprep.mubr.msk.f32.mxu1 %vm314_vm1, %v272_v12 }
  0x57   : > { %2057 = vmatmul.mubr.msk.f32.gmra.mrb[34].mxu0 %vm314_vm1, %v209_v13  ;;  %2153 = vmatmul.mubr.msk.f32.gmra.mrb[34].mxu1 %vm314_vm1, %v273_v14 }
  0x58   : > { %2059 = vmatprep.mubr.msk.f32.mxu0 %vm314_vm1, %v210_v15  ;;  %2155 = vmatprep.mubr.msk.f32.mxu1 %vm314_vm1, %v274_v16 }
  0x5b   : > { %2060 = vmatmul.mubr.msk.f32.gmra.mrb[36].mxu0 %vm314_vm1, %v211_v17  ;;  %2156 = vmatmul.mubr.msk.f32.gmra.mrb[36].mxu1 %vm314_vm1, %v275_v18 }
  0x5c   : > { %2062 = vmatprep.mubr.msk.f32.mxu0 %vm314_vm1, %v212_v19  ;;  %2158 = vmatprep.mubr.msk.f32.mxu1 %vm314_vm1, %v276_v20 }
  0x5f   : > { %2063 = vmatmul.mubr.msk.f32.gmra.mrb[38].mxu0 %vm314_vm1, %v213_v21  ;;  %2159 = vmatmul.mubr.msk.f32.gmra.mrb[38].mxu1 %vm314_vm1, %v277_v22 }
  0x60   : > { %2065 = vmatprep.mubr.msk.f32.mxu0 %vm314_vm1, %v214_v23  ;;  %2161 = vmatprep.mubr.msk.f32.mxu1 %vm314_vm1, %v278_v24 }
  0x63   : > { %2066 = vmatmul.mubr.msk.f32.gmra.mrb[40].mxu0 %vm314_vm1, %v215_v25  ;;  %2162 = vmatmul.mubr.msk.f32.gmra.mrb[40].mxu1 %vm314_vm1, %v279_v26 }
  0x64   : > { %2068 = vmatprep.mubr.msk.f32.mxu0 %vm314_vm1, %v216_v27  ;;  %2164 = vmatprep.mubr.msk.f32.mxu1 %vm314_vm1, %v280_v28 }
  0x67   : > { %2069 = vmatmul.mubr.msk.f32.gmra.mrb[42].mxu0 %vm314_vm1, %v217_v29  ;;  %2165 = vmatmul.mubr.msk.f32.gmra.mrb[42].mxu1 %vm314_vm1, %v281_v30 }
  0x68   : > { %2071 = vmatprep.mubr.msk.f32.mxu0 %vm314_vm1, %v218_v31  ;;  %2167 = vmatprep.mubr.msk.f32.mxu1 %vm314_vm1, %v282_v32 }
  0x6b   : > { %2072 = vmatmul.mubr.msk.f32.gmra.mrb[44].mxu0 %vm314_vm1, %v219_v33  ;;  %2168 = vmatmul.mubr.msk.f32.gmra.mrb[44].mxu1 %vm314_vm1, %v283_v34 }
  0x6c   : > { %2074 = vmatprep.mubr.msk.f32.mxu0 %vm314_vm1, %v220_v35  ;;  %2170 = vmatprep.mubr.msk.f32.mxu1 %vm314_vm1, %v284_v36 }
  0x6f   : > { %2075 = vmatmul.mubr.msk.f32.gmra.mrb[46].mxu0 %vm314_vm1, %v221_v37  ;;  %2171 = vmatmul.mubr.msk.f32.gmra.mrb[46].mxu1 %vm314_vm1, %v285_v38 }
  0x70   : > { %2077 = vmatprep.mubr.msk.f32.mxu0 %vm314_vm1, %v222_v39  ;;  %2173 = vmatprep.mubr.msk.f32.mxu1 %vm314_vm1, %v286_v40 }
  0x73   : > { %2078 = vmatmul.mubr.msk.f32.gmra.mrb[48].mxu0 %vm314_vm1, %v223_v41  ;;  %2174 = vmatmul.mubr.msk.f32.gmra.mrb[48].mxu1 %vm314_vm1, %v287_v42 }
  0x74   : > { %2080 = vmatprep.mubr.msk.f32.mxu0 %vm314_vm1, %v224_v43  ;;  %2176 = vmatprep.mubr.msk.f32.mxu1 %vm314_vm1, %v288_v44 }
  0x77   : > { %2081 = vmatmul.mubr.msk.f32.gmra.mrb[50].mxu0 %vm314_vm1, %v225_v45  ;;  %2177 = vmatmul.mubr.msk.f32.gmra.mrb[50].mxu1 %vm314_vm1, %v289_v46 }
  0x78   : > { %2083 = vmatprep.mubr.msk.f32.mxu0 %vm314_vm1, %v226_v47  ;;  %2179 = vmatprep.mubr.msk.f32.mxu1 %vm314_vm1, %v290_v48 }
  0x7b   : > { %2084 = vmatmul.mubr.msk.f32.gmra.mrb[52].mxu0 %vm314_vm1, %v227_v49  ;;  %2180 = vmatmul.mubr.msk.f32.gmra.mrb[52].mxu1 %vm314_vm1, %v291_v50 }
  0x7c   : > { %2086 = vmatprep.mubr.msk.f32.mxu0 %vm314_vm1, %v228_v51  ;;  %2182 = vmatprep.mubr.msk.f32.mxu1 %vm314_vm1, %v292_v52 }
  0x7f   : > { %2087 = vmatmul.mubr.msk.f32.gmra.mrb[54].mxu0 %vm314_vm1, %v229_v53  ;;  %2183 = vmatmul.mubr.msk.f32.gmra.mrb[54].mxu1 %vm314_vm1, %v293_v54 }
  0x80   : > { %2089 = vmatprep.mubr.msk.f32.mxu0 %vm314_vm1, %v230_v55  ;;  %2185 = vmatprep.mubr.msk.f32.mxu1 %vm314_vm1, %v294_v56 }
  0x83   : > { %2090 = vmatmul.mubr.msk.f32.gmra.mrb[56].mxu0 %vm314_vm1, %v231_v57  ;;  %2186 = vmatmul.mubr.msk.f32.gmra.mrb[56].mxu1 %vm314_vm1, %v295_v58 }
  0x84   : > { %2092 = vmatprep.mubr.msk.f32.mxu0 %vm314_vm1, %v232_v59  ;;  %2188 = vmatprep.mubr.msk.f32.mxu1 %vm314_vm1, %v296_v60 }
  0x87   : > { %2093 = vmatmul.mubr.msk.f32.gmra.mrb[58].mxu0 %vm314_vm1, %v233_v61  ;;  %2189 = vmatmul.mubr.msk.f32.gmra.mrb[58].mxu1 %vm314_vm1, %v297_v62 }
  0x88   : > { %2095 = vmatprep.mubr.msk.f32.mxu0 %vm314_vm1, %v234_v63  ;;  %2191 = vmatprep.mubr.msk.f32.mxu1 %vm314_vm1, %v298_v0 }
  0x8b   : > { %2096 = vmatmul.mubr.msk.f32.gmra.mrb[60].mxu0 %vm314_vm1, %v235_v1  ;;  %2192 = vmatmul.mubr.msk.f32.gmra.mrb[60].mxu1 %vm314_vm1, %v299_v2 }
  0x8c   : > { %2098 = vmatprep.mubr.msk.f32.mxu0 %vm314_vm1, %v236_v3  ;;  %2194 = vmatprep.mubr.msk.f32.mxu1 %vm314_vm1, %v300_v4 }
  0x8f   : > { %2099 = vmatmul.mubr.msk.f32.gmra.mrb[62].mxu0 %vm314_vm1, %v237_v5  ;;  %2195 = vmatmul.mubr.msk.f32.gmra.mrb[62].mxu1 %vm314_vm1, %v301_v6 }
  0xe6   : > { %v2007_v8 = vpop.f32.mrb[0].mxu0  ;;  %v2103_v9 = vpop.f32.mrb[0].mxu1 }
  0xe7   : > { %v775_v10 = vadd.f32 %v2007_v8, %v2543_v7  ;;  %v1095_v11 = vadd.f32 %v2103_v9, %v2543_v7  ;;  %v769_v12 = vpop.f32.mrb[1].mxu0  ;;  %v1089_v13 = vpop.f32.mrb[1].mxu1 }
  0xe8   : > { %v770_v14 = vadd.f32 %v2543_v7, %v769_v12  ;;  %v1090_v15 = vadd.f32 %v2543_v7, %v1089_v13 }
  0xe9   : > { %v1409_v16 = vmax.f32 %v775_v10, 0.0  ;;  %v1473_v17 = vmax.f32 %v1095_v11, 0.0 }
  0xea   : > { %v1408_v18 = vmax.f32 %v770_v14, 0.0  ;;  %v1472_v19 = vmax.f32 %v1090_v15, 0.0  ;;  %v2010_v20 = vpop.f32.mrb[2].mxu0  ;;  %v2106_v21 = vpop.f32.mrb[2].mxu1 }
  0xeb   : > { %1538 = vst.msk [vmem:[%s2552_s6 + $0x8] sm:$0xff] %vm1536_vm2, %v1409_v16  ;;  %1602 = vst.msk [vmem:[%s2552_s6 + $0x208] sm:$0xff] %vm1536_vm2, %v1473_v17  ;;  %v785_v22 = vadd.f32 %v2010_v20, %v2543_v7  ;;  %v1105_v23 = vadd.f32 %v2106_v21, %v2543_v7  ;;  %v779_v24 = vpop.f32.mrb[3].mxu0  ;;  %v1099_v25 = vpop.f32.mrb[3].mxu1 }
  0xec   : > { %1537 = vst.msk [vmem:[%s2552_s6] sm:$0xff] %vm1536_vm2, %v1408_v18  ;;  %1601 = vst.msk [vmem:[%s2552_s6 + $0x200] sm:$0xff] %vm1536_vm2, %v1472_v19  ;;  %v780_v26 = vadd.f32 %v2543_v7, %v779_v24  ;;  %v1100_v27 = vadd.f32 %v2543_v7, %v1099_v25 }
  0xed   : > { %v1411_v28 = vmax.f32 %v785_v22, 0.0  ;;  %v1475_v29 = vmax.f32 %v1105_v23, 0.0 }
  0xee   : > { %v1410_v30 = vmax.f32 %v780_v26, 0.0  ;;  %v1474_v31 = vmax.f32 %v1100_v27, 0.0  ;;  %v2013_v32 = vpop.f32.mrb[4].mxu0  ;;  %v2109_v33 = vpop.f32.mrb[4].mxu1 }
  0xef   : > { %1540 = vst.msk [vmem:[%s2552_s6 + $0x18] sm:$0xff] %vm1536_vm2, %v1411_v28  ;;  %1604 = vst.msk [vmem:[%s2552_s6 + $0x218] sm:$0xff] %vm1536_vm2, %v1475_v29  ;;  %v795_v34 = vadd.f32 %v2013_v32, %v2543_v7  ;;  %v1115_v35 = vadd.f32 %v2109_v33, %v2543_v7  ;;  %v789_v36 = vpop.f32.mrb[5].mxu0  ;;  %v1109_v37 = vpop.f32.mrb[5].mxu1 }
  0xf0   : > { %1539 = vst.msk [vmem:[%s2552_s6 + $0x10] sm:$0xff] %vm1536_vm2, %v1410_v30  ;;  %1603 = vst.msk [vmem:[%s2552_s6 + $0x210] sm:$0xff] %vm1536_vm2, %v1474_v31  ;;  %v790_v38 = vadd.f32 %v2543_v7, %v789_v36  ;;  %v1110_v39 = vadd.f32 %v2543_v7, %v1109_v37 }
  0xf1   : > { %v1413_v40 = vmax.f32 %v795_v34, 0.0  ;;  %v1477_v41 = vmax.f32 %v1115_v35, 0.0 }
  0xf2   : > { %v1412_v42 = vmax.f32 %v790_v38, 0.0  ;;  %v1476_v43 = vmax.f32 %v1110_v39, 0.0  ;;  %v2016_v44 = vpop.f32.mrb[6].mxu0  ;;  %v2112_v45 = vpop.f32.mrb[6].mxu1 }
  0xf3   : > { %1542 = vst.msk [vmem:[%s2552_s6 + $0x28] sm:$0xff] %vm1536_vm2, %v1413_v40  ;;  %1606 = vst.msk [vmem:[%s2552_s6 + $0x228] sm:$0xff] %vm1536_vm2, %v1477_v41  ;;  %v805_v46 = vadd.f32 %v2016_v44, %v2543_v7  ;;  %v1125_v47 = vadd.f32 %v2112_v45, %v2543_v7  ;;  %v799_v48 = vpop.f32.mrb[7].mxu0  ;;  %v1119_v49 = vpop.f32.mrb[7].mxu1 }
  0xf4   : > { %1541 = vst.msk [vmem:[%s2552_s6 + $0x20] sm:$0xff] %vm1536_vm2, %v1412_v42  ;;  %1605 = vst.msk [vmem:[%s2552_s6 + $0x220] sm:$0xff] %vm1536_vm2, %v1476_v43  ;;  %v800_v50 = vadd.f32 %v2543_v7, %v799_v48  ;;  %v1120_v51 = vadd.f32 %v2543_v7, %v1119_v49 }
  0xf5   : > { %v1415_v52 = vmax.f32 %v805_v46, 0.0  ;;  %v1479_v53 = vmax.f32 %v1125_v47, 0.0 }
  0xf6   : > { %v1414_v54 = vmax.f32 %v800_v50, 0.0  ;;  %v1478_v55 = vmax.f32 %v1120_v51, 0.0  ;;  %v2019_v56 = vpop.f32.mrb[8].mxu0  ;;  %v2115_v57 = vpop.f32.mrb[8].mxu1 }
  0xf7   : > { %1544 = vst.msk [vmem:[%s2552_s6 + $0x38] sm:$0xff] %vm1536_vm2, %v1415_v52  ;;  %1608 = vst.msk [vmem:[%s2552_s6 + $0x238] sm:$0xff] %vm1536_vm2, %v1479_v53  ;;  %v815_v58 = vadd.f32 %v2019_v56, %v2543_v7  ;;  %v1135_v59 = vadd.f32 %v2115_v57, %v2543_v7  ;;  %v809_v60 = vpop.f32.mrb[9].mxu0  ;;  %v1129_v61 = vpop.f32.mrb[9].mxu1 }
  0xf8   : > { %1543 = vst.msk [vmem:[%s2552_s6 + $0x30] sm:$0xff] %vm1536_vm2, %v1414_v54  ;;  %1607 = vst.msk [vmem:[%s2552_s6 + $0x230] sm:$0xff] %vm1536_vm2, %v1478_v55  ;;  %v810_v62 = vadd.f32 %v2543_v7, %v809_v60  ;;  %v1130_v63 = vadd.f32 %v2543_v7, %v1129_v61 }
  0xf9   : > { %v1417_v0 = vmax.f32 %v815_v58, 0.0  ;;  %v1481_v1 = vmax.f32 %v1135_v59, 0.0 }
  0xfa   : > { %v1416_v2 = vmax.f32 %v810_v62, 0.0  ;;  %v1480_v3 = vmax.f32 %v1130_v63, 0.0  ;;  %v2022_v4 = vpop.f32.mrb[10].mxu0  ;;  %v2118_v5 = vpop.f32.mrb[10].mxu1 }
  0xfb   : > { %1546 = vst.msk [vmem:[%s2552_s6 + $0x48] sm:$0xff] %vm1536_vm2, %v1417_v0  ;;  %1610 = vst.msk [vmem:[%s2552_s6 + $0x248] sm:$0xff] %vm1536_vm2, %v1481_v1  ;;  %v825_v6 = vadd.f32 %v2022_v4, %v2543_v7  ;;  %v1145_v8 = vadd.f32 %v2118_v5, %v2543_v7  ;;  %v819_v9 = vpop.f32.mrb[11].mxu0  ;;  %v1139_v10 = vpop.f32.mrb[11].mxu1 }
  0xfc   : > { %1545 = vst.msk [vmem:[%s2552_s6 + $0x40] sm:$0xff] %vm1536_vm2, %v1416_v2  ;;  %1609 = vst.msk [vmem:[%s2552_s6 + $0x240] sm:$0xff] %vm1536_vm2, %v1480_v3  ;;  %v820_v11 = vadd.f32 %v2543_v7, %v819_v9  ;;  %v1140_v12 = vadd.f32 %v2543_v7, %v1139_v10 }
  0xfd   : > { %v1419_v13 = vmax.f32 %v825_v6, 0.0  ;;  %v1483_v14 = vmax.f32 %v1145_v8, 0.0 }
  0xfe   : > { %v1418_v15 = vmax.f32 %v820_v11, 0.0  ;;  %v1482_v16 = vmax.f32 %v1140_v12, 0.0  ;;  %v2025_v17 = vpop.f32.mrb[12].mxu0  ;;  %v2121_v18 = vpop.f32.mrb[12].mxu1 }
  0xff   : > { %1548 = vst.msk [vmem:[%s2552_s6 + $0x58] sm:$0xff] %vm1536_vm2, %v1419_v13  ;;  %1612 = vst.msk [vmem:[%s2552_s6 + $0x258] sm:$0xff] %vm1536_vm2, %v1483_v14  ;;  %v835_v19 = vadd.f32 %v2025_v17, %v2543_v7  ;;  %v1155_v20 = vadd.f32 %v2121_v18, %v2543_v7  ;;  %v829_v21 = vpop.f32.mrb[13].mxu0  ;;  %v1149_v22 = vpop.f32.mrb[13].mxu1 }
 0x100   : > { %1547 = vst.msk [vmem:[%s2552_s6 + $0x50] sm:$0xff] %vm1536_vm2, %v1418_v15  ;;  %1611 = vst.msk [vmem:[%s2552_s6 + $0x250] sm:$0xff] %vm1536_vm2, %v1482_v16  ;;  %v830_v23 = vadd.f32 %v2543_v7, %v829_v21  ;;  %v1150_v24 = vadd.f32 %v2543_v7, %v1149_v22 }
 0x101   : > { %v1421_v25 = vmax.f32 %v835_v19, 0.0  ;;  %v1485_v26 = vmax.f32 %v1155_v20, 0.0 }
 0x102   : > { %v1420_v27 = vmax.f32 %v830_v23, 0.0  ;;  %v1484_v28 = vmax.f32 %v1150_v24, 0.0  ;;  %v2028_v29 = vpop.f32.mrb[14].mxu0  ;;  %v2124_v30 = vpop.f32.mrb[14].mxu1 }
 0x103   : > { %1550 = vst.msk [vmem:[%s2552_s6 + $0x68] sm:$0xff] %vm1536_vm2, %v1421_v25  ;;  %1614 = vst.msk [vmem:[%s2552_s6 + $0x268] sm:$0xff] %vm1536_vm2, %v1485_v26  ;;  %v845_v31 = vadd.f32 %v2028_v29, %v2543_v7  ;;  %v1165_v32 = vadd.f32 %v2124_v30, %v2543_v7  ;;  %v839_v33 = vpop.f32.mrb[15].mxu0  ;;  %v1159_v34 = vpop.f32.mrb[15].mxu1 }
 0x104   : > { %1549 = vst.msk [vmem:[%s2552_s6 + $0x60] sm:$0xff] %vm1536_vm2, %v1420_v27  ;;  %1613 = vst.msk [vmem:[%s2552_s6 + $0x260] sm:$0xff] %vm1536_vm2, %v1484_v28  ;;  %v840_v35 = vadd.f32 %v2543_v7, %v839_v33  ;;  %v1160_v36 = vadd.f32 %v2543_v7, %v1159_v34 }
 0x105   : > { %v1423_v37 = vmax.f32 %v845_v31, 0.0  ;;  %v1487_v38 = vmax.f32 %v1165_v32, 0.0 }
 0x106   : > { %v1422_v39 = vmax.f32 %v840_v35, 0.0  ;;  %v1486_v40 = vmax.f32 %v1160_v36, 0.0  ;;  %v2031_v41 = vpop.f32.mrb[16].mxu0  ;;  %v2127_v42 = vpop.f32.mrb[16].mxu1 }
 0x107   : > { %1552 = vst.msk [vmem:[%s2552_s6 + $0x78] sm:$0xff] %vm1536_vm2, %v1423_v37  ;;  %1616 = vst.msk [vmem:[%s2552_s6 + $0x278] sm:$0xff] %vm1536_vm2, %v1487_v38  ;;  %v855_v43 = vadd.f32 %v2031_v41, %v2543_v7  ;;  %v1175_v44 = vadd.f32 %v2127_v42, %v2543_v7  ;;  %v849_v45 = vpop.f32.mrb[17].mxu0  ;;  %v1169_v46 = vpop.f32.mrb[17].mxu1 }
 0x108   : > { %1551 = vst.msk [vmem:[%s2552_s6 + $0x70] sm:$0xff] %vm1536_vm2, %v1422_v39  ;;  %1615 = vst.msk [vmem:[%s2552_s6 + $0x270] sm:$0xff] %vm1536_vm2, %v1486_v40  ;;  %v850_v47 = vadd.f32 %v2543_v7, %v849_v45  ;;  %v1170_v48 = vadd.f32 %v2543_v7, %v1169_v46 }
 0x109   : > { %v1425_v49 = vmax.f32 %v855_v43, 0.0  ;;  %v1489_v50 = vmax.f32 %v1175_v44, 0.0 }
 0x10a   : > { %v1424_v51 = vmax.f32 %v850_v47, 0.0  ;;  %v1488_v52 = vmax.f32 %v1170_v48, 0.0  ;;  %v2034_v53 = vpop.f32.mrb[18].mxu0  ;;  %v2130_v54 = vpop.f32.mrb[18].mxu1 }
 0x10b   : > { %1554 = vst.msk [vmem:[%s2552_s6 + $0x88] sm:$0xff] %vm1536_vm2, %v1425_v49  ;;  %1618 = vst.msk [vmem:[%s2552_s6 + $0x288] sm:$0xff] %vm1536_vm2, %v1489_v50  ;;  %v865_v55 = vadd.f32 %v2034_v53, %v2543_v7  ;;  %v1185_v56 = vadd.f32 %v2130_v54, %v2543_v7  ;;  %v859_v57 = vpop.f32.mrb[19].mxu0  ;;  %v1179_v58 = vpop.f32.mrb[19].mxu1 }
 0x10c   : > { %1553 = vst.msk [vmem:[%s2552_s6 + $0x80] sm:$0xff] %vm1536_vm2, %v1424_v51  ;;  %1617 = vst.msk [vmem:[%s2552_s6 + $0x280] sm:$0xff] %vm1536_vm2, %v1488_v52  ;;  %v860_v59 = vadd.f32 %v2543_v7, %v859_v57  ;;  %v1180_v60 = vadd.f32 %v2543_v7, %v1179_v58 }
 0x10d   : > { %v1427_v61 = vmax.f32 %v865_v55, 0.0  ;;  %v1491_v62 = vmax.f32 %v1185_v56, 0.0 }
 0x10e   : > { %v1426_v63 = vmax.f32 %v860_v59, 0.0  ;;  %v1490_v0 = vmax.f32 %v1180_v60, 0.0  ;;  %v2037_v1 = vpop.f32.mrb[20].mxu0  ;;  %v2133_v2 = vpop.f32.mrb[20].mxu1 }
 0x10f   : > { %1556 = vst.msk [vmem:[%s2552_s6 + $0x98] sm:$0xff] %vm1536_vm2, %v1427_v61  ;;  %1620 = vst.msk [vmem:[%s2552_s6 + $0x298] sm:$0xff] %vm1536_vm2, %v1491_v62  ;;  %v875_v3 = vadd.f32 %v2037_v1, %v2543_v7  ;;  %v1195_v4 = vadd.f32 %v2133_v2, %v2543_v7  ;;  %v869_v5 = vpop.f32.mrb[21].mxu0  ;;  %v1189_v6 = vpop.f32.mrb[21].mxu1 }
 0x110   : > { %1555 = vst.msk [vmem:[%s2552_s6 + $0x90] sm:$0xff] %vm1536_vm2, %v1426_v63  ;;  %1619 = vst.msk [vmem:[%s2552_s6 + $0x290] sm:$0xff] %vm1536_vm2, %v1490_v0  ;;  %v870_v8 = vadd.f32 %v2543_v7, %v869_v5  ;;  %v1190_v9 = vadd.f32 %v2543_v7, %v1189_v6 }
 0x111   : > { %v1429_v10 = vmax.f32 %v875_v3, 0.0  ;;  %v1493_v11 = vmax.f32 %v1195_v4, 0.0 }
 0x112   : > { %v1428_v12 = vmax.f32 %v870_v8, 0.0  ;;  %v1492_v13 = vmax.f32 %v1190_v9, 0.0  ;;  %v2040_v14 = vpop.f32.mrb[22].mxu0  ;;  %v2136_v15 = vpop.f32.mrb[22].mxu1 }
 0x113   : > { %1558 = vst.msk [vmem:[%s2552_s6 + $0xa8] sm:$0xff] %vm1536_vm2, %v1429_v10  ;;  %1622 = vst.msk [vmem:[%s2552_s6 + $0x2a8] sm:$0xff] %vm1536_vm2, %v1493_v11  ;;  %v885_v16 = vadd.f32 %v2040_v14, %v2543_v7  ;;  %v1205_v17 = vadd.f32 %v2136_v15, %v2543_v7  ;;  %v879_v18 = vpop.f32.mrb[23].mxu0  ;;  %v1199_v19 = vpop.f32.mrb[23].mxu1 }
 0x114   : > { %1557 = vst.msk [vmem:[%s2552_s6 + $0xa0] sm:$0xff] %vm1536_vm2, %v1428_v12  ;;  %1621 = vst.msk [vmem:[%s2552_s6 + $0x2a0] sm:$0xff] %vm1536_vm2, %v1492_v13  ;;  %v880_v20 = vadd.f32 %v2543_v7, %v879_v18  ;;  %v1200_v21 = vadd.f32 %v2543_v7, %v1199_v19 }
 0x115   : > { %v1431_v22 = vmax.f32 %v885_v16, 0.0  ;;  %v1495_v23 = vmax.f32 %v1205_v17, 0.0 }
 0x116   : > { %v1430_v24 = vmax.f32 %v880_v20, 0.0  ;;  %v1494_v25 = vmax.f32 %v1200_v21, 0.0  ;;  %v2043_v26 = vpop.f32.mrb[24].mxu0  ;;  %v2139_v27 = vpop.f32.mrb[24].mxu1 }
 0x117   : > { %1560 = vst.msk [vmem:[%s2552_s6 + $0xb8] sm:$0xff] %vm1536_vm2, %v1431_v22  ;;  %1624 = vst.msk [vmem:[%s2552_s6 + $0x2b8] sm:$0xff] %vm1536_vm2, %v1495_v23  ;;  %v895_v28 = vadd.f32 %v2043_v26, %v2543_v7  ;;  %v1215_v29 = vadd.f32 %v2139_v27, %v2543_v7  ;;  %v889_v30 = vpop.f32.mrb[25].mxu0  ;;  %v1209_v31 = vpop.f32.mrb[25].mxu1 }
 0x118   : > { %1559 = vst.msk [vmem:[%s2552_s6 + $0xb0] sm:$0xff] %vm1536_vm2, %v1430_v24  ;;  %1623 = vst.msk [vmem:[%s2552_s6 + $0x2b0] sm:$0xff] %vm1536_vm2, %v1494_v25  ;;  %v890_v32 = vadd.f32 %v2543_v7, %v889_v30  ;;  %v1210_v33 = vadd.f32 %v2543_v7, %v1209_v31 }
 0x119   : > { %v1433_v34 = vmax.f32 %v895_v28, 0.0  ;;  %v1497_v35 = vmax.f32 %v1215_v29, 0.0 }
 0x11a   : > { %v1432_v36 = vmax.f32 %v890_v32, 0.0  ;;  %v1496_v37 = vmax.f32 %v1210_v33, 0.0  ;;  %v2046_v38 = vpop.f32.mrb[26].mxu0  ;;  %v2142_v39 = vpop.f32.mrb[26].mxu1 }
 0x11b   : > { %1562 = vst.msk [vmem:[%s2552_s6 + $0xc8] sm:$0xff] %vm1536_vm2, %v1433_v34  ;;  %1626 = vst.msk [vmem:[%s2552_s6 + $0x2c8] sm:$0xff] %vm1536_vm2, %v1497_v35  ;;  %v905_v40 = vadd.f32 %v2046_v38, %v2543_v7  ;;  %v1225_v41 = vadd.f32 %v2142_v39, %v2543_v7  ;;  %v899_v42 = vpop.f32.mrb[27].mxu0  ;;  %v1219_v43 = vpop.f32.mrb[27].mxu1 }
 0x11c   : > { %1561 = vst.msk [vmem:[%s2552_s6 + $0xc0] sm:$0xff] %vm1536_vm2, %v1432_v36  ;;  %1625 = vst.msk [vmem:[%s2552_s6 + $0x2c0] sm:$0xff] %vm1536_vm2, %v1496_v37  ;;  %v900_v44 = vadd.f32 %v2543_v7, %v899_v42  ;;  %v1220_v45 = vadd.f32 %v2543_v7, %v1219_v43 }
 0x11d   : > { %v1435_v46 = vmax.f32 %v905_v40, 0.0  ;;  %v1499_v47 = vmax.f32 %v1225_v41, 0.0 }
 0x11e   : > { %v1434_v48 = vmax.f32 %v900_v44, 0.0  ;;  %v1498_v49 = vmax.f32 %v1220_v45, 0.0  ;;  %v2049_v50 = vpop.f32.mrb[28].mxu0  ;;  %v2145_v51 = vpop.f32.mrb[28].mxu1 }
 0x11f   : > { %1564 = vst.msk [vmem:[%s2552_s6 + $0xd8] sm:$0xff] %vm1536_vm2, %v1435_v46  ;;  %1628 = vst.msk [vmem:[%s2552_s6 + $0x2d8] sm:$0xff] %vm1536_vm2, %v1499_v47  ;;  %v915_v52 = vadd.f32 %v2049_v50, %v2543_v7  ;;  %v1235_v53 = vadd.f32 %v2145_v51, %v2543_v7  ;;  %v909_v54 = vpop.f32.mrb[29].mxu0  ;;  %v1229_v55 = vpop.f32.mrb[29].mxu1 }
 0x120   : > { %1563 = vst.msk [vmem:[%s2552_s6 + $0xd0] sm:$0xff] %vm1536_vm2, %v1434_v48  ;;  %1627 = vst.msk [vmem:[%s2552_s6 + $0x2d0] sm:$0xff] %vm1536_vm2, %v1498_v49  ;;  %v910_v56 = vadd.f32 %v2543_v7, %v909_v54  ;;  %v1230_v57 = vadd.f32 %v2543_v7, %v1229_v55 }
 0x121   : > { %v1437_v58 = vmax.f32 %v915_v52, 0.0  ;;  %v1501_v59 = vmax.f32 %v1235_v53, 0.0 }
 0x122   : > { %v1436_v60 = vmax.f32 %v910_v56, 0.0  ;;  %v1500_v61 = vmax.f32 %v1230_v57, 0.0  ;;  %v2052_v62 = vpop.f32.mrb[30].mxu0  ;;  %v2148_v63 = vpop.f32.mrb[30].mxu1 }
 0x123   : > { %1566 = vst.msk [vmem:[%s2552_s6 + $0xe8] sm:$0xff] %vm1536_vm2, %v1437_v58  ;;  %1630 = vst.msk [vmem:[%s2552_s6 + $0x2e8] sm:$0xff] %vm1536_vm2, %v1501_v59  ;;  %v925_v0 = vadd.f32 %v2052_v62, %v2543_v7  ;;  %v1245_v1 = vadd.f32 %v2148_v63, %v2543_v7  ;;  %v919_v2 = vpop.f32.mrb[31].mxu0  ;;  %v1239_v3 = vpop.f32.mrb[31].mxu1 }
 0x124   : > { %1565 = vst.msk [vmem:[%s2552_s6 + $0xe0] sm:$0xff] %vm1536_vm2, %v1436_v60  ;;  %1629 = vst.msk [vmem:[%s2552_s6 + $0x2e0] sm:$0xff] %vm1536_vm2, %v1500_v61  ;;  %v920_v4 = vadd.f32 %v2543_v7, %v919_v2  ;;  %v1240_v5 = vadd.f32 %v2543_v7, %v1239_v3 }
 0x125   : > { %v1439_v6 = vmax.f32 %v925_v0, 0.0  ;;  %v1503_v8 = vmax.f32 %v1245_v1, 0.0 }
 0x126   : > { %v1438_v9 = vmax.f32 %v920_v4, 0.0  ;;  %v1502_v10 = vmax.f32 %v1240_v5, 0.0  ;;  %v2055_v11 = vpop.f32.mrb[32].mxu0  ;;  %v2151_v12 = vpop.f32.mrb[32].mxu1 }
 0x127   : > { %1568 = vst.msk [vmem:[%s2552_s6 + $0xf8] sm:$0xff] %vm1536_vm2, %v1439_v6  ;;  %1632 = vst.msk [vmem:[%s2552_s6 + $0x2f8] sm:$0xff] %vm1536_vm2, %v1503_v8  ;;  %v935_v13 = vadd.f32 %v2055_v11, %v2543_v7  ;;  %v1255_v14 = vadd.f32 %v2151_v12, %v2543_v7  ;;  %v929_v15 = vpop.f32.mrb[33].mxu0  ;;  %v1249_v16 = vpop.f32.mrb[33].mxu1 }
 0x128   : > { %1567 = vst.msk [vmem:[%s2552_s6 + $0xf0] sm:$0xff] %vm1536_vm2, %v1438_v9  ;;  %1631 = vst.msk [vmem:[%s2552_s6 + $0x2f0] sm:$0xff] %vm1536_vm2, %v1502_v10  ;;  %v930_v17 = vadd.f32 %v2543_v7, %v929_v15  ;;  %v1250_v18 = vadd.f32 %v2543_v7, %v1249_v16 }
 0x129   : > { %v1441_v19 = vmax.f32 %v935_v13, 0.0  ;;  %v1505_v20 = vmax.f32 %v1255_v14, 0.0 }
 0x12a   : > { %v1440_v21 = vmax.f32 %v930_v17, 0.0  ;;  %v1504_v22 = vmax.f32 %v1250_v18, 0.0  ;;  %v2058_v23 = vpop.f32.mrb[34].mxu0  ;;  %v2154_v24 = vpop.f32.mrb[34].mxu1 }
 0x12b   : > { %1570 = vst.msk [vmem:[%s2552_s6 + $0x108] sm:$0xff] %vm1536_vm2, %v1441_v19  ;;  %1634 = vst.msk [vmem:[%s2552_s6 + $0x308] sm:$0xff] %vm1536_vm2, %v1505_v20  ;;  %v945_v25 = vadd.f32 %v2058_v23, %v2543_v7  ;;  %v1265_v26 = vadd.f32 %v2154_v24, %v2543_v7  ;;  %v939_v27 = vpop.f32.mrb[35].mxu0  ;;  %v1259_v28 = vpop.f32.mrb[35].mxu1 }
 0x12c   : > { %1569 = vst.msk [vmem:[%s2552_s6 + $0x100] sm:$0xff] %vm1536_vm2, %v1440_v21  ;;  %1633 = vst.msk [vmem:[%s2552_s6 + $0x300] sm:$0xff] %vm1536_vm2, %v1504_v22  ;;  %v940_v29 = vadd.f32 %v2543_v7, %v939_v27  ;;  %v1260_v30 = vadd.f32 %v2543_v7, %v1259_v28 }
 0x12d   : > { %v1443_v31 = vmax.f32 %v945_v25, 0.0  ;;  %v1507_v32 = vmax.f32 %v1265_v26, 0.0 }
 0x12e   : > { %v1442_v33 = vmax.f32 %v940_v29, 0.0  ;;  %v1506_v34 = vmax.f32 %v1260_v30, 0.0  ;;  %v2061_v35 = vpop.f32.mrb[36].mxu0  ;;  %v2157_v36 = vpop.f32.mrb[36].mxu1 }
 0x12f   : > { %1572 = vst.msk [vmem:[%s2552_s6 + $0x118] sm:$0xff] %vm1536_vm2, %v1443_v31  ;;  %1636 = vst.msk [vmem:[%s2552_s6 + $0x318] sm:$0xff] %vm1536_vm2, %v1507_v32  ;;  %v955_v37 = vadd.f32 %v2061_v35, %v2543_v7  ;;  %v1275_v38 = vadd.f32 %v2157_v36, %v2543_v7  ;;  %v949_v39 = vpop.f32.mrb[37].mxu0  ;;  %v1269_v40 = vpop.f32.mrb[37].mxu1 }
 0x130   : > { %1571 = vst.msk [vmem:[%s2552_s6 + $0x110] sm:$0xff] %vm1536_vm2, %v1442_v33  ;;  %1635 = vst.msk [vmem:[%s2552_s6 + $0x310] sm:$0xff] %vm1536_vm2, %v1506_v34  ;;  %v950_v41 = vadd.f32 %v2543_v7, %v949_v39  ;;  %v1270_v42 = vadd.f32 %v2543_v7, %v1269_v40 }
 0x131   : > { %v1445_v43 = vmax.f32 %v955_v37, 0.0  ;;  %v1509_v44 = vmax.f32 %v1275_v38, 0.0 }
 0x132   : > { %v1444_v45 = vmax.f32 %v950_v41, 0.0  ;;  %v1508_v46 = vmax.f32 %v1270_v42, 0.0  ;;  %v2064_v47 = vpop.f32.mrb[38].mxu0  ;;  %v2160_v48 = vpop.f32.mrb[38].mxu1 }
 0x133   : > { %1574 = vst.msk [vmem:[%s2552_s6 + $0x128] sm:$0xff] %vm1536_vm2, %v1445_v43  ;;  %1638 = vst.msk [vmem:[%s2552_s6 + $0x328] sm:$0xff] %vm1536_vm2, %v1509_v44  ;;  %v965_v49 = vadd.f32 %v2064_v47, %v2543_v7  ;;  %v1285_v50 = vadd.f32 %v2160_v48, %v2543_v7  ;;  %v959_v51 = vpop.f32.mrb[39].mxu0  ;;  %v1279_v52 = vpop.f32.mrb[39].mxu1 }
 0x134   : > { %1573 = vst.msk [vmem:[%s2552_s6 + $0x120] sm:$0xff] %vm1536_vm2, %v1444_v45  ;;  %1637 = vst.msk [vmem:[%s2552_s6 + $0x320] sm:$0xff] %vm1536_vm2, %v1508_v46  ;;  %v960_v53 = vadd.f32 %v2543_v7, %v959_v51  ;;  %v1280_v54 = vadd.f32 %v2543_v7, %v1279_v52 }
 0x135   : > { %v1447_v55 = vmax.f32 %v965_v49, 0.0  ;;  %v1511_v56 = vmax.f32 %v1285_v50, 0.0 }
 0x136   : > { %v1446_v57 = vmax.f32 %v960_v53, 0.0  ;;  %v1510_v58 = vmax.f32 %v1280_v54, 0.0  ;;  %v2067_v59 = vpop.f32.mrb[40].mxu0  ;;  %v2163_v60 = vpop.f32.mrb[40].mxu1 }
 0x137   : > { %1576 = vst.msk [vmem:[%s2552_s6 + $0x138] sm:$0xff] %vm1536_vm2, %v1447_v55  ;;  %1640 = vst.msk [vmem:[%s2552_s6 + $0x338] sm:$0xff] %vm1536_vm2, %v1511_v56  ;;  %v975_v61 = vadd.f32 %v2067_v59, %v2543_v7  ;;  %v1295_v62 = vadd.f32 %v2163_v60, %v2543_v7  ;;  %v969_v63 = vpop.f32.mrb[41].mxu0  ;;  %v1289_v0 = vpop.f32.mrb[41].mxu1 }
 0x138   : > { %1575 = vst.msk [vmem:[%s2552_s6 + $0x130] sm:$0xff] %vm1536_vm2, %v1446_v57  ;;  %1639 = vst.msk [vmem:[%s2552_s6 + $0x330] sm:$0xff] %vm1536_vm2, %v1510_v58  ;;  %v970_v1 = vadd.f32 %v2543_v7, %v969_v63  ;;  %v1290_v2 = vadd.f32 %v2543_v7, %v1289_v0 }
 0x139   : > { %v1449_v3 = vmax.f32 %v975_v61, 0.0  ;;  %v1513_v4 = vmax.f32 %v1295_v62, 0.0 }
 0x13a   : > { %v1448_v5 = vmax.f32 %v970_v1, 0.0  ;;  %v1512_v6 = vmax.f32 %v1290_v2, 0.0  ;;  %v2070_v8 = vpop.f32.mrb[42].mxu0  ;;  %v2166_v9 = vpop.f32.mrb[42].mxu1 }
 0x13b   : > { %1578 = vst.msk [vmem:[%s2552_s6 + $0x148] sm:$0xff] %vm1536_vm2, %v1449_v3  ;;  %1642 = vst.msk [vmem:[%s2552_s6 + $0x348] sm:$0xff] %vm1536_vm2, %v1513_v4  ;;  %v985_v10 = vadd.f32 %v2070_v8, %v2543_v7  ;;  %v1305_v11 = vadd.f32 %v2166_v9, %v2543_v7  ;;  %v979_v12 = vpop.f32.mrb[43].mxu0  ;;  %v1299_v13 = vpop.f32.mrb[43].mxu1 }
 0x13c   : > { %1577 = vst.msk [vmem:[%s2552_s6 + $0x140] sm:$0xff] %vm1536_vm2, %v1448_v5  ;;  %1641 = vst.msk [vmem:[%s2552_s6 + $0x340] sm:$0xff] %vm1536_vm2, %v1512_v6  ;;  %v980_v14 = vadd.f32 %v2543_v7, %v979_v12  ;;  %v1300_v15 = vadd.f32 %v2543_v7, %v1299_v13 }
 0x13d   : > { %v1451_v16 = vmax.f32 %v985_v10, 0.0  ;;  %v1515_v17 = vmax.f32 %v1305_v11, 0.0 }
 0x13e   : > { %v1450_v18 = vmax.f32 %v980_v14, 0.0  ;;  %v1514_v19 = vmax.f32 %v1300_v15, 0.0  ;;  %v2073_v20 = vpop.f32.mrb[44].mxu0  ;;  %v2169_v21 = vpop.f32.mrb[44].mxu1 }
 0x13f   : > { %1580 = vst.msk [vmem:[%s2552_s6 + $0x158] sm:$0xff] %vm1536_vm2, %v1451_v16  ;;  %1644 = vst.msk [vmem:[%s2552_s6 + $0x358] sm:$0xff] %vm1536_vm2, %v1515_v17  ;;  %v995_v22 = vadd.f32 %v2073_v20, %v2543_v7  ;;  %v1315_v23 = vadd.f32 %v2169_v21, %v2543_v7  ;;  %v989_v24 = vpop.f32.mrb[45].mxu0  ;;  %v1309_v25 = vpop.f32.mrb[45].mxu1 }
 0x140   : > { %1579 = vst.msk [vmem:[%s2552_s6 + $0x150] sm:$0xff] %vm1536_vm2, %v1450_v18  ;;  %1643 = vst.msk [vmem:[%s2552_s6 + $0x350] sm:$0xff] %vm1536_vm2, %v1514_v19  ;;  %v990_v26 = vadd.f32 %v2543_v7, %v989_v24  ;;  %v1310_v27 = vadd.f32 %v2543_v7, %v1309_v25 }
 0x141   : > { %v1453_v28 = vmax.f32 %v995_v22, 0.0  ;;  %v1517_v29 = vmax.f32 %v1315_v23, 0.0 }
 0x142   : > { %v1452_v30 = vmax.f32 %v990_v26, 0.0  ;;  %v1516_v31 = vmax.f32 %v1310_v27, 0.0  ;;  %v2076_v32 = vpop.f32.mrb[46].mxu0  ;;  %v2172_v33 = vpop.f32.mrb[46].mxu1 }
 0x143   : > { %1582 = vst.msk [vmem:[%s2552_s6 + $0x168] sm:$0xff] %vm1536_vm2, %v1453_v28  ;;  %1646 = vst.msk [vmem:[%s2552_s6 + $0x368] sm:$0xff] %vm1536_vm2, %v1517_v29  ;;  %v1005_v34 = vadd.f32 %v2076_v32, %v2543_v7  ;;  %v1325_v35 = vadd.f32 %v2172_v33, %v2543_v7  ;;  %v999_v36 = vpop.f32.mrb[47].mxu0  ;;  %v1319_v37 = vpop.f32.mrb[47].mxu1 }
 0x144   : > { %1581 = vst.msk [vmem:[%s2552_s6 + $0x160] sm:$0xff] %vm1536_vm2, %v1452_v30  ;;  %1645 = vst.msk [vmem:[%s2552_s6 + $0x360] sm:$0xff] %vm1536_vm2, %v1516_v31  ;;  %v1000_v38 = vadd.f32 %v2543_v7, %v999_v36  ;;  %v1320_v39 = vadd.f32 %v2543_v7, %v1319_v37 }
 0x145   : > { %v1455_v40 = vmax.f32 %v1005_v34, 0.0  ;;  %v1519_v41 = vmax.f32 %v1325_v35, 0.0 }
 0x146   : > { %v1454_v42 = vmax.f32 %v1000_v38, 0.0  ;;  %v1518_v43 = vmax.f32 %v1320_v39, 0.0  ;;  %v2079_v44 = vpop.f32.mrb[48].mxu0  ;;  %v2175_v45 = vpop.f32.mrb[48].mxu1 }
 0x147   : > { %1584 = vst.msk [vmem:[%s2552_s6 + $0x178] sm:$0xff] %vm1536_vm2, %v1455_v40  ;;  %1648 = vst.msk [vmem:[%s2552_s6 + $0x378] sm:$0xff] %vm1536_vm2, %v1519_v41  ;;  %v1015_v46 = vadd.f32 %v2079_v44, %v2543_v7  ;;  %v1335_v47 = vadd.f32 %v2175_v45, %v2543_v7  ;;  %v1009_v48 = vpop.f32.mrb[49].mxu0  ;;  %v1329_v49 = vpop.f32.mrb[49].mxu1 }
 0x148   : > { %1583 = vst.msk [vmem:[%s2552_s6 + $0x170] sm:$0xff] %vm1536_vm2, %v1454_v42  ;;  %1647 = vst.msk [vmem:[%s2552_s6 + $0x370] sm:$0xff] %vm1536_vm2, %v1518_v43  ;;  %v1010_v50 = vadd.f32 %v2543_v7, %v1009_v48  ;;  %v1330_v51 = vadd.f32 %v2543_v7, %v1329_v49 }
 0x149   : > { %v1457_v52 = vmax.f32 %v1015_v46, 0.0  ;;  %v1521_v53 = vmax.f32 %v1335_v47, 0.0 }
 0x14a   : > { %v1456_v54 = vmax.f32 %v1010_v50, 0.0  ;;  %v1520_v55 = vmax.f32 %v1330_v51, 0.0  ;;  %v2082_v56 = vpop.f32.mrb[50].mxu0  ;;  %v2178_v57 = vpop.f32.mrb[50].mxu1 }
 0x14b   : > { %1586 = vst.msk [vmem:[%s2552_s6 + $0x188] sm:$0xff] %vm1536_vm2, %v1457_v52  ;;  %1650 = vst.msk [vmem:[%s2552_s6 + $0x388] sm:$0xff] %vm1536_vm2, %v1521_v53  ;;  %v1025_v58 = vadd.f32 %v2082_v56, %v2543_v7  ;;  %v1345_v59 = vadd.f32 %v2178_v57, %v2543_v7  ;;  %v1019_v60 = vpop.f32.mrb[51].mxu0  ;;  %v1339_v61 = vpop.f32.mrb[51].mxu1 }
 0x14c   : > { %1585 = vst.msk [vmem:[%s2552_s6 + $0x180] sm:$0xff] %vm1536_vm2, %v1456_v54  ;;  %1649 = vst.msk [vmem:[%s2552_s6 + $0x380] sm:$0xff] %vm1536_vm2, %v1520_v55  ;;  %v1020_v62 = vadd.f32 %v2543_v7, %v1019_v60  ;;  %v1340_v63 = vadd.f32 %v2543_v7, %v1339_v61 }
 0x14d   : > { %v1459_v0 = vmax.f32 %v1025_v58, 0.0  ;;  %v1523_v1 = vmax.f32 %v1345_v59, 0.0 }
 0x14e   : > { %v1458_v2 = vmax.f32 %v1020_v62, 0.0  ;;  %v1522_v3 = vmax.f32 %v1340_v63, 0.0  ;;  %v2085_v4 = vpop.f32.mrb[52].mxu0  ;;  %v2181_v5 = vpop.f32.mrb[52].mxu1 }
 0x14f   : > { %1588 = vst.msk [vmem:[%s2552_s6 + $0x198] sm:$0xff] %vm1536_vm2, %v1459_v0  ;;  %1652 = vst.msk [vmem:[%s2552_s6 + $0x398] sm:$0xff] %vm1536_vm2, %v1523_v1  ;;  %v1035_v6 = vadd.f32 %v2085_v4, %v2543_v7  ;;  %v1355_v8 = vadd.f32 %v2181_v5, %v2543_v7  ;;  %v1029_v9 = vpop.f32.mrb[53].mxu0  ;;  %v1349_v10 = vpop.f32.mrb[53].mxu1 }
 0x150   : > { %1587 = vst.msk [vmem:[%s2552_s6 + $0x190] sm:$0xff] %vm1536_vm2, %v1458_v2  ;;  %1651 = vst.msk [vmem:[%s2552_s6 + $0x390] sm:$0xff] %vm1536_vm2, %v1522_v3  ;;  %v1030_v11 = vadd.f32 %v2543_v7, %v1029_v9  ;;  %v1350_v12 = vadd.f32 %v2543_v7, %v1349_v10 }
 0x151   : > { %v1461_v13 = vmax.f32 %v1035_v6, 0.0  ;;  %v1525_v14 = vmax.f32 %v1355_v8, 0.0 }
 0x152   : > { %v1460_v15 = vmax.f32 %v1030_v11, 0.0  ;;  %v1524_v16 = vmax.f32 %v1350_v12, 0.0  ;;  %v2088_v17 = vpop.f32.mrb[54].mxu0  ;;  %v2184_v18 = vpop.f32.mrb[54].mxu1 }
 0x153   : > { %1590 = vst.msk [vmem:[%s2552_s6 + $0x1a8] sm:$0xff] %vm1536_vm2, %v1461_v13  ;;  %1654 = vst.msk [vmem:[%s2552_s6 + $0x3a8] sm:$0xff] %vm1536_vm2, %v1525_v14  ;;  %v1045_v19 = vadd.f32 %v2088_v17, %v2543_v7  ;;  %v1365_v20 = vadd.f32 %v2184_v18, %v2543_v7  ;;  %v1039_v21 = vpop.f32.mrb[55].mxu0  ;;  %v1359_v22 = vpop.f32.mrb[55].mxu1 }
 0x154   : > { %1589 = vst.msk [vmem:[%s2552_s6 + $0x1a0] sm:$0xff] %vm1536_vm2, %v1460_v15  ;;  %1653 = vst.msk [vmem:[%s2552_s6 + $0x3a0] sm:$0xff] %vm1536_vm2, %v1524_v16  ;;  %v1040_v23 = vadd.f32 %v2543_v7, %v1039_v21  ;;  %v1360_v24 = vadd.f32 %v2543_v7, %v1359_v22 }
 0x155   : > { %v1463_v25 = vmax.f32 %v1045_v19, 0.0  ;;  %v1527_v26 = vmax.f32 %v1365_v20, 0.0 }
 0x156   : > { %v1462_v27 = vmax.f32 %v1040_v23, 0.0  ;;  %v1526_v28 = vmax.f32 %v1360_v24, 0.0  ;;  %v2091_v29 = vpop.f32.mrb[56].mxu0  ;;  %v2187_v30 = vpop.f32.mrb[56].mxu1 }
 0x157   : > { %1592 = vst.msk [vmem:[%s2552_s6 + $0x1b8] sm:$0xff] %vm1536_vm2, %v1463_v25  ;;  %1656 = vst.msk [vmem:[%s2552_s6 + $0x3b8] sm:$0xff] %vm1536_vm2, %v1527_v26  ;;  %v1055_v31 = vadd.f32 %v2091_v29, %v2543_v7  ;;  %v1375_v32 = vadd.f32 %v2187_v30, %v2543_v7  ;;  %v1049_v33 = vpop.f32.mrb[57].mxu0  ;;  %v1369_v34 = vpop.f32.mrb[57].mxu1 }
 0x158   : > { %1591 = vst.msk [vmem:[%s2552_s6 + $0x1b0] sm:$0xff] %vm1536_vm2, %v1462_v27  ;;  %1655 = vst.msk [vmem:[%s2552_s6 + $0x3b0] sm:$0xff] %vm1536_vm2, %v1526_v28  ;;  %v1050_v35 = vadd.f32 %v2543_v7, %v1049_v33  ;;  %v1370_v36 = vadd.f32 %v2543_v7, %v1369_v34 }
 0x159   : > { %v1465_v37 = vmax.f32 %v1055_v31, 0.0  ;;  %v1529_v38 = vmax.f32 %v1375_v32, 0.0 }
 0x15a   : > { %v1464_v39 = vmax.f32 %v1050_v35, 0.0  ;;  %v1528_v40 = vmax.f32 %v1370_v36, 0.0  ;;  %v2094_v41 = vpop.f32.mrb[58].mxu0  ;;  %v2190_v42 = vpop.f32.mrb[58].mxu1 }
 0x15b   : > { %1594 = vst.msk [vmem:[%s2552_s6 + $0x1c8] sm:$0xff] %vm1536_vm2, %v1465_v37  ;;  %1658 = vst.msk [vmem:[%s2552_s6 + $0x3c8] sm:$0xff] %vm1536_vm2, %v1529_v38  ;;  %v1065_v43 = vadd.f32 %v2094_v41, %v2543_v7  ;;  %v1385_v44 = vadd.f32 %v2190_v42, %v2543_v7  ;;  %v1059_v45 = vpop.f32.mrb[59].mxu0  ;;  %v1379_v46 = vpop.f32.mrb[59].mxu1 }
 0x15c   : > { %1593 = vst.msk [vmem:[%s2552_s6 + $0x1c0] sm:$0xff] %vm1536_vm2, %v1464_v39  ;;  %1657 = vst.msk [vmem:[%s2552_s6 + $0x3c0] sm:$0xff] %vm1536_vm2, %v1528_v40  ;;  %v1060_v47 = vadd.f32 %v2543_v7, %v1059_v45  ;;  %v1380_v48 = vadd.f32 %v2543_v7, %v1379_v46 }
 0x15d   : > { %v1467_v49 = vmax.f32 %v1065_v43, 0.0  ;;  %v1531_v50 = vmax.f32 %v1385_v44, 0.0 }
 0x15e   : > { %v1466_v51 = vmax.f32 %v1060_v47, 0.0  ;;  %v1530_v52 = vmax.f32 %v1380_v48, 0.0  ;;  %v2097_v53 = vpop.f32.mrb[60].mxu0  ;;  %v2193_v54 = vpop.f32.mrb[60].mxu1 }
 0x15f   : > { %1596 = vst.msk [vmem:[%s2552_s6 + $0x1d8] sm:$0xff] %vm1536_vm2, %v1467_v49  ;;  %1660 = vst.msk [vmem:[%s2552_s6 + $0x3d8] sm:$0xff] %vm1536_vm2, %v1531_v50  ;;  %v1075_v55 = vadd.f32 %v2097_v53, %v2543_v7  ;;  %v1395_v56 = vadd.f32 %v2193_v54, %v2543_v7  ;;  %v1069_v57 = vpop.f32.mrb[61].mxu0  ;;  %v1389_v58 = vpop.f32.mrb[61].mxu1 }
 0x160   : > { %1595 = vst.msk [vmem:[%s2552_s6 + $0x1d0] sm:$0xff] %vm1536_vm2, %v1466_v51  ;;  %1659 = vst.msk [vmem:[%s2552_s6 + $0x3d0] sm:$0xff] %vm1536_vm2, %v1530_v52  ;;  %v1070_v59 = vadd.f32 %v2543_v7, %v1069_v57  ;;  %v1390_v60 = vadd.f32 %v2543_v7, %v1389_v58 }
 0x161   : > { %v1469_v61 = vmax.f32 %v1075_v55, 0.0  ;;  %v1533_v62 = vmax.f32 %v1395_v56, 0.0 }
 0x162   : > { %v1468_v63 = vmax.f32 %v1070_v59, 0.0  ;;  %v1532_v0 = vmax.f32 %v1390_v60, 0.0  ;;  %v2100_v1 = vpop.f32.mrb[62].mxu0  ;;  %v2196_v2 = vpop.f32.mrb[62].mxu1 }
 0x163   : > { %1598 = vst.msk [vmem:[%s2552_s6 + $0x1e8] sm:$0xff] %vm1536_vm2, %v1469_v61  ;;  %1662 = vst.msk [vmem:[%s2552_s6 + $0x3e8] sm:$0xff] %vm1536_vm2, %v1533_v62  ;;  %v1085_v3 = vadd.f32 %v2100_v1, %v2543_v7  ;;  %v1405_v4 = vadd.f32 %v2196_v2, %v2543_v7  ;;  %v1079_v5 = vpop.f32.mrb[63].mxu0  ;;  %v1399_v6 = vpop.f32.mrb[63].mxu1 }
 0x164   : > { %1597 = vst.msk [vmem:[%s2552_s6 + $0x1e0] sm:$0xff] %vm1536_vm2, %v1468_v63  ;;  %1661 = vst.msk [vmem:[%s2552_s6 + $0x3e0] sm:$0xff] %vm1536_vm2, %v1532_v0  ;;  %v1080_v8 = vadd.f32 %v2543_v7, %v1079_v5  ;;  %v1400_v9 = vadd.f32 %v2543_v7, %v1399_v6 }
 0x165   : > { %v1471_v10 = vmax.f32 %v1085_v3, 0.0  ;;  %v1535_v11 = vmax.f32 %v1405_v4, 0.0 }
 0x166   : > { %v1470_v12 = vmax.f32 %v1080_v8, 0.0  ;;  %v1534_v13 = vmax.f32 %v1400_v9, 0.0 }
 0x167   : > { %1600 = vst.msk [vmem:[%s2552_s6 + $0x1f8] sm:$0xff] %vm1536_vm2, %v1471_v10  ;;  %1664 = vst.msk [vmem:[%s2552_s6 + $0x3f8] sm:$0xff] %vm1536_vm2, %v1535_v11 }
 0x168   : > { %1599 = vst.msk [vmem:[%s2552_s6 + $0x1f0] sm:$0xff] %vm1536_vm2, %v1470_v12  ;;  %1663 = vst.msk [vmem:[%s2552_s6 + $0x3f0] sm:$0xff] %vm1536_vm2, %v1534_v13 }
 0x169 PF: > { %s13_s12 = sadd.s32 1, %s2225_s12  }
 0x16a   : > { %p10_p4 = scmp.ge.s32.totalorder %s13_s12, 4  }
 0x16c   :  { %12 = sbr.rel (!%p10_p4) target bundleno = 1 (0x1), region = 62 }

// kernel: encoder_forward.5
= control target key start
LH: loop header
LB: loop body
LE: loop exit
PB: predicated region body
PF: predicated region fallthrough
CT: control target
= control target key end

     0   :  { %s838_s12 = smov 0   ;;  %s1132_s0 = inlined_call_operand.vmem [shape: f32[512,144], index: 0, kind: input, shape index: {}]   ;;  %s1133_s1 = inlined_call_operand.vmem [shape: f32[144,32], index: 1, kind: input, shape index: {}]   ;;  %s1134_s2 = inlined_call_operand.vmem [shape: f32[1,32], index: 2, kind: input, shape index: {}]   ;;  %s1135_s3 = inlined_call_operand.vmem [shape: f32[512,32], index: 3, kind: output, shape index: {}]  }
   0x1 LB: > { %s709_s13 = sadd.s32 4294967295, %s815_s12   ;;  %p713_p0 = scmp.ge.s32.totalorder %s815_s12, 1  ;;  %s815_s12 = sphi %s838_s12, %s13_s12  }
   0x2   : > { %p139_p1 = scmp.lt.s32.totalorder %s815_s12, 3 }
   0x4   : > { %p140_p2 = pnand %p713_p0, %p139_p1 }
   0x5   : > { %v241_v0 = vld [vmem:[%s1133_s1] sm:$0xff] (!%p140_p2)  ;;  %v242_v1 = vld [vmem:[%s1133_s1 + $0x8] sm:$0xff] (!%p140_p2)  ;;  %v243_v2 = vld [vmem:[%s1133_s1 + $0x10] sm:$0xff] (!%p140_p2)  ;;  %s714_s20 = sshll.u32 (!%p140_p2), %s709_s13, 5  ;;  %v817_v3 = vmov (!%p140_p2), 0.0|0.0   ;;  %vm266_vm0 = vcmask (!%p140_p2), 130048  }
   0x6   : > { %143 = sbr.rel (%p140_p2) target bundleno = 320 (0x140), region = 32  ;;  %755 = vmatprep.subr.bf16.mxu0 (!%p140_p2), %v817_v3  ;;  %782 = vmatprep.subr.bf16.mxu1 (!%p140_p2), %v817_v3  ;;  %v756_v4 = vpack.c.bf16 (!%p140_p2), %v242_v1, %v241_v0  ;;  %v244_v5 = vld [vmem:[%s1133_s1 + $0x18] sm:$0xff] (!%p140_p2)  ;;  %p165_p3 = scmp.lt.s32.totalorder (!%p140_p2), %s714_s20, 63  ;;  %v245_v7 = vld [vmem:[%s1133_s1 + $0x20] sm:$0xff] (!%p140_p2)  ;;  %v246_v8 = vld [vmem:[%s1133_s1 + $0x28] sm:$0xff] (!%p140_p2)  ;;  %vm620_vm1 = vcmask (!%p140_p2), 261120  }
   0x7   : > { %v759_v6 = vpack.c.bf16 (!%p140_p2), %v244_v5, %v243_v2  ;;  %v762_v9 = vpack.c.bf16 (!%p140_p2), %v246_v8, %v245_v7  ;;  %v247_v12 = vld [vmem:[%s1133_s1 + $0x30] sm:$0xff] (!%p140_p2)  ;;  %v248_v13 = vld [vmem:[%s1133_s1 + $0x38] sm:$0xff] (!%p140_p2)  ;;  %v249_v15 = vld [vmem:[%s1133_s1 + $0x40] sm:$0xff] (!%p140_p2) }
   0x8   : > { %757 = vmatpush1.bf16.msra.mxu0 (!%p140_p2), %v756_v4  ;;  %791 = vmatpush1.bf16.msra.mxu1 (!%p140_p2), %v756_v4  ;;  %v765_v14 = vpack.c.bf16 (!%p140_p2), %v248_v13, %v247_v12  ;;  %v250_v16 = vld [vmem:[%s1133_s1 + $0x48] sm:$0xff] (!%p140_p2)  ;;  %v251_v18 = vld [vmem:[%s1133_s1 + $0x50] sm:$0xff] (!%p140_p2)  ;;  %v252_v19 = vld [vmem:[%s1133_s1 + $0x58] sm:$0xff] (!%p140_p2) }
   0x9   : > { %758 = vmatprep.subr.bf16.mxu0 (!%p140_p2), %v817_v3  ;;  %783 = vmatprep.subr.bf16.mxu1 (!%p140_p2), %v817_v3  ;;  %v768_v17 = vpack.c.bf16 (!%p140_p2), %v250_v16, %v249_v15  ;;  %v771_v20 = vpack.c.bf16 (!%p140_p2), %v252_v19, %v251_v18  ;;  %v253_v21 = vld [vmem:[%s1133_s1 + $0x60] sm:$0xff] (!%p140_p2)  ;;  %v254_v22 = vld [vmem:[%s1133_s1 + $0x68] sm:$0xff] (!%p140_p2)  ;;  %v255_v24 = vld [vmem:[%s1133_s1 + $0x70] sm:$0xff] (!%p140_p2) }
   0xa   : > { %v774_v23 = vpack.c.bf16 (!%p140_p2), %v254_v22, %v253_v21  ;;  %v256_v25 = vld [vmem:[%s1133_s1 + $0x78] sm:$0xff] (!%p140_p2)  ;;  %v257_v27 = vld [vmem:[%s1133_s1 + $0x80] sm:$0xff] (!%p140_p2)  ;;  %v258_v28 = vld [vmem:[%s1133_s1 + $0x88] sm:$0xff] (!%p140_p2) }
   0xb   : > { %v777_v26 = vpack.c.bf16 (!%p140_p2), %v256_v25, %v255_v24  ;;  %v780_v29 = vpack.c.bf16 (!%p140_p2), %v258_v28, %v257_v27  ;;  %v1025_v28 = vld [vmem:[%s1134_s2] ss:$0 sm:$0xff] (!%p140_p2) }
   0xc   : > { %760 = vmatpush1.bf16.msra.mxu0 (!%p140_p2), %v759_v6  ;;  %792 = vmatpush1.bf16.msra.mxu1 (!%p140_p2), %v759_v6 }
   0xd   : > { %s1137_s20 = smov (!%p165_p3, %s714_s20), 63  ;;  %761 = vmatprep.subr.bf16.mxu0 %v817_v3  ;;  %784 = vmatprep.subr.bf16.mxu1 %v817_v3 }
   0xe   : > { %s754_s27 = sshll.u32 %s1137_s20, 4  ;;  %s718_s6 = sshll.u32 %s1137_s20, 3 }
   0xf   : > { %s874_s30 = scalar_lea.vmem %s1132_s0, %s754_s27 }
  0x10   : > { %v178_v10 = vld [vmem:[%s874_s30 + $0x8] sm:$0xff]  ;;  %763 = vmatpush1.bf16.msra.mxu0 %v762_v9  ;;  %793 = vmatpush1.bf16.msra.mxu1 %v762_v9  ;;  %v177_v30 = vld [vmem:[%s874_s30] sm:$0xff]  ;;  %v180_v32 = vld [vmem:[%s874_s30 + $0x18] sm:$0xff] }
  0x11   : > { %v210_v11 = vld [vmem:[%s874_s30 + $0x108] sm:$0xff]  ;;  %720 = vmatprep.mubr.msk.f32.mxu0 %vm266_vm0, %v178_v10  ;;  %764 = vmatprep.subr.bf16.mxu0 %v817_v3  ;;  %v209_v31 = vld [vmem:[%s874_s30 + $0x100] sm:$0xff]  ;;  %v212_v33 = vld [vmem:[%s874_s30 + $0x118] sm:$0xff] }
  0x12   : > { %736 = vmatprep.mubr.msk.f32.mxu1 %vm266_vm0, %v210_v11  ;;  %785 = vmatprep.subr.bf16.mxu1 %v817_v3  ;;  %v179_v34 = vld [vmem:[%s874_s30 + $0x10] sm:$0xff]  ;;  %v182_v36 = vld [vmem:[%s874_s30 + $0x28] sm:$0xff]  ;;  %v181_v38 = vld [vmem:[%s874_s30 + $0x20] sm:$0xff] }
  0x13   : > { %v211_v35 = vld [vmem:[%s874_s30 + $0x110] sm:$0xff]  ;;  %v214_v37 = vld [vmem:[%s874_s30 + $0x128] sm:$0xff]  ;;  %v213_v39 = vld [vmem:[%s874_s30 + $0x120] sm:$0xff] }
  0x14   : > { %766 = vmatpush1.bf16.msra.mxu0 %v765_v14  ;;  %794 = vmatpush1.bf16.msra.mxu1 %v765_v14  ;;  %v184_v40 = vld [vmem:[%s874_s30 + $0x38] sm:$0xff]  ;;  %v183_v42 = vld [vmem:[%s874_s30 + $0x30] sm:$0xff]  ;;  %v186_v44 = vld [vmem:[%s874_s30 + $0x48] sm:$0xff] }
  0x15   : > { %767 = vmatprep.subr.bf16.mxu0 %v817_v3  ;;  %786 = vmatprep.subr.bf16.mxu1 %v817_v3  ;;  %v216_v41 = vld [vmem:[%s874_s30 + $0x138] sm:$0xff]  ;;  %v215_v43 = vld [vmem:[%s874_s30 + $0x130] sm:$0xff]  ;;  %v218_v45 = vld [vmem:[%s874_s30 + $0x148] sm:$0xff] }
  0x16   : > { %v185_v46 = vld [vmem:[%s874_s30 + $0x40] sm:$0xff]  ;;  %v188_v48 = vld [vmem:[%s874_s30 + $0x58] sm:$0xff]  ;;  %v187_v50 = vld [vmem:[%s874_s30 + $0x50] sm:$0xff] }
  0x17   : > { %v217_v47 = vld [vmem:[%s874_s30 + $0x140] sm:$0xff]  ;;  %v220_v49 = vld [vmem:[%s874_s30 + $0x158] sm:$0xff]  ;;  %v219_v51 = vld [vmem:[%s874_s30 + $0x150] sm:$0xff] }
  0x18   : > { %769 = vmatpush1.bf16.msra.mxu0 %v768_v17  ;;  %795 = vmatpush1.bf16.msra.mxu1 %v768_v17  ;;  %v190_v52 = vld [vmem:[%s874_s30 + $0x68] sm:$0xff]  ;;  %v189_v54 = vld [vmem:[%s874_s30 + $0x60] sm:$0xff]  ;;  %v192_v56 = vld [vmem:[%s874_s30 + $0x78] sm:$0xff] }
  0x19   : > { %770 = vmatprep.subr.bf16.mxu0 %v817_v3  ;;  %787 = vmatprep.subr.bf16.mxu1 %v817_v3  ;;  %v222_v53 = vld [vmem:[%s874_s30 + $0x168] sm:$0xff]  ;;  %v221_v55 = vld [vmem:[%s874_s30 + $0x160] sm:$0xff]  ;;  %v224_v57 = vld [vmem:[%s874_s30 + $0x178] sm:$0xff] }
  0x1a   : > { %v191_v58 = vld [vmem:[%s874_s30 + $0x70] sm:$0xff]  ;;  %v194_v60 = vld [vmem:[%s874_s30 + $0x88] sm:$0xff]  ;;  %v193_v62 = vld [vmem:[%s874_s30 + $0x80] sm:$0xff] }
  0x1b   : > { %v223_v59 = vld [vmem:[%s874_s30 + $0x170] sm:$0xff]  ;;  %v226_v61 = vld [vmem:[%s874_s30 + $0x188] sm:$0xff]  ;;  %v225_v63 = vld [vmem:[%s874_s30 + $0x180] sm:$0xff] }
  0x1c   : > { %772 = vmatpush1.bf16.msra.mxu0 %v771_v20  ;;  %796 = vmatpush1.bf16.msra.mxu1 %v771_v20  ;;  %v196_v0 = vld [vmem:[%s874_s30 + $0x98] sm:$0xff]  ;;  %v195_v2 = vld [vmem:[%s874_s30 + $0x90] sm:$0xff]  ;;  %v198_v4 = vld [vmem:[%s874_s30 + $0xa8] sm:$0xff] }
  0x1d   : > { %773 = vmatprep.subr.bf16.mxu0 %v817_v3  ;;  %788 = vmatprep.subr.bf16.mxu1 %v817_v3  ;;  %v228_v1 = vld [vmem:[%s874_s30 + $0x198] sm:$0xff]  ;;  %v230_v5 = vld [vmem:[%s874_s30 + $0x1a8] sm:$0xff]  ;;  %v197_v6 = vld [vmem:[%s874_s30 + $0xa0] sm:$0xff] }
  0x1e   : > { %v229_v7 = vld [vmem:[%s874_s30 + $0x1a0] sm:$0xff]  ;;  %v200_v8 = vld [vmem:[%s874_s30 + $0xb8] sm:$0xff]  ;;  %v199_v10 = vld [vmem:[%s874_s30 + $0xb0] sm:$0xff] }
  0x1f   : > { %v232_v9 = vld [vmem:[%s874_s30 + $0x1b8] sm:$0xff]  ;;  %v231_v11 = vld [vmem:[%s874_s30 + $0x1b0] sm:$0xff]  ;;  %v202_v12 = vld [vmem:[%s874_s30 + $0xc8] sm:$0xff] }
  0x20   : > { %775 = vmatpush1.bf16.msra.mxu0 %v774_v23  ;;  %797 = vmatpush1.bf16.msra.mxu1 %v774_v23  ;;  %v234_v13 = vld [vmem:[%s874_s30 + $0x1c8] sm:$0xff]  ;;  %v201_v14 = vld [vmem:[%s874_s30 + $0xc0] sm:$0xff]  ;;  %v204_v16 = vld [vmem:[%s874_s30 + $0xd8] sm:$0xff] }
  0x21   : > { %776 = vmatprep.subr.bf16.mxu0 %v817_v3  ;;  %789 = vmatprep.subr.bf16.mxu1 %v817_v3  ;;  %v233_v15 = vld [vmem:[%s874_s30 + $0x1c0] sm:$0xff]  ;;  %v236_v17 = vld [vmem:[%s874_s30 + $0x1d8] sm:$0xff]  ;;  %v203_v18 = vld [vmem:[%s874_s30 + $0xd0] sm:$0xff] }
  0x22   : > { %v235_v19 = vld [vmem:[%s874_s30 + $0x1d0] sm:$0xff]  ;;  %v206_v20 = vld [vmem:[%s874_s30 + $0xe8] sm:$0xff]  ;;  %v205_v22 = vld [vmem:[%s874_s30 + $0xe0] sm:$0xff] }
  0x23   : > { %v238_v21 = vld [vmem:[%s874_s30 + $0x1e8] sm:$0xff]  ;;  %v237_v23 = vld [vmem:[%s874_s30 + $0x1e0] sm:$0xff]  ;;  %v208_v24 = vld [vmem:[%s874_s30 + $0xf8] sm:$0xff] }
  0x24   : > { %778 = vmatpush1.bf16.msra.mxu0 %v777_v26  ;;  %798 = vmatpush1.bf16.msra.mxu1 %v777_v26  ;;  %v240_v25 = vld [vmem:[%s874_s30 + $0x1f8] sm:$0xff]  ;;  %v207_v26 = vld [vmem:[%s874_s30 + $0xf0] sm:$0xff] }
  0x25   : > { %779 = vmatprep.subr.bf16.mxu0 %v817_v3  ;;  %790 = vmatprep.subr.bf16.mxu1 %v817_v3  ;;  %v227_v3 = vld [vmem:[%s874_s30 + $0x190] sm:$0xff] }
  0x26   : > { %v239_v27 = vld [vmem:[%s874_s30 + $0x1f0] sm:$0xff]  ;;  %s1033_s30 = scalar_lea.vmem %s1135_s3, %s718_s6 }
  0x28   : > { %781 = vmatpush1.bf16.msra.mxu0 %v780_v29  ;;  %799 = vmatpush1.bf16.msra.mxu1 %v780_v29 }
  0x2b   : > { %428 = vmatmul.mubr.f32.vlgmr.msra.gmra.mrb[0].mxu0 %v177_v30  ;;  %508 = vmatmul.mubr.f32.vlgmr.msra.gmra.mrb[0].mxu1 %v209_v31 }
  0x2c   : > { %721 = vmatprep.mubr.msk.f32.mxu0 %vm266_vm0, %v180_v32  ;;  %737 = vmatprep.mubr.msk.f32.mxu1 %vm266_vm0, %v212_v33 }
  0x2f   : > { %433 = vmatmul.mubr.f32.gmra.mrb[2].mxu0 %v179_v34  ;;  %513 = vmatmul.mubr.f32.gmra.mrb[2].mxu1 %v211_v35 }
  0x30   : > { %722 = vmatprep.mubr.msk.f32.mxu0 %vm266_vm0, %v182_v36  ;;  %738 = vmatprep.mubr.msk.f32.mxu1 %vm266_vm0, %v214_v37 }
  0x33   : > { %438 = vmatmul.mubr.f32.gmra.mrb[4].mxu0 %v181_v38  ;;  %518 = vmatmul.mubr.f32.gmra.mrb[4].mxu1 %v213_v39 }
  0x34   : > { %723 = vmatprep.mubr.msk.f32.mxu0 %vm266_vm0, %v184_v40  ;;  %739 = vmatprep.mubr.msk.f32.mxu1 %vm266_vm0, %v216_v41 }
  0x37   : > { %443 = vmatmul.mubr.f32.gmra.mrb[6].mxu0 %v183_v42  ;;  %523 = vmatmul.mubr.f32.gmra.mrb[6].mxu1 %v215_v43 }
  0x38   : > { %724 = vmatprep.mubr.msk.f32.mxu0 %vm266_vm0, %v186_v44  ;;  %740 = vmatprep.mubr.msk.f32.mxu1 %vm266_vm0, %v218_v45 }
  0x3b   : > { %448 = vmatmul.mubr.f32.gmra.mrb[8].mxu0 %v185_v46  ;;  %528 = vmatmul.mubr.f32.gmra.mrb[8].mxu1 %v217_v47 }
  0x3c   : > { %725 = vmatprep.mubr.msk.f32.mxu0 %vm266_vm0, %v188_v48  ;;  %741 = vmatprep.mubr.msk.f32.mxu1 %vm266_vm0, %v220_v49 }
  0x3f   : > { %453 = vmatmul.mubr.f32.gmra.mrb[10].mxu0 %v187_v50  ;;  %533 = vmatmul.mubr.f32.gmra.mrb[10].mxu1 %v219_v51 }
  0x40   : > { %726 = vmatprep.mubr.msk.f32.mxu0 %vm266_vm0, %v190_v52  ;;  %742 = vmatprep.mubr.msk.f32.mxu1 %vm266_vm0, %v222_v53 }
  0x43   : > { %458 = vmatmul.mubr.f32.gmra.mrb[12].mxu0 %v189_v54  ;;  %538 = vmatmul.mubr.f32.gmra.mrb[12].mxu1 %v221_v55 }
  0x44   : > { %727 = vmatprep.mubr.msk.f32.mxu0 %vm266_vm0, %v192_v56  ;;  %743 = vmatprep.mubr.msk.f32.mxu1 %vm266_vm0, %v224_v57 }
  0x47   : > { %463 = vmatmul.mubr.f32.gmra.mrb[14].mxu0 %v191_v58  ;;  %543 = vmatmul.mubr.f32.gmra.mrb[14].mxu1 %v223_v59 }
  0x48   : > { %728 = vmatprep.mubr.msk.f32.mxu0 %vm266_vm0, %v194_v60  ;;  %744 = vmatprep.mubr.msk.f32.mxu1 %vm266_vm0, %v226_v61 }
  0x4b   : > { %468 = vmatmul.mubr.f32.gmra.mrb[16].mxu0 %v193_v62  ;;  %548 = vmatmul.mubr.f32.gmra.mrb[16].mxu1 %v225_v63 }
  0x4c   : > { %729 = vmatprep.mubr.msk.f32.mxu0 %vm266_vm0, %v196_v0  ;;  %745 = vmatprep.mubr.msk.f32.mxu1 %vm266_vm0, %v228_v1 }
  0x4f   : > { %473 = vmatmul.mubr.f32.gmra.mrb[18].mxu0 %v195_v2  ;;  %553 = vmatmul.mubr.f32.gmra.mrb[18].mxu1 %v227_v3 }
  0x50   : > { %730 = vmatprep.mubr.msk.f32.mxu0 %vm266_vm0, %v198_v4  ;;  %746 = vmatprep.mubr.msk.f32.mxu1 %vm266_vm0, %v230_v5 }
  0x53   : > { %478 = vmatmul.mubr.f32.gmra.mrb[20].mxu0 %v197_v6  ;;  %558 = vmatmul.mubr.f32.gmra.mrb[20].mxu1 %v229_v7 }
  0x54   : > { %731 = vmatprep.mubr.msk.f32.mxu0 %vm266_vm0, %v200_v8  ;;  %747 = vmatprep.mubr.msk.f32.mxu1 %vm266_vm0, %v232_v9 }
  0x57   : > { %483 = vmatmul.mubr.f32.gmra.mrb[22].mxu0 %v199_v10  ;;  %563 = vmatmul.mubr.f32.gmra.mrb[22].mxu1 %v231_v11 }
  0x58   : > { %732 = vmatprep.mubr.msk.f32.mxu0 %vm266_vm0, %v202_v12  ;;  %748 = vmatprep.mubr.msk.f32.mxu1 %vm266_vm0, %v234_v13 }
  0x5b   : > { %488 = vmatmul.mubr.f32.gmra.mrb[24].mxu0 %v201_v14  ;;  %568 = vmatmul.mubr.f32.gmra.mrb[24].mxu1 %v233_v15 }
  0x5c   : > { %733 = vmatprep.mubr.msk.f32.mxu0 %vm266_vm0, %v204_v16  ;;  %749 = vmatprep.mubr.msk.f32.mxu1 %vm266_vm0, %v236_v17 }
  0x5f   : > { %493 = vmatmul.mubr.f32.gmra.mrb[26].mxu0 %v203_v18  ;;  %573 = vmatmul.mubr.f32.gmra.mrb[26].mxu1 %v235_v19 }
  0x60   : > { %734 = vmatprep.mubr.msk.f32.mxu0 %vm266_vm0, %v206_v20  ;;  %750 = vmatprep.mubr.msk.f32.mxu1 %vm266_vm0, %v238_v21 }
  0x63   : > { %498 = vmatmul.mubr.f32.gmra.mrb[28].mxu0 %v205_v22  ;;  %578 = vmatmul.mubr.f32.gmra.mrb[28].mxu1 %v237_v23 }
  0x64   : > { %735 = vmatprep.mubr.msk.f32.mxu0 %vm266_vm0, %v208_v24  ;;  %751 = vmatprep.mubr.msk.f32.mxu1 %vm266_vm0, %v240_v25 }
  0x67   : > { %503 = vmatmul.mubr.f32.gmra.mrb[30].mxu0 %v207_v26  ;;  %583 = vmatmul.mubr.f32.gmra.mrb[30].mxu1 %v239_v27 }
  0xfe   : > { %v429_v29 = vpop.f32.mrb[0].mxu0  ;;  %v509_v30 = vpop.f32.mrb[0].mxu1 }
  0xff   : > { %v430_v31 = vadd.f32 %v1025_v28, %v429_v29  ;;  %v510_v32 = vadd.f32 %v1025_v28, %v509_v30  ;;  %v431_v33 = vpop.f32.mrb[1].mxu0  ;;  %v511_v34 = vpop.f32.mrb[1].mxu1 }
 0x101   : > { %v588_v35 = vmax.f32 %v430_v31, 0.0  ;;  %v604_v36 = vmax.f32 %v510_v32, 0.0 }
 0x102   : > { %v434_v37 = vpop.f32.mrb[2].mxu0  ;;  %v514_v38 = vpop.f32.mrb[2].mxu1 }
 0x103   : > { %621 = vst.msk [vmem:[%s1033_s30] sm:$0xff] %vm620_vm1, %v588_v35  ;;  %637 = vst.msk [vmem:[%s1033_s30 + $0x80] sm:$0xff] %vm620_vm1, %v604_v36  ;;  %v435_v39 = vadd.f32 %v1025_v28, %v434_v37  ;;  %v515_v40 = vadd.f32 %v1025_v28, %v514_v38  ;;  %v436_v41 = vpop.f32.mrb[3].mxu0  ;;  %v516_v42 = vpop.f32.mrb[3].mxu1 }
 0x105   : > { %v589_v43 = vmax.f32 %v435_v39, 0.0  ;;  %v605_v44 = vmax.f32 %v515_v40, 0.0 }
 0x106   : > { %v439_v45 = vpop.f32.mrb[4].mxu0  ;;  %v519_v46 = vpop.f32.mrb[4].mxu1 }
 0x107   : > { %622 = vst.msk [vmem:[%s1033_s30 + $0x8] sm:$0xff] %vm620_vm1, %v589_v43  ;;  %638 = vst.msk [vmem:[%s1033_s30 + $0x88] sm:$0xff] %vm620_vm1, %v605_v44  ;;  %v440_v47 = vadd.f32 %v1025_v28, %v439_v45  ;;  %v520_v48 = vadd.f32 %v1025_v28, %v519_v46  ;;  %v441_v49 = vpop.f32.mrb[5].mxu0  ;;  %v521_v50 = vpop.f32.mrb[5].mxu1 }
 0x109   : > { %v590_v51 = vmax.f32 %v440_v47, 0.0  ;;  %v606_v52 = vmax.f32 %v520_v48, 0.0 }
 0x10a   : > { %v444_v53 = vpop.f32.mrb[6].mxu0  ;;  %v524_v54 = vpop.f32.mrb[6].mxu1 }
 0x10b   : > { %623 = vst.msk [vmem:[%s1033_s30 + $0x10] sm:$0xff] %vm620_vm1, %v590_v51  ;;  %639 = vst.msk [vmem:[%s1033_s30 + $0x90] sm:$0xff] %vm620_vm1, %v606_v52  ;;  %v445_v55 = vadd.f32 %v1025_v28, %v444_v53  ;;  %v525_v56 = vadd.f32 %v1025_v28, %v524_v54  ;;  %v446_v57 = vpop.f32.mrb[7].mxu0  ;;  %v526_v58 = vpop.f32.mrb[7].mxu1 }
 0x10d   : > { %v591_v59 = vmax.f32 %v445_v55, 0.0  ;;  %v607_v60 = vmax.f32 %v525_v56, 0.0 }
 0x10e   : > { %v449_v61 = vpop.f32.mrb[8].mxu0  ;;  %v529_v62 = vpop.f32.mrb[8].mxu1 }
 0x10f   : > { %624 = vst.msk [vmem:[%s1033_s30 + $0x18] sm:$0xff] %vm620_vm1, %v591_v59  ;;  %640 = vst.msk [vmem:[%s1033_s30 + $0x98] sm:$0xff] %vm620_vm1, %v607_v60  ;;  %v450_v63 = vadd.f32 %v1025_v28, %v449_v61  ;;  %v530_v0 = vadd.f32 %v1025_v28, %v529_v62  ;;  %v451_v1 = vpop.f32.mrb[9].mxu0  ;;  %v531_v2 = vpop.f32.mrb[9].mxu1 }
 0x111   : > { %v592_v3 = vmax.f32 %v450_v63, 0.0  ;;  %v608_v4 = vmax.f32 %v530_v0, 0.0 }
 0x112   : > { %v454_v5 = vpop.f32.mrb[10].mxu0  ;;  %v534_v6 = vpop.f32.mrb[10].mxu1 }
 0x113   : > { %625 = vst.msk [vmem:[%s1033_s30 + $0x20] sm:$0xff] %vm620_vm1, %v592_v3  ;;  %641 = vst.msk [vmem:[%s1033_s30 + $0xa0] sm:$0xff] %vm620_vm1, %v608_v4  ;;  %v455_v7 = vadd.f32 %v1025_v28, %v454_v5  ;;  %v535_v8 = vadd.f32 %v1025_v28, %v534_v6  ;;  %v456_v9 = vpop.f32.mrb[11].mxu0  ;;  %v536_v10 = vpop.f32.mrb[11].mxu1 }
 0x115   : > { %v593_v11 = vmax.f32 %v455_v7, 0.0  ;;  %v609_v12 = vmax.f32 %v535_v8, 0.0 }
 0x116   : > { %v459_v13 = vpop.f32.mrb[12].mxu0  ;;  %v539_v14 = vpop.f32.mrb[12].mxu1 }
 0x117   : > { %626 = vst.msk [vmem:[%s1033_s30 + $0x28] sm:$0xff] %vm620_vm1, %v593_v11  ;;  %642 = vst.msk [vmem:[%s1033_s30 + $0xa8] sm:$0xff] %vm620_vm1, %v609_v12  ;;  %v460_v15 = vadd.f32 %v1025_v28, %v459_v13  ;;  %v540_v16 = vadd.f32 %v1025_v28, %v539_v14  ;;  %v461_v17 = vpop.f32.mrb[13].mxu0  ;;  %v541_v18 = vpop.f32.mrb[13].mxu1 }
 0x119   : > { %v594_v19 = vmax.f32 %v460_v15, 0.0  ;;  %v610_v20 = vmax.f32 %v540_v16, 0.0 }
 0x11a   : > { %v464_v21 = vpop.f32.mrb[14].mxu0  ;;  %v544_v22 = vpop.f32.mrb[14].mxu1 }
 0x11b   : > { %627 = vst.msk [vmem:[%s1033_s30 + $0x30] sm:$0xff] %vm620_vm1, %v594_v19  ;;  %643 = vst.msk [vmem:[%s1033_s30 + $0xb0] sm:$0xff] %vm620_vm1, %v610_v20  ;;  %v465_v23 = vadd.f32 %v1025_v28, %v464_v21  ;;  %v545_v24 = vadd.f32 %v1025_v28, %v544_v22  ;;  %v466_v25 = vpop.f32.mrb[15].mxu0  ;;  %v546_v26 = vpop.f32.mrb[15].mxu1 }
 0x11d   : > { %v595_v27 = vmax.f32 %v465_v23, 0.0  ;;  %v611_v29 = vmax.f32 %v545_v24, 0.0 }
 0x11e   : > { %v469_v30 = vpop.f32.mrb[16].mxu0  ;;  %v549_v31 = vpop.f32.mrb[16].mxu1 }
 0x11f   : > { %628 = vst.msk [vmem:[%s1033_s30 + $0x38] sm:$0xff] %vm620_vm1, %v595_v27  ;;  %644 = vst.msk [vmem:[%s1033_s30 + $0xb8] sm:$0xff] %vm620_vm1, %v611_v29  ;;  %v470_v32 = vadd.f32 %v1025_v28, %v469_v30  ;;  %v550_v33 = vadd.f32 %v1025_v28, %v549_v31  ;;  %v471_v34 = vpop.f32.mrb[17].mxu0  ;;  %v551_v35 = vpop.f32.mrb[17].mxu1 }
 0x121   : > { %v596_v36 = vmax.f32 %v470_v32, 0.0  ;;  %v612_v37 = vmax.f32 %v550_v33, 0.0 }
 0x122   : > { %v474_v38 = vpop.f32.mrb[18].mxu0  ;;  %v554_v39 = vpop.f32.mrb[18].mxu1 }
 0x123   : > { %629 = vst.msk [vmem:[%s1033_s30 + $0x40] sm:$0xff] %vm620_vm1, %v596_v36  ;;  %645 = vst.msk [vmem:[%s1033_s30 + $0xc0] sm:$0xff] %vm620_vm1, %v612_v37  ;;  %v475_v40 = vadd.f32 %v1025_v28, %v474_v38  ;;  %v555_v41 = vadd.f32 %v1025_v28, %v554_v39  ;;  %v476_v42 = vpop.f32.mrb[19].mxu0  ;;  %v556_v43 = vpop.f32.mrb[19].mxu1 }
 0x125   : > { %v597_v44 = vmax.f32 %v475_v40, 0.0  ;;  %v613_v45 = vmax.f32 %v555_v41, 0.0 }
 0x126   : > { %v479_v46 = vpop.f32.mrb[20].mxu0  ;;  %v559_v47 = vpop.f32.mrb[20].mxu1 }
 0x127   : > { %630 = vst.msk [vmem:[%s1033_s30 + $0x48] sm:$0xff] %vm620_vm1, %v597_v44  ;;  %646 = vst.msk [vmem:[%s1033_s30 + $0xc8] sm:$0xff] %vm620_vm1, %v613_v45  ;;  %v480_v48 = vadd.f32 %v1025_v28, %v479_v46  ;;  %v560_v49 = vadd.f32 %v1025_v28, %v559_v47  ;;  %v481_v50 = vpop.f32.mrb[21].mxu0  ;;  %v561_v51 = vpop.f32.mrb[21].mxu1 }
 0x129   : > { %v598_v52 = vmax.f32 %v480_v48, 0.0  ;;  %v614_v53 = vmax.f32 %v560_v49, 0.0 }
 0x12a   : > { %v484_v54 = vpop.f32.mrb[22].mxu0  ;;  %v564_v55 = vpop.f32.mrb[22].mxu1 }
 0x12b   : > { %631 = vst.msk [vmem:[%s1033_s30 + $0x50] sm:$0xff] %vm620_vm1, %v598_v52  ;;  %647 = vst.msk [vmem:[%s1033_s30 + $0xd0] sm:$0xff] %vm620_vm1, %v614_v53  ;;  %v485_v56 = vadd.f32 %v1025_v28, %v484_v54  ;;  %v565_v57 = vadd.f32 %v1025_v28, %v564_v55  ;;  %v486_v58 = vpop.f32.mrb[23].mxu0  ;;  %v566_v59 = vpop.f32.mrb[23].mxu1 }
 0x12d   : > { %v599_v60 = vmax.f32 %v485_v56, 0.0  ;;  %v615_v61 = vmax.f32 %v565_v57, 0.0 }
 0x12e   : > { %v489_v62 = vpop.f32.mrb[24].mxu0  ;;  %v569_v63 = vpop.f32.mrb[24].mxu1 }
 0x12f   : > { %632 = vst.msk [vmem:[%s1033_s30 + $0x58] sm:$0xff] %vm620_vm1, %v599_v60  ;;  %648 = vst.msk [vmem:[%s1033_s30 + $0xd8] sm:$0xff] %vm620_vm1, %v615_v61  ;;  %v490_v0 = vadd.f32 %v1025_v28, %v489_v62  ;;  %v570_v1 = vadd.f32 %v1025_v28, %v569_v63  ;;  %v491_v2 = vpop.f32.mrb[25].mxu0  ;;  %v571_v3 = vpop.f32.mrb[25].mxu1 }
 0x131   : > { %v600_v4 = vmax.f32 %v490_v0, 0.0  ;;  %v616_v5 = vmax.f32 %v570_v1, 0.0 }
 0x132   : > { %v494_v6 = vpop.f32.mrb[26].mxu0  ;;  %v574_v7 = vpop.f32.mrb[26].mxu1 }
 0x133   : > { %633 = vst.msk [vmem:[%s1033_s30 + $0x60] sm:$0xff] %vm620_vm1, %v600_v4  ;;  %649 = vst.msk [vmem:[%s1033_s30 + $0xe0] sm:$0xff] %vm620_vm1, %v616_v5  ;;  %v495_v8 = vadd.f32 %v1025_v28, %v494_v6  ;;  %v575_v9 = vadd.f32 %v1025_v28, %v574_v7  ;;  %v496_v10 = vpop.f32.mrb[27].mxu0  ;;  %v576_v11 = vpop.f32.mrb[27].mxu1 }
 0x135   : > { %v601_v12 = vmax.f32 %v495_v8, 0.0  ;;  %v617_v13 = vmax.f32 %v575_v9, 0.0 }
 0x136   : > { %v499_v14 = vpop.f32.mrb[28].mxu0  ;;  %v579_v15 = vpop.f32.mrb[28].mxu1 }
 0x137   : > { %634 = vst.msk [vmem:[%s1033_s30 + $0x68] sm:$0xff] %vm620_vm1, %v601_v12  ;;  %650 = vst.msk [vmem:[%s1033_s30 + $0xe8] sm:$0xff] %vm620_vm1, %v617_v13  ;;  %v500_v16 = vadd.f32 %v1025_v28, %v499_v14  ;;  %v580_v17 = vadd.f32 %v1025_v28, %v579_v15  ;;  %v501_v18 = vpop.f32.mrb[29].mxu0  ;;  %v581_v19 = vpop.f32.mrb[29].mxu1 }
 0x139   : > { %v602_v20 = vmax.f32 %v500_v16, 0.0  ;;  %v618_v21 = vmax.f32 %v580_v17, 0.0 }
 0x13a   : > { %v504_v22 = vpop.f32.mrb[30].mxu0  ;;  %v584_v23 = vpop.f32.mrb[30].mxu1 }
 0x13b   : > { %635 = vst.msk [vmem:[%s1033_s30 + $0x70] sm:$0xff] %vm620_vm1, %v602_v20  ;;  %651 = vst.msk [vmem:[%s1033_s30 + $0xf0] sm:$0xff] %vm620_vm1, %v618_v21  ;;  %v505_v24 = vadd.f32 %v1025_v28, %v504_v22  ;;  %v585_v25 = vadd.f32 %v1025_v28, %v584_v23  ;;  %v506_v26 = vpop.f32.mrb[31].mxu0  ;;  %v586_v27 = vpop.f32.mrb[31].mxu1 }
 0x13d   : > { %v603_v29 = vmax.f32 %v505_v24, 0.0  ;;  %v619_v30 = vmax.f32 %v585_v25, 0.0 }
 0x13f   : > { %636 = vst.msk [vmem:[%s1033_s30 + $0x78] sm:$0xff] %vm620_vm1, %v603_v29  ;;  %652 = vst.msk [vmem:[%s1033_s30 + $0xf8] sm:$0xff] %vm620_vm1, %v619_v30 }
 0x140 PF: > { %s13_s12 = sadd.s32 1, %s815_s12  }
 0x141   : > { %p10_p4 = scmp.ge.s32.totalorder %s13_s12, 4  }
 0x143   :  { %12 = sbr.rel (!%p10_p4) target bundleno = 1 (0x1), region = 62 }

// kernel: encoder_forward.6
= control target key start
LH: loop header
LB: loop body
LE: loop exit
PB: predicated region body
PF: predicated region fallthrough
CT: control target
= control target key end

     0   :  { %s753_s12 = smov 0   ;;  %s937_s0 = inlined_call_operand.vmem [shape: f32[128,288], index: 0, kind: input, shape index: {}]   ;;  %s938_s1 = inlined_call_operand.vmem [shape: f32[288,64], index: 1, kind: input, shape index: {}]   ;;  %s939_s2 = inlined_call_operand.vmem [shape: f32[1,64], index: 2, kind: input, shape index: {}]   ;;  %s940_s3 = inlined_call_operand.vmem [shape: f32[128,64], index: 3, kind: output, shape index: {}]  }
   0x1 LB: > { %s552_s13 = sadd.s32 4294967295, %s731_s12   ;;  %p556_p0 = scmp.ge.s32.totalorder %s731_s12, 1  ;;  %s731_s12 = sphi %s753_s12, %s13_s12  }
   0x2   : > { %p139_p1 = scmp.lt.s32.totalorder %s731_s12, 3 }
   0x4   : > { %p140_p2 = pnand %p556_p0, %p139_p1 }
   0x5   : > { %v217_v0 = vld [vmem:[%s938_s1 + $0x80] sm:$0xff] (!%p140_p2)  ;;  %v218_v1 = vld [vmem:[%s938_s1 + $0x88] sm:$0xff] (!%p140_p2)  ;;  %s557_s20 = sshll.u32 (!%p140_p2), %s552_s13, 3  ;;  %v219_v5 = vld [vmem:[%s938_s1 + $0x90] sm:$0xff] (!%p140_p2)  ;;  %vm244_vm0 = vcmask (!%p140_p2), 261120   ;;  %vm487_vm1 = vcmask (!%p140_p2), 523264  }
   0x6   : > { %143 = sbr.rel (%p140_p2) target bundleno = 282 (0x11a), region = 32  ;;  %v201_v2 = vld [vmem:[%s938_s1] sm:$0xff] (!%p140_p2)  ;;  %v660_v3 = vpack.c.bf16 (!%p140_p2), %v218_v1, %v217_v0  ;;  %v202_v4 = vld [vmem:[%s938_s1 + $0x8] sm:$0xff] (!%p140_p2)  ;;  %v220_v6 = vld [vmem:[%s938_s1 + $0x98] sm:$0xff] (!%p140_p2)  ;;  %p165_p3 = scmp.lt.s32.totalorder (!%p140_p2), %s557_s20, 15 }
   0x7   : > { %v662_v7 = vpack.c.bf16 (!%p140_p2), %v202_v4, %v201_v2  ;;  %v664_v8 = vpack.c.bf16 (!%p140_p2), %v220_v6, %v219_v5  ;;  %v203_v9 = vld [vmem:[%s938_s1 + $0x10] sm:$0xff] (!%p140_p2)  ;;  %v204_v10 = vld [vmem:[%s938_s1 + $0x18] sm:$0xff] (!%p140_p2)  ;;  %v221_v11 = vld [vmem:[%s938_s1 + $0xa0] sm:$0xff] (!%p140_p2) }
   0x8   : > { %661 = vmatprep.subr.bf16.mxu0 (!%p140_p2), %v660_v3  ;;  %700 = vmatprep.subr.bf16.mxu1 (!%p140_p2), %v660_v3  ;;  %v222_v12 = vld [vmem:[%s938_s1 + $0xa8] sm:$0xff] (!%p140_p2)  ;;  %v666_v13 = vpack.c.bf16 (!%p140_p2), %v204_v10, %v203_v9  ;;  %v205_v15 = vld [vmem:[%s938_s1 + $0x20] sm:$0xff] (!%p140_p2)  ;;  %v223_v17 = vld [vmem:[%s938_s1 + $0xb0] sm:$0xff] (!%p140_p2) }
   0x9   : > { %663 = vmatpush3.bf16.msra.mxu0 (!%p140_p2), %v662_v7  ;;  %708 = vmatpush3.bf16.msra.mxu1 (!%p140_p2), %v662_v7  ;;  %v668_v14 = vpack.c.bf16 (!%p140_p2), %v222_v12, %v221_v11  ;;  %v206_v16 = vld [vmem:[%s938_s1 + $0x28] sm:$0xff] (!%p140_p2)  ;;  %v224_v18 = vld [vmem:[%s938_s1 + $0xb8] sm:$0xff] (!%p140_p2)  ;;  %v207_v21 = vld [vmem:[%s938_s1 + $0x30] sm:$0xff] (!%p140_p2) }
   0xa   : > { %665 = vmatprep.subr.bf16.mxu0 (!%p140_p2), %v664_v8  ;;  %701 = vmatprep.subr.bf16.mxu1 (!%p140_p2), %v664_v8  ;;  %v670_v19 = vpack.c.bf16 (!%p140_p2), %v206_v16, %v205_v15  ;;  %v672_v20 = vpack.c.bf16 (!%p140_p2), %v224_v18, %v223_v17  ;;  %v208_v22 = vld [vmem:[%s938_s1 + $0x38] sm:$0xff] (!%p140_p2)  ;;  %v225_v23 = vld [vmem:[%s938_s1 + $0xc0] sm:$0xff] (!%p140_p2)  ;;  %v226_v24 = vld [vmem:[%s938_s1 + $0xc8] sm:$0xff] (!%p140_p2) }
   0xb   : > { %v674_v27 = vpack.c.bf16 (!%p140_p2), %v208_v22, %v207_v21  ;;  %v676_v28 = vpack.c.bf16 (!%p140_p2), %v226_v24, %v225_v23  ;;  %v209_v29 = vld [vmem:[%s938_s1 + $0x40] sm:$0xff] (!%p140_p2)  ;;  %v210_v30 = vld [vmem:[%s938_s1 + $0x48] sm:$0xff] (!%p140_p2)  ;;  %v227_v31 = vld [vmem:[%s938_s1 + $0xd0] sm:$0xff] (!%p140_p2) }
   0xc   : > { %v228_v32 = vld [vmem:[%s938_s1 + $0xd8] sm:$0xff] (!%p140_p2)  ;;  %v678_v33 = vpack.c.bf16 (!%p140_p2), %v210_v30, %v209_v29  ;;  %v211_v35 = vld [vmem:[%s938_s1 + $0x50] sm:$0xff] (!%p140_p2)  ;;  %v229_v37 = vld [vmem:[%s938_s1 + $0xe0] sm:$0xff] (!%p140_p2) }
   0xd   : > { %s942_s20 = smov (!%p165_p3, %s557_s20), 15  ;;  %667 = vmatpush3.bf16.msra.mxu0 %v666_v13  ;;  %709 = vmatpush3.bf16.msra.mxu1 %v666_v13  ;;  %v680_v34 = vpack.c.bf16 %v228_v32, %v227_v31  ;;  %v212_v36 = vld [vmem:[%s938_s1 + $0x58] sm:$0xff]  ;;  %v230_v38 = vld [vmem:[%s938_s1 + $0xe8] sm:$0xff]  ;;  %v213_v41 = vld [vmem:[%s938_s1 + $0x60] sm:$0xff] }
   0xe   : > { %s716_s13 = smul.u32 24, %s942_s20  ;;  %669 = vmatprep.subr.bf16.mxu0 %v668_v14  ;;  %702 = vmatprep.subr.bf16.mxu1 %v668_v14  ;;  %v682_v39 = vpack.c.bf16 %v212_v36, %v211_v35  ;;  %v684_v40 = vpack.c.bf16 %v230_v38, %v229_v37  ;;  %v214_v42 = vld [vmem:[%s938_s1 + $0x68] sm:$0xff]  ;;  %v231_v43 = vld [vmem:[%s938_s1 + $0xf0] sm:$0xff]  ;;  %v232_v44 = vld [vmem:[%s938_s1 + $0xf8] sm:$0xff] }
   0xf   : > { %v686_v45 = vpack.c.bf16 %v214_v42, %v213_v41  ;;  %v688_v46 = vpack.c.bf16 %v232_v44, %v231_v43  ;;  %v215_v47 = vld [vmem:[%s938_s1 + $0x70] sm:$0xff]  ;;  %v216_v48 = vld [vmem:[%s938_s1 + $0x78] sm:$0xff]  ;;  %v233_v49 = vld [vmem:[%s938_s1 + $0x100] sm:$0xff] }
  0x10   : > { %s809_s21 = scalar_lea.vmem %s937_s0, %s716_s13  ;;  %v234_v50 = vld [vmem:[%s938_s1 + $0x108] sm:$0xff]  ;;  %v690_v51 = vpack.c.bf16 %v216_v48, %v215_v47  ;;  %v235_v53 = vld [vmem:[%s938_s1 + $0x110] sm:$0xff]  ;;  %v236_v54 = vld [vmem:[%s938_s1 + $0x118] sm:$0xff] }
  0x11   : > { %v178_v25 = vld [vmem:[%s809_s21 + $0x8] sm:$0xff]  ;;  %v196_v26 = vld [vmem:[%s809_s21 + $0x98] sm:$0xff]  ;;  %671 = vmatpush3.bf16.msra.mxu0 %v670_v19  ;;  %710 = vmatpush3.bf16.msra.mxu1 %v670_v19  ;;  %v692_v52 = vpack.c.bf16 %v234_v50, %v233_v49  ;;  %v177_v55 = vld [vmem:[%s809_s21] sm:$0xff]  ;;  %v696_v58 = vpack.c.bf16 %v236_v54, %v235_v53 }
  0x12   : > { %333 = vmatprep.mubr.f32.mxu0 %v178_v25  ;;  %673 = vmatprep.subr.bf16.mxu0 %v672_v20  ;;  %v195_v56 = vld [vmem:[%s809_s21 + $0x90] sm:$0xff]  ;;  %v181_v57 = vld [vmem:[%s809_s21 + $0x20] sm:$0xff]  ;;  %v180_v60 = vld [vmem:[%s809_s21 + $0x18] sm:$0xff] }
  0x13   : > { %703 = vmatprep.subr.bf16.mxu1 %v672_v20  ;;  %363 = vmatprep.mubr.f32.mxu1 %v196_v26  ;;  %v199_v59 = vld [vmem:[%s809_s21 + $0xb0] sm:$0xff]  ;;  %v198_v61 = vld [vmem:[%s809_s21 + $0xa8] sm:$0xff]  ;;  %v184_v62 = vld [vmem:[%s809_s21 + $0x38] sm:$0xff] }
  0x14   : > { %v179_v63 = vld [vmem:[%s809_s21 + $0x10] sm:$0xff]  ;;  %v182_v1 = vld [vmem:[%s809_s21 + $0x28] sm:$0xff]  ;;  %v185_v3 = vld [vmem:[%s809_s21 + $0x40] sm:$0xff] }
  0x15   : > { %675 = vmatpush3.bf16.msra.mxu0 %v674_v27  ;;  %711 = vmatpush3.bf16.msra.mxu1 %v674_v27  ;;  %v183_v0 = vld [vmem:[%s809_s21 + $0x30] sm:$0xff]  ;;  %v186_v4 = vld [vmem:[%s809_s21 + $0x48] sm:$0xff]  ;;  %v188_v5 = vld [vmem:[%s809_s21 + $0x58] sm:$0xff] }
  0x16   : > { %677 = vmatprep.subr.bf16.mxu0 %v676_v28  ;;  %704 = vmatprep.subr.bf16.mxu1 %v676_v28  ;;  %v187_v2 = vld [vmem:[%s809_s21 + $0x50] sm:$0xff]  ;;  %v190_v6 = vld [vmem:[%s809_s21 + $0x68] sm:$0xff]  ;;  %v189_v8 = vld [vmem:[%s809_s21 + $0x60] sm:$0xff] }
  0x17   : > { %v191_v7 = vld [vmem:[%s809_s21 + $0x70] sm:$0xff]  ;;  %v194_v9 = vld [vmem:[%s809_s21 + $0x88] sm:$0xff]  ;;  %v193_v10 = vld [vmem:[%s809_s21 + $0x80] sm:$0xff] }
  0x18   : > { %v197_v11 = vld [vmem:[%s809_s21 + $0xa0] sm:$0xff]  ;;  %v192_v12 = vld [vmem:[%s809_s21 + $0x78] sm:$0xff] }
  0x19   : > { %679 = vmatpush3.bf16.msra.mxu0 %v678_v33  ;;  %712 = vmatpush3.bf16.msra.mxu1 %v678_v33  ;;  %v200_v13 = vld [vmem:[%s809_s21 + $0xb8] sm:$0xff]  ;;  %v561_v24 = vld [vmem:[%s939_s2] ss:$0 sm:$0xff]  ;;  %s560_s21 = sshll.u32 %s942_s20, 3 }
  0x1a   : > { %681 = vmatprep.subr.bf16.mxu0 %v680_v34  ;;  %705 = vmatprep.subr.bf16.mxu1 %v680_v34  ;;  %s916_s22 = scalar_lea.vmem %s940_s3, %s560_s21 }
  0x1d   : > { %683 = vmatpush3.bf16.msra.mxu0 %v682_v39  ;;  %713 = vmatpush3.bf16.msra.mxu1 %v682_v39 }
  0x1e   : > { %685 = vmatprep.subr.bf16.mxu0 %v684_v40  ;;  %706 = vmatprep.subr.bf16.mxu1 %v684_v40 }
  0x21   : > { %687 = vmatpush3.bf16.msra.mxu0 %v686_v45  ;;  %714 = vmatpush3.bf16.msra.mxu1 %v686_v45 }
  0x22   : > { %689 = vmatprep.subr.bf16.mxu0 %v688_v46  ;;  %707 = vmatprep.subr.bf16.mxu1 %v688_v46 }
  0x25   : > { %691 = vmatpush3.bf16.msra.mxu0 %v690_v51  ;;  %715 = vmatpush3.bf16.msra.mxu1 %v690_v51 }
  0x26   : > { %693 = vmatprep.subr.bf16.mxu1 %v692_v52 }
  0x28   : > { %334 = vmatmul.mubr.f32.vlgmr.msra.gmra.mrb[0].mxu0 %v177_v55  ;;  %364 = vmatmul.mubr.f32.vlgmr.msra.gmra.mrb[0].mxu1 %v195_v56 }
  0x29   : > { %695 = vmatpush3.bf16.msra.mxu1 %v692_v52  ;;  %338 = vmatprep.mubr.f32.mxu0 %v181_v57 }
  0x2a   : > { %368 = vmatprep.mubr.f32.mxu1 %v199_v59  ;;  %697 = vmatprep.subr.bf16.mxu1 %v696_v58 }
  0x2c   : > { %339 = vmatmul.mubr.f32.gmra.mrb[2].mxu0 %v180_v60  ;;  %369 = vmatmul.mubr.f32.gmra.mrb[2].mxu1 %v198_v61 }
  0x2d   : > { %699 = vmatpush3.bf16.msra.mxu1 %v696_v58  ;;  %343 = vmatprep.mubr.f32.mxu0 %v184_v62 }
  0x2e   : > { %648 = vmatprep.mubr.msk.f32.mxu1 %vm244_vm0, %v179_v63 }
  0x30   : > { %344 = vmatmul.mubr.f32.gmra.mrb[4].mxu0 %v183_v0  ;;  %649 = vmatmul.mubr.msk.f32.vlgmr.msra.gmra.mrb[4].mxu1 %vm244_vm0, %v182_v1 }
  0x31   : > { %348 = vmatprep.mubr.f32.mxu0 %v187_v2  ;;  %651 = vmatprep.mubr.msk.f32.mxu1 %vm244_vm0, %v185_v3 }
  0x34   : > { %349 = vmatmul.mubr.f32.gmra.mrb[6].mxu0 %v186_v4  ;;  %652 = vmatmul.mubr.msk.f32.gmra.mrb[6].mxu1 %vm244_vm0, %v188_v5 }
  0x35   : > { %353 = vmatprep.mubr.f32.mxu0 %v190_v6  ;;  %654 = vmatprep.mubr.msk.f32.mxu1 %vm244_vm0, %v191_v7 }
  0x38   : > { %354 = vmatmul.mubr.f32.gmra.mrb[8].mxu0 %v189_v8  ;;  %655 = vmatmul.mubr.msk.f32.gmra.mrb[8].mxu1 %vm244_vm0, %v194_v9 }
  0x39   : > { %358 = vmatprep.mubr.f32.mxu0 %v193_v10  ;;  %657 = vmatprep.mubr.msk.f32.mxu1 %vm244_vm0, %v197_v11 }
  0x3c   : > { %359 = vmatmul.mubr.f32.gmra.mrb[10].mxu0 %v192_v12  ;;  %658 = vmatmul.mubr.msk.f32.gmra.mrb[10].mxu1 %vm244_vm0, %v200_v13 }
  0xfb   : > { %v604_v14 = vpop.f32.mrb[0].mxu0  ;;  %v622_v15 = vpop.f32.mrb[0].mxu1 }
  0xfc   : > { %v605_v16 = vpop.f32.mrb[1].mxu0  ;;  %v623_v17 = vpop.f32.mrb[1].mxu1 }
  0xfd   : > { %v606_v18 = vadd.f32 %v605_v16, %v604_v14  ;;  %v624_v19 = vadd.f32 %v623_v17, %v622_v15 }
  0xff   : > { %v607_v20 = vpop.f32.mrb[2].mxu0  ;;  %v625_v21 = vpop.f32.mrb[2].mxu1  ;;  %v336_v30 = vadd.f32 %v606_v18, %v561_v24  ;;  %v366_v58 = vadd.f32 %v624_v19, %v561_v24 }
 0x100   : > { %v608_v22 = vpop.f32.mrb[3].mxu0  ;;  %v626_v23 = vpop.f32.mrb[3].mxu1 }
 0x101   : > { %v609_v25 = vadd.f32 %v608_v22, %v607_v20  ;;  %v627_v26 = vadd.f32 %v626_v23, %v625_v21 }
 0x103   : > { %v610_v27 = vpop.f32.mrb[4].mxu0  ;;  %v341_v28 = vadd.f32 %v609_v25, %v561_v24  ;;  %v650_v29 = vpop.f32.mrb[4].mxu1  ;;  %v371_v53 = vadd.f32 %v627_v26, %v561_v24 }
 0x104   : > { %v611_v31 = vpop.f32.mrb[5].mxu0  ;;  %v440_v32 = vpop.f32.mrb[5].mxu1 }
 0x105   : > { %v446_v33 = vadd.f32 %v650_v29, %v341_v28  ;;  %v612_v34 = vadd.f32 %v611_v31, %v610_v27  ;;  %v441_v35 = vadd.f32 %v440_v32, %v336_v30 }
 0x107   : > { %v480_v36 = vmax.f32 %v446_v33, 0.0  ;;  %v479_v37 = vmax.f32 %v441_v35, 0.0  ;;  %v613_v38 = vpop.f32.mrb[6].mxu0  ;;  %v653_v39 = vpop.f32.mrb[6].mxu1  ;;  %v346_v40 = vadd.f32 %v612_v34, %v561_v24 }
 0x108   : > { %v614_v41 = vpop.f32.mrb[7].mxu0  ;;  %v450_v42 = vpop.f32.mrb[7].mxu1 }
 0x109   : > { %489 = vst.msk [vmem:[%s916_s22 + $0x8] sm:$0xff] %vm487_vm1, %v480_v36  ;;  %488 = vst.msk [vmem:[%s916_s22] sm:$0xff] %vm487_vm1, %v479_v37  ;;  %v615_v43 = vadd.f32 %v614_v41, %v613_v38  ;;  %v451_v44 = vadd.f32 %v450_v42, %v346_v40 }
 0x10b   : > { %v351_v45 = vadd.f32 %v615_v43, %v561_v24  ;;  %v481_v46 = vmax.f32 %v451_v44, 0.0  ;;  %v616_v47 = vpop.f32.mrb[8].mxu0  ;;  %v656_v48 = vpop.f32.mrb[8].mxu1 }
 0x10c   : > { %v617_v49 = vpop.f32.mrb[9].mxu0  ;;  %v460_v50 = vpop.f32.mrb[9].mxu1 }
 0x10d   : > { %v456_v51 = vadd.f32 %v653_v39, %v351_v45  ;;  %490 = vst.msk [vmem:[%s916_s22 + $0x10] sm:$0xff] %vm487_vm1, %v481_v46  ;;  %v618_v52 = vadd.f32 %v617_v49, %v616_v47 }
 0x10f   : > { %v482_v54 = vmax.f32 %v456_v51, 0.0  ;;  %v356_v55 = vadd.f32 %v618_v52, %v561_v24  ;;  %v619_v56 = vpop.f32.mrb[10].mxu0  ;;  %v659_v57 = vpop.f32.mrb[10].mxu1 }
 0x110   : > { %v476_v59 = vadd.f32 %v659_v57, %v371_v53  ;;  %v620_v60 = vpop.f32.mrb[11].mxu0  ;;  %v470_v61 = vpop.f32.mrb[11].mxu1 }
 0x111   : > { %491 = vst.msk [vmem:[%s916_s22 + $0x18] sm:$0xff] %vm487_vm1, %v482_v54  ;;  %v461_v62 = vadd.f32 %v460_v50, %v356_v55  ;;  %v621_v63 = vadd.f32 %v620_v60, %v619_v56  ;;  %v471_v0 = vadd.f32 %v470_v61, %v366_v58 }
 0x112   : > { %v486_v1 = vmax.f32 %v476_v59, 0.0 }
 0x113   : > { %v483_v2 = vmax.f32 %v461_v62, 0.0  ;;  %v361_v3 = vadd.f32 %v621_v63, %v561_v24  ;;  %v485_v4 = vmax.f32 %v471_v0, 0.0 }
 0x114   : > { %495 = vst.msk [vmem:[%s916_s22 + $0x38] sm:$0xff] %vm487_vm1, %v486_v1 }
 0x115   : > { %492 = vst.msk [vmem:[%s916_s22 + $0x20] sm:$0xff] %vm487_vm1, %v483_v2  ;;  %v466_v5 = vadd.f32 %v656_v48, %v361_v3  ;;  %494 = vst.msk [vmem:[%s916_s22 + $0x30] sm:$0xff] %vm487_vm1, %v485_v4 }
 0x117   : > { %v484_v6 = vmax.f32 %v466_v5, 0.0 }
 0x119   : > { %493 = vst.msk [vmem:[%s916_s22 + $0x28] sm:$0xff] %vm487_vm1, %v484_v6 }
 0x11a PF: > { %s13_s12 = sadd.s32 1, %s731_s12  }
 0x11b   : > { %p10_p4 = scmp.ge.s32.totalorder %s13_s12, 4  }
 0x11d   :  { %12 = sbr.rel (!%p10_p4) target bundleno = 1 (0x1), region = 62 }

// kernel: encoder_forward.7
= control target key start
LH: loop header
LB: loop body
LE: loop exit
PB: predicated region body
PF: predicated region fallthrough
CT: control target
= control target key end

     0   :  { %v3105_v47 = vmov 1983009808   ;;  %v559_v49 = vlaneseq  ;;  %vm3107_vm0 = vmmov 0   ;;  %vm1937_vm1 = vcmask 123904   ;;  %s4844_s1 = inlined_call_operand.vmem [shape: f32[4096,128], index: 1, kind: input, shape index: {}]   ;;  %s4845_s0 = inlined_call_operand.vmem [shape: f32[2,4096], index: 0, kind: input, shape index: {}]   ;;  %s4846_s2 = inlined_call_operand.vmem [shape: f32[1,128], index: 2, kind: input, shape index: {}]   ;;  %s4847_s3 = inlined_call_operand.vmem [shape: f32[128,16], index: 3, kind: input, shape index: {}]   ;;  %s4848_s4 = inlined_call_operand.vmem [shape: f32[1,16], index: 4, kind: input, shape index: {}]   ;;  %s4849_s5 = inlined_call_operand.vmem [shape: f32[2,16], index: 5, kind: output, shape index: {}]  }
   0x1   :  { %v44_v0 = vld [vmem:[%s4844_s1 + $0x80] sm:$0xff]  ;;  %v45_v1 = vld [vmem:[%s4844_s1 + $0x88] sm:$0xff]  ;;  %v46_v11 = vld [vmem:[%s4844_s1 + $0x90] sm:$0xff]  ;;  %v557_v48 = vunpack.c.l.s4 %v3105_v47 }
   0x2   :  { %v28_v2 = vld [vmem:[%s4844_s1] sm:$0xff]  ;;  %v2557_v3 = vpack.c.bf16 %v45_v1, %v44_v0  ;;  %v29_v4 = vld [vmem:[%s4844_s1 + $0x8] sm:$0xff]  ;;  %v47_v13 = vld [vmem:[%s4844_s1 + $0x98] sm:$0xff]  ;;  %v560_v0 = vshrl.u32 %v559_v49, 7 }
   0x3   :  { %v76_v5 = vld [vmem:[%s4844_s1 + $0x180] sm:$0xff]  ;;  %v77_v6 = vld [vmem:[%s4844_s1 + $0x188] sm:$0xff]  ;;  %v2559_v7 = vpack.c.bf16 %v29_v4, %v28_v2  ;;  %v30_v14 = vld [vmem:[%s4844_s1 + $0x10] sm:$0xff]  ;;  %v2561_v16 = vpack.c.bf16 %v47_v13, %v46_v11  ;;  %v558_v63 = vunpack.c.0.s8 %v557_v48 }
   0x4   :  { %v2589_v8 = vpack.c.bf16 %v77_v6, %v76_v5  ;;  %v60_v9 = vld [vmem:[%s4844_s1 + $0x100] sm:$0xff]  ;;  %v61_v10 = vld [vmem:[%s4844_s1 + $0x108] sm:$0xff]  ;;  %2558 = vmatprep.subr.bf16.mxu0 %v2557_v3  ;;  %v31_v15 = vld [vmem:[%s4844_s1 + $0x18] sm:$0xff] }
   0x5   :  { %v2591_v12 = vpack.c.bf16 %v61_v10, %v60_v9  ;;  %2560 = vmatpush3.bf16.msra.mxu0 %v2559_v7  ;;  %v2563_v17 = vpack.c.bf16 %v31_v15, %v30_v14  ;;  %v78_v18 = vld [vmem:[%s4844_s1 + $0x190] sm:$0xff]  ;;  %v79_v19 = vld [vmem:[%s4844_s1 + $0x198] sm:$0xff]  ;;  %v48_v23 = vld [vmem:[%s4844_s1 + $0xa0] sm:$0xff]  ;;  %v3289_v13 = vsub.s32 %v558_v63, %v560_v0 }
   0x6   :  { %2590 = vmatprep.subr.bf16.mxu1 %v2589_v8  ;;  %v62_v20 = vld [vmem:[%s4844_s1 + $0x110] sm:$0xff]  ;;  %v2593_v21 = vpack.c.bf16 %v79_v19, %v78_v18  ;;  %v63_v22 = vld [vmem:[%s4844_s1 + $0x118] sm:$0xff]  ;;  %v49_v24 = vld [vmem:[%s4844_s1 + $0xa8] sm:$0xff]  ;;  %2562 = vmatprep.subr.bf16.mxu0 %v2561_v16 }
   0x7   :  { %2592 = vmatpush3.bf16.msra.mxu1 %v2591_v12  ;;  %v2595_v25 = vpack.c.bf16 %v63_v22, %v62_v20  ;;  %v2565_v26 = vpack.c.bf16 %v49_v24, %v48_v23  ;;  %v32_v27 = vld [vmem:[%s4844_s1 + $0x20] sm:$0xff]  ;;  %v33_v28 = vld [vmem:[%s4844_s1 + $0x28] sm:$0xff]  ;;  %v50_v35 = vld [vmem:[%s4844_s1 + $0xb0] sm:$0xff] }
   0x8   :  { %v80_v29 = vld [vmem:[%s4844_s1 + $0x1a0] sm:$0xff]  ;;  %2594 = vmatprep.subr.bf16.mxu1 %v2593_v21  ;;  %v81_v30 = vld [vmem:[%s4844_s1 + $0x1a8] sm:$0xff]  ;;  %v2567_v33 = vpack.c.bf16 %v33_v28, %v32_v27  ;;  %v51_v36 = vld [vmem:[%s4844_s1 + $0xb8] sm:$0xff] }
   0x9   :  { %v64_v31 = vld [vmem:[%s4844_s1 + $0x120] sm:$0xff]  ;;  %v65_v32 = vld [vmem:[%s4844_s1 + $0x128] sm:$0xff]  ;;  %2564 = vmatpush3.bf16.msra.mxu0 %v2563_v17  ;;  %v2597_v34 = vpack.c.bf16 %v81_v30, %v80_v29  ;;  %v34_v37 = vld [vmem:[%s4844_s1 + $0x30] sm:$0xff]  ;;  %v2569_v39 = vpack.c.bf16 %v51_v36, %v50_v35 }
   0xa   :  { %2566 = vmatprep.subr.bf16.mxu0 %v2565_v26  ;;  %v2599_v38 = vpack.c.bf16 %v65_v32, %v64_v31  ;;  %v35_v40 = vld [vmem:[%s4844_s1 + $0x38] sm:$0xff]  ;;  %v82_v41 = vld [vmem:[%s4844_s1 + $0x1b0] sm:$0xff]  ;;  %v52_v46 = vld [vmem:[%s4844_s1 + $0xc0] sm:$0xff] }
   0xb   :  { %2596 = vmatpush3.bf16.msra.mxu1 %v2595_v25  ;;  %v83_v42 = vld [vmem:[%s4844_s1 + $0x1b8] sm:$0xff]  ;;  %v66_v44 = vld [vmem:[%s4844_s1 + $0x130] sm:$0xff]  ;;  %v53_v50 = vld [vmem:[%s4844_s1 + $0xc8] sm:$0xff]  ;;  %v2571_v51 = vpack.c.bf16 %v35_v40, %v34_v37 }
   0xc   :  { %2598 = vmatprep.subr.bf16.mxu1 %v2597_v34  ;;  %v2601_v43 = vpack.c.bf16 %v83_v42, %v82_v41  ;;  %v67_v45 = vld [vmem:[%s4844_s1 + $0x138] sm:$0xff]  ;;  %v84_v52 = vld [vmem:[%s4844_s1 + $0x1c0] sm:$0xff]  ;;  %v85_v53 = vld [vmem:[%s4844_s1 + $0x1c8] sm:$0xff]  ;;  %v2573_v55 = vpack.c.bf16 %v53_v50, %v52_v46 }
   0xd   :  { %2568 = vmatpush3.bf16.msra.mxu0 %v2567_v33  ;;  %v2603_v54 = vpack.c.bf16 %v67_v45, %v66_v44  ;;  %v36_v56 = vld [vmem:[%s4844_s1 + $0x40] sm:$0xff]  ;;  %v37_v57 = vld [vmem:[%s4844_s1 + $0x48] sm:$0xff]  ;;  %v2605_v59 = vpack.c.bf16 %v85_v53, %v84_v52  ;;  %v54_v61 = vld [vmem:[%s4844_s1 + $0xd0] sm:$0xff] }
   0xe   :  { %2570 = vmatprep.subr.bf16.mxu0 %v2569_v39  ;;  %v68_v58 = vld [vmem:[%s4844_s1 + $0x140] sm:$0xff]  ;;  %v69_v60 = vld [vmem:[%s4844_s1 + $0x148] sm:$0xff]  ;;  %v55_v62 = vld [vmem:[%s4844_s1 + $0xd8] sm:$0xff]  ;;  %v2575_v3 = vpack.c.bf16 %v37_v57, %v36_v56 }
   0xf   :  { %2600 = vmatpush3.bf16.msra.mxu1 %v2599_v38  ;;  %v86_v1 = vld [vmem:[%s4844_s1 + $0x1d0] sm:$0xff]  ;;  %v87_v2 = vld [vmem:[%s4844_s1 + $0x1d8] sm:$0xff]  ;;  %v2607_v4 = vpack.c.bf16 %v69_v60, %v68_v58  ;;  %v2577_v5 = vpack.c.bf16 %v55_v62, %v54_v61  ;;  %v56_v11 = vld [vmem:[%s4844_s1 + $0xe0] sm:$0xff] }
  0x10   :  { %2602 = vmatprep.subr.bf16.mxu1 %v2601_v43  ;;  %v38_v6 = vld [vmem:[%s4844_s1 + $0x50] sm:$0xff]  ;;  %v39_v7 = vld [vmem:[%s4844_s1 + $0x58] sm:$0xff]  ;;  %v2609_v9 = vpack.c.bf16 %v87_v2, %v86_v1  ;;  %v57_v12 = vld [vmem:[%s4844_s1 + $0xe8] sm:$0xff] }
  0x11   :  { %2572 = vmatpush3.bf16.msra.mxu0 %v2571_v51  ;;  %v70_v8 = vld [vmem:[%s4844_s1 + $0x150] sm:$0xff]  ;;  %v71_v10 = vld [vmem:[%s4844_s1 + $0x158] sm:$0xff]  ;;  %v88_v14 = vld [vmem:[%s4844_s1 + $0x1e0] sm:$0xff]  ;;  %v2579_v16 = vpack.c.bf16 %v39_v7, %v38_v6  ;;  %v2581_v19 = vpack.c.bf16 %v57_v12, %v56_v11 }
  0x12   :  { %2574 = vmatprep.subr.bf16.mxu0 %v2573_v55  ;;  %v89_v15 = vld [vmem:[%s4844_s1 + $0x1e8] sm:$0xff]  ;;  %v40_v17 = vld [vmem:[%s4844_s1 + $0x60] sm:$0xff]  ;;  %v2611_v18 = vpack.c.bf16 %v71_v10, %v70_v8  ;;  %v58_v25 = vld [vmem:[%s4844_s1 + $0xf0] sm:$0xff] }
  0x13   :  { %2604 = vmatpush3.bf16.msra.mxu1 %v2603_v54  ;;  %v41_v20 = vld [vmem:[%s4844_s1 + $0x68] sm:$0xff]  ;;  %v72_v21 = vld [vmem:[%s4844_s1 + $0x160] sm:$0xff]  ;;  %v2613_v23 = vpack.c.bf16 %v89_v15, %v88_v14  ;;  %v59_v26 = vld [vmem:[%s4844_s1 + $0xf8] sm:$0xff] }
  0x14   :  { %2606 = vmatprep.subr.bf16.mxu1 %v2605_v59  ;;  %v20_v22 = vld [vmem:[%s4845_s0] sm:$0xff]  ;;  %v73_v24 = vld [vmem:[%s4844_s1 + $0x168] sm:$0xff]  ;;  %v90_v29 = vld [vmem:[%s4844_s1 + $0x1f0] sm:$0xff]  ;;  %v2583_v31 = vpack.c.bf16 %v41_v20, %v40_v17  ;;  %v2585_v35 = vpack.c.bf16 %v59_v26, %v58_v25 }
  0x15   :  { %2576 = vmatpush3.bf16.msra.mxu0 %v2575_v3  ;;  %v562_v27 = vrot.slane %v20_v22, %v3289_v13  ;;  %v555_v28 = vcombine.high %v20_v22, %v20_v22  ;;  %v91_v30 = vld [vmem:[%s4844_s1 + $0x1f8] sm:$0xff]  ;;  %v2615_v34 = vpack.c.bf16 %v73_v24, %v72_v21  ;;  %v42_v36 = vld [vmem:[%s4844_s1 + $0x70] sm:$0xff]  ;;  %v108_v41 = vld [vmem:[%s4844_s1 + $0x280] sm:$0xff] }
  0x16   :  { %2578 = vmatprep.subr.bf16.mxu0 %v2577_v5  ;;  %v43_v37 = vld [vmem:[%s4844_s1 + $0x78] sm:$0xff]  ;;  %v74_v38 = vld [vmem:[%s4844_s1 + $0x170] sm:$0xff]  ;;  %v2617_v39 = vpack.c.bf16 %v91_v30, %v90_v29  ;;  %v109_v42 = vld [vmem:[%s4844_s1 + $0x288] sm:$0xff] }
  0x17   :  { %2608 = vmatpush3.bf16.msra.mxu1 %v2607_v4  ;;  %v570_v32 = vcombine.high %v562_v27, %v562_v27  ;;  %v569_v33 = vrot.slane %v555_v28, %v3289_v13  ;;  %v75_v40 = vld [vmem:[%s4844_s1 + $0x178] sm:$0xff]  ;;  %v140_v44 = vld [vmem:[%s4844_s1 + $0x380] sm:$0xff]  ;;  %v141_v45 = vld [vmem:[%s4844_s1 + $0x388] sm:$0xff]  ;;  %v2587_v46 = vpack.c.bf16 %v43_v37, %v42_v36  ;;  %v2621_v48 = vpack.c.bf16 %v109_v42, %v108_v41 }
  0x18   :  { %2610 = vmatprep.subr.bf16.mxu1 %v2609_v9  ;;  %v2619_v47 = vpack.c.bf16 %v75_v40, %v74_v38  ;;  %v92_v49 = vld [vmem:[%s4844_s1 + $0x200] sm:$0xff]  ;;  %v93_v50 = vld [vmem:[%s4844_s1 + $0x208] sm:$0xff]  ;;  %v2653_v52 = vpack.c.bf16 %v141_v45, %v140_v44  ;;  %v110_v54 = vld [vmem:[%s4844_s1 + $0x290] sm:$0xff] }
  0x19   :  { %2580 = vmatpush3.bf16.msra.mxu0 %v2579_v16  ;;  %787 = vmatprep.mubr.f32.mxu0 %v570_v32  ;;  %v571_v43 = vcombine.high %v569_v33, %v569_v33  ;;  %v124_v51 = vld [vmem:[%s4844_s1 + $0x300] sm:$0xff]  ;;  %v125_v53 = vld [vmem:[%s4844_s1 + $0x308] sm:$0xff]  ;;  %v111_v55 = vld [vmem:[%s4844_s1 + $0x298] sm:$0xff]  ;;  %v2623_v58 = vpack.c.bf16 %v93_v50, %v92_v49 }
  0x1a   :  { %2582 = vmatprep.subr.bf16.mxu0 %v2581_v19  ;;  %v142_v56 = vld [vmem:[%s4844_s1 + $0x390] sm:$0xff]  ;;  %v143_v57 = vld [vmem:[%s4844_s1 + $0x398] sm:$0xff]  ;;  %v2655_v59 = vpack.c.bf16 %v125_v53, %v124_v51  ;;  %v2625_v60 = vpack.c.bf16 %v111_v55, %v110_v54  ;;  %v112_v2 = vld [vmem:[%s4844_s1 + $0x2a0] sm:$0xff] }
  0x1b   :  { %2612 = vmatpush3.bf16.msra.mxu1 %v2611_v18  ;;  %857 = vmatprep.mubr.f32.mxu1 %v571_v43  ;;  %v94_v61 = vld [vmem:[%s4844_s1 + $0x210] sm:$0xff]  ;;  %v95_v62 = vld [vmem:[%s4844_s1 + $0x218] sm:$0xff]  ;;  %v2657_v0 = vpack.c.bf16 %v143_v57, %v142_v56  ;;  %v113_v3 = vld [vmem:[%s4844_s1 + $0x2a8] sm:$0xff] }
  0x1c   :  { %2614 = vmatprep.subr.bf16.mxu1 %v2613_v23  ;;  %v126_v63 = vld [vmem:[%s4844_s1 + $0x310] sm:$0xff]  ;;  %v127_v1 = vld [vmem:[%s4844_s1 + $0x318] sm:$0xff]  ;;  %v144_v4 = vld [vmem:[%s4844_s1 + $0x3a0] sm:$0xff]  ;;  %v2627_v6 = vpack.c.bf16 %v95_v62, %v94_v61  ;;  %v2629_v8 = vpack.c.bf16 %v113_v3, %v112_v2 }
  0x1d   :  { %2584 = vmatpush3.bf16.msra.mxu0 %v2583_v31  ;;  %v145_v5 = vld [vmem:[%s4844_s1 + $0x3a8] sm:$0xff]  ;;  %v2659_v7 = vpack.c.bf16 %v127_v1, %v126_v63  ;;  %v96_v9 = vld [vmem:[%s4844_s1 + $0x220] sm:$0xff]  ;;  %v114_v15 = vld [vmem:[%s4844_s1 + $0x2b0] sm:$0xff] }
  0x1e   :  { %2586 = vmatprep.subr.bf16.mxu0 %v2585_v35  ;;  %v97_v10 = vld [vmem:[%s4844_s1 + $0x228] sm:$0xff]  ;;  %v128_v11 = vld [vmem:[%s4844_s1 + $0x320] sm:$0xff]  ;;  %v2661_v12 = vpack.c.bf16 %v145_v5, %v144_v4  ;;  %v115_v16 = vld [vmem:[%s4844_s1 + $0x2b8] sm:$0xff] }
  0x1f   :  { %2616 = vmatpush3.bf16.msra.mxu1 %v2615_v34  ;;  %v129_v14 = vld [vmem:[%s4844_s1 + $0x328] sm:$0xff]  ;;  %v146_v17 = vld [vmem:[%s4844_s1 + $0x3b0] sm:$0xff]  ;;  %v147_v18 = vld [vmem:[%s4844_s1 + $0x3b8] sm:$0xff]  ;;  %v2631_v19 = vpack.c.bf16 %v97_v10, %v96_v9  ;;  %v2633_v21 = vpack.c.bf16 %v115_v16, %v114_v15 }
  0x20   :  { %2618 = vmatprep.subr.bf16.mxu1 %v2617_v39  ;;  %v2663_v20 = vpack.c.bf16 %v129_v14, %v128_v11  ;;  %v98_v22 = vld [vmem:[%s4844_s1 + $0x230] sm:$0xff]  ;;  %v99_v23 = vld [vmem:[%s4844_s1 + $0x238] sm:$0xff]  ;;  %v2665_v25 = vpack.c.bf16 %v147_v18, %v146_v17  ;;  %v117_v28 = vld [vmem:[%s4844_s1 + $0x2c8] sm:$0xff] }
  0x21   :  { %2588 = vmatpush3.bf16.msra.mxu0 %v2587_v46  ;;  %v130_v24 = vld [vmem:[%s4844_s1 + $0x330] sm:$0xff]  ;;  %v131_v26 = vld [vmem:[%s4844_s1 + $0x338] sm:$0xff]  ;;  %v148_v29 = vld [vmem:[%s4844_s1 + $0x3c0] sm:$0xff]  ;;  %v2635_v32 = vpack.c.bf16 %v99_v23, %v98_v22 }
  0x22   :  { %2622 = vmatprep.subr.bf16.mxu0 %v2621_v48  ;;  %v149_v30 = vld [vmem:[%s4844_s1 + $0x3c8] sm:$0xff]  ;;  %v2667_v35 = vpack.c.bf16 %v131_v26, %v130_v24  ;;  %v100_v37 = vld [vmem:[%s4844_s1 + $0x240] sm:$0xff]  ;;  %v118_v42 = vld [vmem:[%s4844_s1 + $0x2d0] sm:$0xff] }
  0x23   :  { %2620 = vmatpush3.bf16.msra.mxu1 %v2619_v47  ;;  %v21_v31 = vld [vmem:[%s4845_s0 + $0x8] sm:$0xff]  ;;  %v132_v39 = vld [vmem:[%s4844_s1 + $0x340] sm:$0xff]  ;;  %v2669_v40 = vpack.c.bf16 %v149_v30, %v148_v29  ;;  %v119_v43 = vld [vmem:[%s4844_s1 + $0x2d8] sm:$0xff] }
  0x24   :  { %2654 = vmatprep.subr.bf16.mxu1 %v2653_v52  ;;  %788 = vmatmul.mubr.f32.vlgmr.msra.gmra.mrb[0].mxu0 %v562_v27  ;;  %v116_v27 = vld [vmem:[%s4844_s1 + $0x2c0] sm:$0xff]  ;;  %v572_v34 = vcombine.high %v21_v31, %v21_v31  ;;  %v101_v38 = vld [vmem:[%s4844_s1 + $0x248] sm:$0xff]  ;;  %v150_v46 = vld [vmem:[%s4844_s1 + $0x3d0] sm:$0xff]  ;;  %v2641_v51 = vpack.c.bf16 %v119_v43, %v118_v42 }
  0x25   :  { %2624 = vmatpush3.bf16.msra.mxu0 %v2623_v58  ;;  %v2637_v36 = vpack.c.bf16 %v117_v28, %v116_v27  ;;  %v133_v41 = vld [vmem:[%s4844_s1 + $0x348] sm:$0xff]  ;;  %v151_v47 = vld [vmem:[%s4844_s1 + $0x3d8] sm:$0xff]  ;;  %v2639_v48 = vpack.c.bf16 %v101_v38, %v100_v37  ;;  %v102_v52 = vld [vmem:[%s4844_s1 + $0x250] sm:$0xff] }
  0x26   :  { %858 = vmatmul.mubr.f32.vlgmr.msra.gmra.mrb[0].mxu1 %v569_v33  ;;  %2626 = vmatprep.subr.bf16.mxu0 %v2625_v60  ;;  %v3450_v33 = vrot.slane %v21_v31, %v3289_v13  ;;  %v3473_v45 = vrot.slane %v572_v34, %v3289_v13  ;;  %v2671_v50 = vpack.c.bf16 %v133_v41, %v132_v39  ;;  %v103_v53 = vld [vmem:[%s4844_s1 + $0x258] sm:$0xff]  ;;  %v134_v54 = vld [vmem:[%s4844_s1 + $0x350] sm:$0xff]  ;;  %v120_v57 = vld [vmem:[%s4844_s1 + $0x2e0] sm:$0xff] }
  0x27   :  { %2656 = vmatpush3.bf16.msra.mxu1 %v2655_v59  ;;  %v2673_v55 = vpack.c.bf16 %v151_v47, %v150_v46  ;;  %v135_v56 = vld [vmem:[%s4844_s1 + $0x358] sm:$0xff]  ;;  %v121_v58 = vld [vmem:[%s4844_s1 + $0x2e8] sm:$0xff]  ;;  %v152_v59 = vld [vmem:[%s4844_s1 + $0x3e0] sm:$0xff]  ;;  %v2643_v61 = vpack.c.bf16 %v103_v53, %v102_v52 }
  0x28   :  { %2658 = vmatprep.subr.bf16.mxu1 %v2657_v0  ;;  %v587_v44 = vcombine.high %v3450_v33, %v3450_v33  ;;  %v588_v49 = vcombine.high %v3473_v45, %v3473_v45  ;;  %v153_v60 = vld [vmem:[%s4844_s1 + $0x3e8] sm:$0xff]  ;;  %v2675_v62 = vpack.c.bf16 %v135_v56, %v134_v54  ;;  %v2645_v63 = vpack.c.bf16 %v121_v58, %v120_v57  ;;  %v104_v0 = vld [vmem:[%s4844_s1 + $0x260] sm:$0xff]  ;;  %v122_v5 = vld [vmem:[%s4844_s1 + $0x2f0] sm:$0xff] }
  0x29   :  { %2628 = vmatpush3.bf16.msra.mxu0 %v2627_v6  ;;  %v105_v1 = vld [vmem:[%s4844_s1 + $0x268] sm:$0xff]  ;;  %v136_v2 = vld [vmem:[%s4844_s1 + $0x360] sm:$0xff]  ;;  %v2677_v3 = vpack.c.bf16 %v153_v60, %v152_v59  ;;  %v123_v6 = vld [vmem:[%s4844_s1 + $0x2f8] sm:$0xff] }
  0x2a   :  { %2630 = vmatprep.subr.bf16.mxu0 %v2629_v8  ;;  %927 = vmatprep.mubr.f32.mxu0 %v587_v44  ;;  %v137_v4 = vld [vmem:[%s4844_s1 + $0x368] sm:$0xff]  ;;  %v155_v8 = vld [vmem:[%s4844_s1 + $0x3f8] sm:$0xff]  ;;  %v2647_v9 = vpack.c.bf16 %v105_v1, %v104_v0  ;;  %v2649_v11 = vpack.c.bf16 %v123_v6, %v122_v5  ;;  %v138_v15 = vld [vmem:[%s4844_s1 + $0x370] sm:$0xff] }
  0x2b   :  { %2660 = vmatpush3.bf16.msra.mxu1 %v2659_v7  ;;  %997 = vmatprep.mubr.f32.mxu1 %v588_v49  ;;  %v154_v7 = vld [vmem:[%s4844_s1 + $0x3f0] sm:$0xff]  ;;  %v2679_v10 = vpack.c.bf16 %v137_v4, %v136_v2  ;;  %v107_v14 = vld [vmem:[%s4844_s1 + $0x278] sm:$0xff]  ;;  %v172_v18 = vld [vmem:[%s4844_s1 + $0x480] sm:$0xff] }
  0x2c   :  { %2662 = vmatprep.subr.bf16.mxu1 %v2661_v12  ;;  %v106_v12 = vld [vmem:[%s4844_s1 + $0x270] sm:$0xff]  ;;  %v2681_v16 = vpack.c.bf16 %v155_v8, %v154_v7  ;;  %v139_v17 = vld [vmem:[%s4844_s1 + $0x378] sm:$0xff]  ;;  %v156_v23 = vld [vmem:[%s4844_s1 + $0x400] sm:$0xff] }
  0x2d   :  { %2632 = vmatpush3.bf16.msra.mxu0 %v2631_v19  ;;  %v173_v19 = vld [vmem:[%s4844_s1 + $0x488] sm:$0xff]  ;;  %v2651_v22 = vpack.c.bf16 %v107_v14, %v106_v12  ;;  %v2683_v24 = vpack.c.bf16 %v139_v17, %v138_v15  ;;  %v188_v27 = vld [vmem:[%s4844_s1 + $0x500] sm:$0xff]  ;;  %v174_v30 = vld [vmem:[%s4844_s1 + $0x490] sm:$0xff] }
  0x2e   :  { %2634 = vmatprep.subr.bf16.mxu0 %v2633_v21  ;;  %v205_v21 = vld [vmem:[%s4844_s1 + $0x588] sm:$0xff]  ;;  %v175_v31 = vld [vmem:[%s4844_s1 + $0x498] sm:$0xff]  ;;  %v22_v37 = vld [vmem:[%s4845_s0 + $0x10] sm:$0xff] }
  0x2f   :  { %2664 = vmatpush3.bf16.msra.mxu1 %v2663_v20  ;;  %v204_v20 = vld [vmem:[%s4844_s1 + $0x580] sm:$0xff]  ;;  %v157_v26 = vld [vmem:[%s4844_s1 + $0x408] sm:$0xff]  ;;  %v207_v34 = vld [vmem:[%s4844_s1 + $0x598] sm:$0xff]  ;;  %v2689_v38 = vpack.c.bf16 %v175_v31, %v174_v30  ;;  %v3592_v42 = vrot.slane %v22_v37, %v3289_v13  ;;  %v589_v43 = vcombine.high %v22_v37, %v22_v37 }
  0x30   :  { %2666 = vmatprep.subr.bf16.mxu1 %v2665_v25  ;;  %v2685_v25 = vpack.c.bf16 %v173_v19, %v172_v18  ;;  %v189_v28 = vld [vmem:[%s4844_s1 + $0x508] sm:$0xff]  ;;  %v2717_v29 = vpack.c.bf16 %v205_v21, %v204_v20  ;;  %v158_v39 = vld [vmem:[%s4844_s1 + $0x410] sm:$0xff]  ;;  %v191_v46 = vld [vmem:[%s4844_s1 + $0x518] sm:$0xff] }
  0x31   :  { %2636 = vmatpush3.bf16.msra.mxu0 %v2635_v32  ;;  %v206_v32 = vld [vmem:[%s4844_s1 + $0x590] sm:$0xff]  ;;  %v176_v47 = vld [vmem:[%s4844_s1 + $0x4a0] sm:$0xff]  ;;  %v3613_v52 = vrot.slane %v589_v43, %v3289_v13  ;;  %v161_v56 = vld [vmem:[%s4844_s1 + $0x428] sm:$0xff] }
  0x32   :  { %2638 = vmatprep.subr.bf16.mxu0 %v2637_v36  ;;  %v2719_v36 = vpack.c.bf16 %v189_v28, %v188_v27  ;;  %v190_v41 = vld [vmem:[%s4844_s1 + $0x510] sm:$0xff]  ;;  %v2721_v44 = vpack.c.bf16 %v207_v34, %v206_v32  ;;  %v208_v49 = vld [vmem:[%s4844_s1 + $0x5a0] sm:$0xff]  ;;  %v193_v59 = vld [vmem:[%s4844_s1 + $0x528] sm:$0xff] }
  0x33   :  { %2668 = vmatpush3.bf16.msra.mxu1 %v2667_v35  ;;  %v2687_v35 = vpack.c.bf16 %v157_v26, %v156_v23  ;;  %v192_v57 = vld [vmem:[%s4844_s1 + $0x520] sm:$0xff]  ;;  %v178_v60 = vld [vmem:[%s4844_s1 + $0x4b0] sm:$0xff]  ;;  %v163_v4 = vld [vmem:[%s4844_s1 + $0x438] sm:$0xff] }
  0x34   :  { %2670 = vmatprep.subr.bf16.mxu1 %v2669_v40  ;;  %v159_v40 = vld [vmem:[%s4844_s1 + $0x418] sm:$0xff]  ;;  %v2727_v1 = vpack.c.bf16 %v193_v59, %v192_v57  ;;  %v194_v5 = vld [vmem:[%s4844_s1 + $0x530] sm:$0xff]  ;;  %v180_v8 = vld [vmem:[%s4844_s1 + $0x4c0] sm:$0xff] }
  0x35   :  { %2640 = vmatpush3.bf16.msra.mxu0 %v2639_v48  ;;  %v177_v48 = vld [vmem:[%s4844_s1 + $0x4a8] sm:$0xff]  ;;  %v2691_v53 = vpack.c.bf16 %v159_v40, %v158_v39  ;;  %v195_v7 = vld [vmem:[%s4844_s1 + $0x538] sm:$0xff]  ;;  %v196_v18 = vld [vmem:[%s4844_s1 + $0x540] sm:$0xff] }
  0x36   :  { %2642 = vmatprep.subr.bf16.mxu0 %v2641_v51  ;;  %v604_v51 = vcombine.high %v3592_v42, %v3592_v42  ;;  %v2693_v54 = vpack.c.bf16 %v177_v48, %v176_v47  ;;  %v2731_v14 = vpack.c.bf16 %v195_v7, %v194_v5  ;;  %v165_v17 = vld [vmem:[%s4844_s1 + $0x448] sm:$0xff]  ;;  %v182_v21 = vld [vmem:[%s4844_s1 + $0x4d0] sm:$0xff]  ;;  %v199_v32 = vld [vmem:[%s4844_s1 + $0x558] sm:$0xff] }
  0x37   :  { %2672 = vmatpush3.bf16.msra.mxu1 %v2671_v50  ;;  %v209_v50 = vld [vmem:[%s4844_s1 + $0x5a8] sm:$0xff]  ;;  %v214_v23 = vld [vmem:[%s4844_s1 + $0x5d0] sm:$0xff]  ;;  %v184_v34 = vld [vmem:[%s4844_s1 + $0x4e0] sm:$0xff] }
  0x38   :  { %2674 = vmatprep.subr.bf16.mxu1 %v2673_v55  ;;  %v160_v55 = vld [vmem:[%s4844_s1 + $0x420] sm:$0xff]  ;;  %v2725_v58 = vpack.c.bf16 %v209_v50, %v208_v49  ;;  %v197_v20 = vld [vmem:[%s4844_s1 + $0x548] sm:$0xff]  ;;  %v166_v28 = vld [vmem:[%s4844_s1 + $0x450] sm:$0xff] }
  0x39   :  { %2644 = vmatpush3.bf16.msra.mxu0 %v2643_v61  ;;  %v179_v61 = vld [vmem:[%s4844_s1 + $0x4b8] sm:$0xff]  ;;  %v2695_v0 = vpack.c.bf16 %v161_v56, %v160_v55  ;;  %v2735_v26 = vpack.c.bf16 %v197_v20, %v196_v18  ;;  %v198_v30 = vld [vmem:[%s4844_s1 + $0x550] sm:$0xff]  ;;  %v217_v37 = vld [vmem:[%s4844_s1 + $0x5e8] sm:$0xff] }
  0x3a   :  { %2646 = vmatprep.subr.bf16.mxu0 %v2645_v63  ;;  %v211_v63 = vld [vmem:[%s4844_s1 + $0x5b8] sm:$0xff]  ;;  %v2697_v2 = vpack.c.bf16 %v179_v61, %v178_v60  ;;  %v2739_v39 = vpack.c.bf16 %v199_v32, %v198_v30  ;;  %v169_v43 = vld [vmem:[%s4844_s1 + $0x468] sm:$0xff]  ;;  %v186_v48 = vld [vmem:[%s4844_s1 + $0x4f0] sm:$0xff] }
  0x3b   :  { %2676 = vmatpush3.bf16.msra.mxu1 %v2675_v62  ;;  %v210_v62 = vld [vmem:[%s4844_s1 + $0x5b0] sm:$0xff]  ;;  %v201_v47 = vld [vmem:[%s4844_s1 + $0x568] sm:$0xff]  ;;  %v187_v49 = vld [vmem:[%s4844_s1 + $0x4f8] sm:$0xff] }
  0x3c   :  { %2678 = vmatprep.subr.bf16.mxu1 %v2677_v3  ;;  %v162_v3 = vld [vmem:[%s4844_s1 + $0x430] sm:$0xff]  ;;  %v2729_v6 = vpack.c.bf16 %v211_v63, %v210_v62  ;;  %v2713_v55 = vpack.c.bf16 %v187_v49, %v186_v48  ;;  %v171_v57 = vld [vmem:[%s4844_s1 + $0x478] sm:$0xff]  ;;  %v236_v60 = vld [vmem:[%s4844_s1 + $0x680] sm:$0xff] }
  0x3d   :  { %2648 = vmatpush3.bf16.msra.mxu0 %v2647_v9  ;;  %v181_v9 = vld [vmem:[%s4844_s1 + $0x4c8] sm:$0xff]  ;;  %v2699_v12 = vpack.c.bf16 %v163_v4, %v162_v3  ;;  %v218_v50 = vld [vmem:[%s4844_s1 + $0x5f0] sm:$0xff]  ;;  %v203_v59 = vld [vmem:[%s4844_s1 + $0x578] sm:$0xff] }
  0x3e   :  { %2650 = vmatprep.subr.bf16.mxu0 %v2649_v11  ;;  %v213_v11 = vld [vmem:[%s4844_s1 + $0x5c8] sm:$0xff]  ;;  %v2701_v15 = vpack.c.bf16 %v181_v9, %v180_v8  ;;  %v170_v56 = vld [vmem:[%s4844_s1 + $0x470] sm:$0xff]  ;;  %v268_v62 = vld [vmem:[%s4844_s1 + $0x780] sm:$0xff] }
  0x3f   :  { %2680 = vmatpush3.bf16.msra.mxu1 %v2679_v10  ;;  %v212_v10 = vld [vmem:[%s4844_s1 + $0x5c0] sm:$0xff]  ;;  %v237_v61 = vld [vmem:[%s4844_s1 + $0x688] sm:$0xff]  ;;  %v238_v9 = vld [vmem:[%s4844_s1 + $0x690] sm:$0xff] }
  0x40   :  { %2682 = vmatprep.subr.bf16.mxu1 %v2681_v16  ;;  %v164_v16 = vld [vmem:[%s4844_s1 + $0x440] sm:$0xff]  ;;  %v2733_v19 = vpack.c.bf16 %v213_v11, %v212_v10  ;;  %v269_v63 = vld [vmem:[%s4844_s1 + $0x788] sm:$0xff]  ;;  %v2749_v3 = vpack.c.bf16 %v237_v61, %v236_v60  ;;  %v239_v10 = vld [vmem:[%s4844_s1 + $0x698] sm:$0xff] }
  0x41   :  { %2652 = vmatpush3.bf16.msra.mxu0 %v2651_v22  ;;  %v183_v22 = vld [vmem:[%s4844_s1 + $0x4d8] sm:$0xff]  ;;  %v220_v4 = vld [vmem:[%s4844_s1 + $0x600] sm:$0xff]  ;;  %v221_v5 = vld [vmem:[%s4844_s1 + $0x608] sm:$0xff]  ;;  %v2781_v7 = vpack.c.bf16 %v269_v63, %v268_v62  ;;  %v2753_v18 = vpack.c.bf16 %v239_v10, %v238_v9 }
  0x42   :  { %2686 = vmatprep.subr.bf16.mxu0 %v2685_v25  ;;  %v2703_v25 = vpack.c.bf16 %v165_v17, %v164_v16  ;;  %v2705_v27 = vpack.c.bf16 %v183_v22, %v182_v21  ;;  %v253_v8 = vld [vmem:[%s4844_s1 + $0x708] sm:$0xff]  ;;  %v2751_v16 = vpack.c.bf16 %v221_v5, %v220_v4  ;;  %v223_v20 = vld [vmem:[%s4844_s1 + $0x618] sm:$0xff]  ;;  %v254_v21 = vld [vmem:[%s4844_s1 + $0x710] sm:$0xff] }
  0x43   :  { %2684 = vmatpush3.bf16.msra.mxu1 %v2683_v24  ;;  %v215_v24 = vld [vmem:[%s4844_s1 + $0x5d8] sm:$0xff]  ;;  %v258_v48 = vld [vmem:[%s4844_s1 + $0x730] sm:$0xff]  ;;  %v261_v61 = vld [vmem:[%s4844_s1 + $0x748] sm:$0xff] }
  0x44   :  { %2718 = vmatprep.subr.bf16.mxu1 %v2717_v29  ;;  %928 = vmatmul.mubr.f32.vlgmr.msra.gmra.mrb[2].mxu0 %v3450_v33  ;;  %v2723_v33 = vpack.c.bf16 %v191_v46, %v190_v41  ;;  %v167_v29 = vld [vmem:[%s4844_s1 + $0x458] sm:$0xff]  ;;  %v2737_v31 = vpack.c.bf16 %v215_v24, %v214_v23  ;;  %v168_v41 = vld [vmem:[%s4844_s1 + $0x460] sm:$0xff]  ;;  %v246_v62 = vld [vmem:[%s4844_s1 + $0x6d0] sm:$0xff] }
  0x45   :  { %2688 = vmatpush3.bf16.msra.mxu0 %v2687_v35  ;;  %1067 = vmatprep.mubr.f32.mxu0 %v604_v51  ;;  %v185_v35 = vld [vmem:[%s4844_s1 + $0x4e8] sm:$0xff]  ;;  %v219_v51 = vld [vmem:[%s4844_s1 + $0x5f8] sm:$0xff]  ;;  %v240_v24 = vld [vmem:[%s4844_s1 + $0x6a0] sm:$0xff] }
  0x46   :  { %998 = vmatmul.mubr.f32.vlgmr.msra.gmra.mrb[2].mxu1 %v3473_v45  ;;  %2690 = vmatprep.subr.bf16.mxu0 %v2689_v38  ;;  %v605_v45 = vcombine.high %v3613_v52, %v3613_v52  ;;  %v2707_v38 = vpack.c.bf16 %v167_v29, %v166_v28  ;;  %v2709_v40 = vpack.c.bf16 %v185_v35, %v184_v34  ;;  %v255_v23 = vld [vmem:[%s4844_s1 + $0x718] sm:$0xff]  ;;  %v273_v28 = vld [vmem:[%s4844_s1 + $0x7a8] sm:$0xff]  ;;  %v256_v35 = vld [vmem:[%s4844_s1 + $0x720] sm:$0xff] }
  0x47   :  { %2720 = vmatpush3.bf16.msra.mxu1 %v2719_v36  ;;  %v216_v36 = vld [vmem:[%s4844_s1 + $0x5e0] sm:$0xff]  ;;  %v225_v34 = vld [vmem:[%s4844_s1 + $0x628] sm:$0xff]  ;;  %v247_v63 = vld [vmem:[%s4844_s1 + $0x6d8] sm:$0xff] }
  0x48   :  { %2722 = vmatprep.subr.bf16.mxu1 %v2721_v44  ;;  %1137 = vmatprep.mubr.f32.mxu1 %v605_v45  ;;  %v200_v44 = vld [vmem:[%s4844_s1 + $0x560] sm:$0xff]  ;;  %v2741_v46 = vpack.c.bf16 %v217_v37, %v216_v36  ;;  %v202_v45 = vld [vmem:[%s4844_s1 + $0x570] sm:$0xff]  ;;  %v2769_v4 = vpack.c.bf16 %v247_v63, %v246_v62  ;;  %v263_v9 = vld [vmem:[%s4844_s1 + $0x758] sm:$0xff] }
  0x49   :  { %2692 = vmatpush3.bf16.msra.mxu0 %v2691_v53  ;;  %v2711_v53 = vpack.c.bf16 %v169_v43, %v168_v41  ;;  %v242_v37 = vld [vmem:[%s4844_s1 + $0x6b0] sm:$0xff]  ;;  %v248_v10 = vld [vmem:[%s4844_s1 + $0x6e0] sm:$0xff] }
  0x4a   :  { %2694 = vmatprep.subr.bf16.mxu0 %v2693_v54  ;;  %v2743_v54 = vpack.c.bf16 %v201_v47, %v200_v44  ;;  %v227_v47 = vld [vmem:[%s4844_s1 + $0x638] sm:$0xff]  ;;  %v230_v5 = vld [vmem:[%s4844_s1 + $0x650] sm:$0xff] }
  0x4b   :  { %2724 = vmatpush3.bf16.msra.mxu1 %v2723_v33  ;;  %v23_v33 = vld [vmem:[%s4845_s0 + $0x18] sm:$0xff]  ;;  %v318_v62 = vld [vmem:[%s4844_s1 + $0x910] sm:$0xff] }
  0x4c   :  { %2726 = vmatprep.subr.bf16.mxu1 %v2725_v58  ;;  %v2745_v58 = vpack.c.bf16 %v219_v51, %v218_v50  ;;  %v3784_v11 = vrot.slane %v23_v33, %v3289_v13  ;;  %v259_v50 = vld [vmem:[%s4844_s1 + $0x738] sm:$0xff]  ;;  %v244_v51 = vld [vmem:[%s4844_s1 + $0x6c0] sm:$0xff] }
  0x4d   :  { %2696 = vmatpush3.bf16.msra.mxu0 %v2695_v0  ;;  %v606_v0 = vcombine.high %v23_v33, %v23_v33  ;;  %v276_v33 = vld [vmem:[%s4844_s1 + $0x7c0] sm:$0xff] }
  0x4e   :  { %2698 = vmatprep.subr.bf16.mxu0 %v2697_v2  ;;  %v2747_v2 = vpack.c.bf16 %v203_v59, %v202_v45  ;;  %v228_v45 = vld [vmem:[%s4844_s1 + $0x640] sm:$0xff] }
  0x4f   :  { %2728 = vmatpush3.bf16.msra.mxu1 %v2727_v1  ;;  %v2715_v1 = vpack.c.bf16 %v171_v57, %v170_v56  ;;  %v2795_v56 = vpack.c.bf16 %v259_v50, %v258_v48  ;;  %v260_v59 = vld [vmem:[%s4844_s1 + $0x740] sm:$0xff]  ;;  %v285_v48 = vld [vmem:[%s4844_s1 + $0x808] sm:$0xff] }
  0x50   :  { %2730 = vmatprep.subr.bf16.mxu1 %v2729_v6  ;;  %v252_v6 = vld [vmem:[%s4844_s1 + $0x700] sm:$0xff] }
  0x51   :  { %2700 = vmatpush3.bf16.msra.mxu0 %v2699_v12  ;;  %v270_v12 = vld [vmem:[%s4844_s1 + $0x790] sm:$0xff]  ;;  %v2783_v17 = vpack.c.bf16 %v253_v8, %v252_v6  ;;  %v231_v6 = vld [vmem:[%s4844_s1 + $0x658] sm:$0xff] }
  0x52   :  { %2702 = vmatprep.subr.bf16.mxu0 %v2701_v15  ;;  %v3793_v15 = vrot.slane %v606_v0, %v3289_v13  ;;  %v278_v0 = vld [vmem:[%s4844_s1 + $0x7d0] sm:$0xff] }
  0x53   :  { %2732 = vmatpush3.bf16.msra.mxu1 %v2731_v14  ;;  %v271_v14 = vld [vmem:[%s4844_s1 + $0x798] sm:$0xff] }
  0x54   :  { %2734 = vmatprep.subr.bf16.mxu1 %v2733_v19  ;;  %v222_v19 = vld [vmem:[%s4844_s1 + $0x610] sm:$0xff]  ;;  %v2785_v22 = vpack.c.bf16 %v271_v14, %v270_v12  ;;  %v622_v29 = vcombine.high %v3793_v15, %v3793_v15  ;;  %v249_v12 = vld [vmem:[%s4844_s1 + $0x6e8] sm:$0xff]  ;;  %v280_v14 = vld [vmem:[%s4844_s1 + $0x7e0] sm:$0xff] }
  0x55   :  { %2704 = vmatpush3.bf16.msra.mxu0 %v2703_v25  ;;  %v241_v25 = vld [vmem:[%s4844_s1 + $0x6a8] sm:$0xff]  ;;  %v2755_v30 = vpack.c.bf16 %v223_v20, %v222_v19  ;;  %v2773_v19 = vpack.c.bf16 %v249_v12, %v248_v10  ;;  %v232_v20 = vld [vmem:[%s4844_s1 + $0x660] sm:$0xff] }
  0x56   :  { %2706 = vmatprep.subr.bf16.mxu0 %v2705_v27  ;;  %v272_v27 = vld [vmem:[%s4844_s1 + $0x7a0] sm:$0xff]  ;;  %v2757_v32 = vpack.c.bf16 %v241_v25, %v240_v24  ;;  %v265_v24 = vld [vmem:[%s4844_s1 + $0x768] sm:$0xff]  ;;  %v250_v25 = vld [vmem:[%s4844_s1 + $0x6f0] sm:$0xff] }
  0x57   :  { %2736 = vmatpush3.bf16.msra.mxu1 %v2735_v26  ;;  %v621_v26 = vcombine.high %v3784_v11, %v3784_v11  ;;  %v2789_v36 = vpack.c.bf16 %v273_v28, %v272_v27  ;;  %v282_v27 = vld [vmem:[%s4844_s1 + $0x7f0] sm:$0xff]  ;;  %v283_v28 = vld [vmem:[%s4844_s1 + $0x7f8] sm:$0xff]  ;;  %v289_v10 = vld [vmem:[%s4844_s1 + $0x828] sm:$0xff] }
  0x58   :  { %2738 = vmatprep.subr.bf16.mxu1 %v2737_v31  ;;  %v2787_v31 = vpack.c.bf16 %v255_v23, %v254_v21  ;;  %v233_v21 = vld [vmem:[%s4844_s1 + $0x668] sm:$0xff]  ;;  %v320_v12 = vld [vmem:[%s4844_s1 + $0x920] sm:$0xff] }
  0x59   :  { %2708 = vmatpush3.bf16.msra.mxu0 %v2707_v38  ;;  %v243_v38 = vld [vmem:[%s4844_s1 + $0x6b8] sm:$0xff] }
  0x5a   :  { %2710 = vmatprep.subr.bf16.mxu0 %v2709_v40  ;;  %v275_v40 = vld [vmem:[%s4844_s1 + $0x7b8] sm:$0xff]  ;;  %v2761_v44 = vpack.c.bf16 %v243_v38, %v242_v37  ;;  %v300_v37 = vld [vmem:[%s4844_s1 + $0x880] sm:$0xff]  ;;  %v301_v38 = vld [vmem:[%s4844_s1 + $0x888] sm:$0xff] }
  0x5b   :  { %2740 = vmatpush3.bf16.msra.mxu1 %v2739_v39  ;;  %v274_v39 = vld [vmem:[%s4844_s1 + $0x7b0] sm:$0xff] }
  0x5c   :  { %2742 = vmatprep.subr.bf16.mxu1 %v2741_v46  ;;  %v226_v46 = vld [vmem:[%s4844_s1 + $0x630] sm:$0xff]  ;;  %v2793_v49 = vpack.c.bf16 %v275_v40, %v274_v39  ;;  %v332_v39 = vld [vmem:[%s4844_s1 + $0x980] sm:$0xff]  ;;  %v333_v40 = vld [vmem:[%s4844_s1 + $0x988] sm:$0xff] }
  0x5d   :  { %2712 = vmatpush3.bf16.msra.mxu0 %v2711_v53  ;;  %v245_v53 = vld [vmem:[%s4844_s1 + $0x6c8] sm:$0xff]  ;;  %v2845_v50 = vpack.c.bf16 %v333_v40, %v332_v39  ;;  %v310_v39 = vld [vmem:[%s4844_s1 + $0x8d0] sm:$0xff]  ;;  %v311_v40 = vld [vmem:[%s4844_s1 + $0x8d8] sm:$0xff] }
  0x5e   :  { %2714 = vmatprep.subr.bf16.mxu0 %v2713_v55  ;;  %v2763_v55 = vpack.c.bf16 %v227_v47, %v226_v46  ;;  %v2765_v57 = vpack.c.bf16 %v245_v53, %v244_v51  ;;  %v2813_v46 = vpack.c.bf16 %v301_v38, %v300_v37  ;;  %v284_v47 = vld [vmem:[%s4844_s1 + $0x800] sm:$0xff]  ;;  %v317_v51 = vld [vmem:[%s4844_s1 + $0x908] sm:$0xff]  ;;  %v302_v53 = vld [vmem:[%s4844_s1 + $0x890] sm:$0xff] }
  0x5f   :  { %2744 = vmatpush3.bf16.msra.mxu1 %v2743_v54  ;;  %v277_v54 = vld [vmem:[%s4844_s1 + $0x7c8] sm:$0xff] }
  0x60   :  { %2746 = vmatprep.subr.bf16.mxu1 %v2745_v58  ;;  %v229_v58 = vld [vmem:[%s4844_s1 + $0x648] sm:$0xff]  ;;  %v2797_v60 = vpack.c.bf16 %v277_v54, %v276_v33  ;;  %v303_v33 = vld [vmem:[%s4844_s1 + $0x898] sm:$0xff] }
  0x61   :  { %2716 = vmatpush3.bf16.msra.mxu0 %v2715_v1  ;;  %v279_v1 = vld [vmem:[%s4844_s1 + $0x7d8] sm:$0xff]  ;;  %v325_v38 = vld [vmem:[%s4844_s1 + $0x948] sm:$0xff] }
  0x62   :  { %2750 = vmatprep.subr.bf16.mxu0 %v2749_v3  ;;  %v2799_v3 = vpack.c.bf16 %v261_v61, %v260_v59  ;;  %v2801_v8 = vpack.c.bf16 %v279_v1, %v278_v0  ;;  %v2817_v59 = vpack.c.bf16 %v303_v33, %v302_v53  ;;  %v287_v61 = vld [vmem:[%s4844_s1 + $0x818] sm:$0xff]  ;;  %v304_v1 = vld [vmem:[%s4844_s1 + $0x8a0] sm:$0xff] }
  0x63   :  { %2748 = vmatpush3.bf16.msra.mxu1 %v2747_v2  ;;  %v2767_v2 = vpack.c.bf16 %v229_v58, %v228_v45  ;;  %v2815_v45 = vpack.c.bf16 %v285_v48, %v284_v47  ;;  %v319_v0 = vld [vmem:[%s4844_s1 + $0x918] sm:$0xff]  ;;  %v2833_v47 = vpack.c.bf16 %v311_v40, %v310_v39  ;;  %v294_v48 = vld [vmem:[%s4844_s1 + $0x850] sm:$0xff]  ;;  %v312_v33 = vld [vmem:[%s4844_s1 + $0x8e0] sm:$0xff] }
  0x64   :  { %2782 = vmatprep.subr.bf16.mxu1 %v2781_v7  ;;  %1068 = vmatmul.mubr.f32.vlgmr.msra.gmra.mrb[4].mxu0 %v3592_v42  ;;  %v224_v42 = vld [vmem:[%s4844_s1 + $0x620] sm:$0xff]  ;;  %v262_v7 = vld [vmem:[%s4844_s1 + $0x750] sm:$0xff]  ;;  %v327_v53 = vld [vmem:[%s4844_s1 + $0x958] sm:$0xff] }
  0x65   :  { %2752 = vmatpush3.bf16.msra.mxu0 %v2751_v16  ;;  %1207 = vmatprep.mubr.f32.mxu0 %v621_v26  ;;  %v2759_v41 = vpack.c.bf16 %v225_v34, %v224_v42  ;;  %v281_v16 = vld [vmem:[%s4844_s1 + $0x7e8] sm:$0xff]  ;;  %v251_v26 = vld [vmem:[%s4844_s1 + $0x6f8] sm:$0xff]  ;;  %v234_v42 = vld [vmem:[%s4844_s1 + $0x670] sm:$0xff] }
  0x66   :  { %1138 = vmatmul.mubr.f32.vlgmr.msra.gmra.mrb[4].mxu1 %v3613_v52  ;;  %2754 = vmatprep.subr.bf16.mxu0 %v2753_v18  ;;  %v257_v52 = vld [vmem:[%s4844_s1 + $0x728] sm:$0xff]  ;;  %v2803_v18 = vpack.c.bf16 %v263_v9, %v262_v7  ;;  %v2805_v23 = vpack.c.bf16 %v281_v16, %v280_v14  ;;  %v235_v34 = vld [vmem:[%s4844_s1 + $0x678] sm:$0xff]  ;;  %v306_v16 = vld [vmem:[%s4844_s1 + $0x8b0] sm:$0xff] }
  0x67   :  { %2784 = vmatpush3.bf16.msra.mxu1 %v2783_v17  ;;  %1277 = vmatprep.mubr.f32.mxu1 %v622_v29  ;;  %v2791_v43 = vpack.c.bf16 %v257_v52, %v256_v35  ;;  %v2771_v17 = vpack.c.bf16 %v231_v6, %v230_v5  ;;  %v2775_v29 = vpack.c.bf16 %v233_v21, %v232_v20  ;;  %v266_v35 = vld [vmem:[%s4844_s1 + $0x770] sm:$0xff]  ;;  %v267_v52 = vld [vmem:[%s4844_s1 + $0x778] sm:$0xff]  ;;  %v337_v5 = vld [vmem:[%s4844_s1 + $0x9a8] sm:$0xff] }
  0x68   :  { %2786 = vmatprep.subr.bf16.mxu1 %v2785_v22  ;;  %v264_v22 = vld [vmem:[%s4844_s1 + $0x760] sm:$0xff]  ;;  %v382_v39 = vld [vmem:[%s4844_s1 + $0xb10] sm:$0xff] }
  0x69   :  { %2756 = vmatpush3.bf16.msra.mxu0 %v2755_v30  ;;  %v24_v30 = vld [vmem:[%s4845_s0 + $0x20] sm:$0xff] }
  0x6a   :  { %2758 = vmatprep.subr.bf16.mxu0 %v2757_v32  ;;  %v2777_v32 = vpack.c.bf16 %v251_v26, %v250_v25  ;;  %v3991_v54 = vrot.slane %v24_v30, %v3289_v13  ;;  %v322_v25 = vld [vmem:[%s4844_s1 + $0x930] sm:$0xff] }
  0x6b   :  { %2788 = vmatpush3.bf16.msra.mxu1 %v2787_v31  ;;  %v2807_v31 = vpack.c.bf16 %v265_v24, %v264_v22  ;;  %v291_v24 = vld [vmem:[%s4844_s1 + $0x838] sm:$0xff] }
  0x6c   :  { %2790 = vmatprep.subr.bf16.mxu1 %v2789_v36  ;;  %v2809_v36 = vpack.c.bf16 %v283_v28, %v282_v27  ;;  %v323_v27 = vld [vmem:[%s4844_s1 + $0x938] sm:$0xff]  ;;  %v308_v28 = vld [vmem:[%s4844_s1 + $0x8c0] sm:$0xff] }
  0x6d   :  { %2760 = vmatpush3.bf16.msra.mxu0 %v2759_v41  ;;  %v623_v41 = vcombine.high %v24_v30, %v24_v30  ;;  %v340_v30 = vld [vmem:[%s4844_s1 + $0x9c0] sm:$0xff] }
  0x6e   :  { %2762 = vmatprep.subr.bf16.mxu0 %v2761_v44  ;;  %v2811_v44 = vpack.c.bf16 %v267_v52, %v266_v35  ;;  %v292_v35 = vld [vmem:[%s4844_s1 + $0x840] sm:$0xff] }
  0x6f   :  { %2792 = vmatpush3.bf16.msra.mxu1 %v2791_v43  ;;  %v2779_v43 = vpack.c.bf16 %v235_v34, %v234_v42  ;;  %v2859_v42 = vpack.c.bf16 %v323_v27, %v322_v25  ;;  %v324_v52 = vld [vmem:[%s4844_s1 + $0x940] sm:$0xff]  ;;  %v349_v25 = vld [vmem:[%s4844_s1 + $0xa08] sm:$0xff] }
  0x70   :  { %2794 = vmatprep.subr.bf16.mxu1 %v2793_v49  ;;  %v316_v49 = vld [vmem:[%s4844_s1 + $0x900] sm:$0xff] }
  0x71   :  { %2764 = vmatpush3.bf16.msra.mxu0 %v2763_v55  ;;  %v334_v55 = vld [vmem:[%s4844_s1 + $0x990] sm:$0xff]  ;;  %v2847_v58 = vpack.c.bf16 %v317_v51, %v316_v49  ;;  %v295_v49 = vld [vmem:[%s4844_s1 + $0x858] sm:$0xff] }
  0x72   :  { %2766 = vmatprep.subr.bf16.mxu0 %v2765_v57  ;;  %v4000_v57 = vrot.slane %v623_v41, %v3289_v13  ;;  %v342_v41 = vld [vmem:[%s4844_s1 + $0x9d0] sm:$0xff] }
  0x73   :  { %2796 = vmatpush3.bf16.msra.mxu1 %v2795_v56  ;;  %v335_v56 = vld [vmem:[%s4844_s1 + $0x998] sm:$0xff] }
  0x74   :  { %2798 = vmatprep.subr.bf16.mxu1 %v2797_v60  ;;  %v286_v60 = vld [vmem:[%s4844_s1 + $0x810] sm:$0xff]  ;;  %v2849_v63 = vpack.c.bf16 %v335_v56, %v334_v55  ;;  %v639_v6 = vcombine.high %v4000_v57, %v4000_v57  ;;  %v313_v55 = vld [vmem:[%s4844_s1 + $0x8e8] sm:$0xff]  ;;  %v344_v56 = vld [vmem:[%s4844_s1 + $0x9e0] sm:$0xff] }
  0x75   :  { %2768 = vmatpush3.bf16.msra.mxu0 %v2767_v2  ;;  %v305_v2 = vld [vmem:[%s4844_s1 + $0x8a8] sm:$0xff]  ;;  %v2819_v7 = vpack.c.bf16 %v287_v61, %v286_v60  ;;  %v2837_v60 = vpack.c.bf16 %v313_v55, %v312_v33  ;;  %v296_v61 = vld [vmem:[%s4844_s1 + $0x860] sm:$0xff] }
  0x76   :  { %2770 = vmatprep.subr.bf16.mxu0 %v2769_v4  ;;  %v336_v4 = vld [vmem:[%s4844_s1 + $0x9a0] sm:$0xff]  ;;  %v2821_v9 = vpack.c.bf16 %v305_v2, %v304_v1  ;;  %v329_v1 = vld [vmem:[%s4844_s1 + $0x968] sm:$0xff]  ;;  %v314_v2 = vld [vmem:[%s4844_s1 + $0x8f0] sm:$0xff] }
  0x77   :  { %2800 = vmatpush3.bf16.msra.mxu1 %v2799_v3  ;;  %v638_v3 = vcombine.high %v3991_v54, %v3991_v54  ;;  %v2853_v14 = vpack.c.bf16 %v337_v5, %v336_v4  ;;  %v346_v4 = vld [vmem:[%s4844_s1 + $0x9f0] sm:$0xff]  ;;  %v347_v5 = vld [vmem:[%s4844_s1 + $0x9f8] sm:$0xff]  ;;  %v353_v33 = vld [vmem:[%s4844_s1 + $0xa28] sm:$0xff] }
  0x78   :  { %2802 = vmatprep.subr.bf16.mxu1 %v2801_v8  ;;  %v2851_v8 = vpack.c.bf16 %v319_v0, %v318_v62  ;;  %v297_v62 = vld [vmem:[%s4844_s1 + $0x868] sm:$0xff]  ;;  %v384_v55 = vld [vmem:[%s4844_s1 + $0xb20] sm:$0xff] }
  0x79   :  { %2772 = vmatpush3.bf16.msra.mxu0 %v2771_v17  ;;  %v307_v17 = vld [vmem:[%s4844_s1 + $0x8b8] sm:$0xff] }
  0x7a   :  { %2774 = vmatprep.subr.bf16.mxu0 %v2773_v19  ;;  %v339_v19 = vld [vmem:[%s4844_s1 + $0x9b8] sm:$0xff]  ;;  %v2825_v22 = vpack.c.bf16 %v307_v17, %v306_v16  ;;  %v364_v16 = vld [vmem:[%s4844_s1 + $0xa80] sm:$0xff]  ;;  %v365_v17 = vld [vmem:[%s4844_s1 + $0xa88] sm:$0xff] }
  0x7b   :  { %2804 = vmatpush3.bf16.msra.mxu1 %v2803_v18  ;;  %v338_v18 = vld [vmem:[%s4844_s1 + $0x9b0] sm:$0xff] }
  0x7c   :  { %2806 = vmatprep.subr.bf16.mxu1 %v2805_v23  ;;  %v290_v23 = vld [vmem:[%s4844_s1 + $0x830] sm:$0xff]  ;;  %v2857_v26 = vpack.c.bf16 %v339_v19, %v338_v18  ;;  %v396_v18 = vld [vmem:[%s4844_s1 + $0xb80] sm:$0xff]  ;;  %v397_v19 = vld [vmem:[%s4844_s1 + $0xb88] sm:$0xff] }
  0x7d   :  { %2776 = vmatpush3.bf16.msra.mxu0 %v2775_v29  ;;  %v309_v29 = vld [vmem:[%s4844_s1 + $0x8c8] sm:$0xff]  ;;  %v2909_v27 = vpack.c.bf16 %v397_v19, %v396_v18  ;;  %v374_v18 = vld [vmem:[%s4844_s1 + $0xad0] sm:$0xff]  ;;  %v375_v19 = vld [vmem:[%s4844_s1 + $0xad8] sm:$0xff] }
  0x7e   :  { %2778 = vmatprep.subr.bf16.mxu0 %v2777_v32  ;;  %v2827_v32 = vpack.c.bf16 %v291_v24, %v290_v23  ;;  %v2829_v34 = vpack.c.bf16 %v309_v29, %v308_v28  ;;  %v2877_v23 = vpack.c.bf16 %v365_v17, %v364_v16  ;;  %v348_v24 = vld [vmem:[%s4844_s1 + $0xa00] sm:$0xff]  ;;  %v381_v28 = vld [vmem:[%s4844_s1 + $0xb08] sm:$0xff]  ;;  %v366_v29 = vld [vmem:[%s4844_s1 + $0xa90] sm:$0xff] }
  0x7f   :  { %2808 = vmatpush3.bf16.msra.mxu1 %v2807_v31  ;;  %v341_v31 = vld [vmem:[%s4844_s1 + $0x9c8] sm:$0xff] }
  0x80   :  { %2810 = vmatprep.subr.bf16.mxu1 %v2809_v36  ;;  %v293_v36 = vld [vmem:[%s4844_s1 + $0x848] sm:$0xff]  ;;  %v2861_v37 = vpack.c.bf16 %v341_v31, %v340_v30  ;;  %v367_v30 = vld [vmem:[%s4844_s1 + $0xa98] sm:$0xff] }
  0x81   :  { %2780 = vmatpush3.bf16.msra.mxu0 %v2779_v43  ;;  %v343_v43 = vld [vmem:[%s4844_s1 + $0x9d8] sm:$0xff]  ;;  %v389_v17 = vld [vmem:[%s4844_s1 + $0xb48] sm:$0xff] }
  0x82   :  { %2814 = vmatprep.subr.bf16.mxu0 %v2813_v46  ;;  %v2863_v46 = vpack.c.bf16 %v325_v38, %v324_v52  ;;  %v2865_v51 = vpack.c.bf16 %v343_v43, %v342_v41  ;;  %v2881_v52 = vpack.c.bf16 %v367_v30, %v366_v29  ;;  %v351_v38 = vld [vmem:[%s4844_s1 + $0xa18] sm:$0xff]  ;;  %v368_v43 = vld [vmem:[%s4844_s1 + $0xaa0] sm:$0xff] }
  0x83   :  { %2812 = vmatpush3.bf16.msra.mxu1 %v2811_v44  ;;  %v2831_v44 = vpack.c.bf16 %v293_v36, %v292_v35  ;;  %v2879_v35 = vpack.c.bf16 %v349_v25, %v348_v24  ;;  %v383_v41 = vld [vmem:[%s4844_s1 + $0xb18] sm:$0xff]  ;;  %v2897_v24 = vpack.c.bf16 %v375_v19, %v374_v18  ;;  %v358_v25 = vld [vmem:[%s4844_s1 + $0xa50] sm:$0xff]  ;;  %v376_v30 = vld [vmem:[%s4844_s1 + $0xae0] sm:$0xff] }
  0x84   :  { %2846 = vmatprep.subr.bf16.mxu1 %v2845_v50  ;;  %1208 = vmatmul.mubr.f32.vlgmr.msra.gmra.mrb[6].mxu0 %v3784_v11  ;;  %v288_v11 = vld [vmem:[%s4844_s1 + $0x820] sm:$0xff]  ;;  %v326_v50 = vld [vmem:[%s4844_s1 + $0x950] sm:$0xff]  ;;  %v391_v29 = vld [vmem:[%s4844_s1 + $0xb58] sm:$0xff] }
  0x85   :  { %2816 = vmatpush3.bf16.msra.mxu0 %v2815_v45  ;;  %1347 = vmatprep.mubr.f32.mxu0 %v638_v3  ;;  %v2823_v20 = vpack.c.bf16 %v289_v10, %v288_v11  ;;  %v345_v45 = vld [vmem:[%s4844_s1 + $0x9e8] sm:$0xff]  ;;  %v315_v3 = vld [vmem:[%s4844_s1 + $0x8f8] sm:$0xff]  ;;  %v298_v11 = vld [vmem:[%s4844_s1 + $0x870] sm:$0xff] }
  0x86   :  { %1278 = vmatmul.mubr.f32.vlgmr.msra.gmra.mrb[6].mxu1 %v3793_v15  ;;  %2818 = vmatprep.subr.bf16.mxu0 %v2817_v59  ;;  %v321_v15 = vld [vmem:[%s4844_s1 + $0x928] sm:$0xff]  ;;  %v2867_v59 = vpack.c.bf16 %v327_v53, %v326_v50  ;;  %v2869_v0 = vpack.c.bf16 %v345_v45, %v344_v56  ;;  %v299_v10 = vld [vmem:[%s4844_s1 + $0x878] sm:$0xff]  ;;  %v370_v45 = vld [vmem:[%s4844_s1 + $0xab0] sm:$0xff] }
  0x87   :  { %2848 = vmatpush3.bf16.msra.mxu1 %v2847_v58  ;;  %1417 = vmatprep.mubr.f32.mxu1 %v639_v6  ;;  %v2855_v21 = vpack.c.bf16 %v321_v15, %v320_v12  ;;  %v2835_v58 = vpack.c.bf16 %v295_v49, %v294_v48  ;;  %v2839_v6 = vpack.c.bf16 %v297_v62, %v296_v61  ;;  %v330_v12 = vld [vmem:[%s4844_s1 + $0x970] sm:$0xff]  ;;  %v331_v15 = vld [vmem:[%s4844_s1 + $0x978] sm:$0xff]  ;;  %v401_v48 = vld [vmem:[%s4844_s1 + $0xba8] sm:$0xff] }
  0x88   :  { %2850 = vmatprep.subr.bf16.mxu1 %v2849_v63  ;;  %v328_v63 = vld [vmem:[%s4844_s1 + $0x960] sm:$0xff]  ;;  %v446_v18 = vld [vmem:[%s4844_s1 + $0xd10] sm:$0xff] }
  0x89   :  { %2820 = vmatpush3.bf16.msra.mxu0 %v2819_v7  ;;  %v25_v7 = vld [vmem:[%s4845_s0 + $0x28] sm:$0xff] }
  0x8a   :  { %2822 = vmatprep.subr.bf16.mxu0 %v2821_v9  ;;  %v2841_v9 = vpack.c.bf16 %v315_v3, %v314_v2  ;;  %v4198_v31 = vrot.slane %v25_v7, %v3289_v13  ;;  %v386_v2 = vld [vmem:[%s4844_s1 + $0xb30] sm:$0xff] }
  0x8b   :  { %2852 = vmatpush3.bf16.msra.mxu1 %v2851_v8  ;;  %v2871_v8 = vpack.c.bf16 %v329_v1, %v328_v63  ;;  %v355_v1 = vld [vmem:[%s4844_s1 + $0xa38] sm:$0xff] }
  0x8c   :  { %2854 = vmatprep.subr.bf16.mxu1 %v2853_v14  ;;  %v2873_v14 = vpack.c.bf16 %v347_v5, %v346_v4  ;;  %v387_v4 = vld [vmem:[%s4844_s1 + $0xb38] sm:$0xff]  ;;  %v372_v5 = vld [vmem:[%s4844_s1 + $0xac0] sm:$0xff] }
  0x8d   :  { %2824 = vmatpush3.bf16.msra.mxu0 %v2823_v20  ;;  %v640_v20 = vcombine.high %v25_v7, %v25_v7  ;;  %v404_v7 = vld [vmem:[%s4844_s1 + $0xbc0] sm:$0xff] }
  0x8e   :  { %2826 = vmatprep.subr.bf16.mxu0 %v2825_v22  ;;  %v2875_v22 = vpack.c.bf16 %v331_v15, %v330_v12  ;;  %v356_v12 = vld [vmem:[%s4844_s1 + $0xa40] sm:$0xff] }
  0x8f   :  { %2856 = vmatpush3.bf16.msra.mxu1 %v2855_v21  ;;  %v2843_v21 = vpack.c.bf16 %v299_v10, %v298_v11  ;;  %v2923_v11 = vpack.c.bf16 %v387_v4, %v386_v2  ;;  %v388_v15 = vld [vmem:[%s4844_s1 + $0xb40] sm:$0xff]  ;;  %v413_v2 = vld [vmem:[%s4844_s1 + $0xc08] sm:$0xff] }
  0x90   :  { %2858 = vmatprep.subr.bf16.mxu1 %v2857_v26  ;;  %v380_v26 = vld [vmem:[%s4844_s1 + $0xb00] sm:$0xff] }
  0x91   :  { %2828 = vmatpush3.bf16.msra.mxu0 %v2827_v32  ;;  %v398_v32 = vld [vmem:[%s4844_s1 + $0xb90] sm:$0xff]  ;;  %v2911_v36 = vpack.c.bf16 %v381_v28, %v380_v26  ;;  %v359_v26 = vld [vmem:[%s4844_s1 + $0xa58] sm:$0xff] }
  0x92   :  { %2830 = vmatprep.subr.bf16.mxu0 %v2829_v34  ;;  %v4207_v34 = vrot.slane %v640_v20, %v3289_v13  ;;  %v406_v20 = vld [vmem:[%s4844_s1 + $0xbd0] sm:$0xff] }
  0x93   :  { %2860 = vmatpush3.bf16.msra.mxu1 %v2859_v42  ;;  %v399_v42 = vld [vmem:[%s4844_s1 + $0xb98] sm:$0xff] }
  0x94   :  { %2862 = vmatprep.subr.bf16.mxu1 %v2861_v37  ;;  %v350_v37 = vld [vmem:[%s4844_s1 + $0xa10] sm:$0xff]  ;;  %v2913_v40 = vpack.c.bf16 %v399_v42, %v398_v32  ;;  %v656_v49 = vcombine.high %v4207_v34, %v4207_v34  ;;  %v377_v32 = vld [vmem:[%s4844_s1 + $0xae8] sm:$0xff]  ;;  %v408_v42 = vld [vmem:[%s4844_s1 + $0xbe0] sm:$0xff] }
  0x95   :  { %2832 = vmatpush3.bf16.msra.mxu0 %v2831_v44  ;;  %v369_v44 = vld [vmem:[%s4844_s1 + $0xaa8] sm:$0xff]  ;;  %v2883_v50 = vpack.c.bf16 %v351_v38, %v350_v37  ;;  %v2901_v37 = vpack.c.bf16 %v377_v32, %v376_v30  ;;  %v360_v38 = vld [vmem:[%s4844_s1 + $0xa60] sm:$0xff] }
  0x96   :  { %2834 = vmatprep.subr.bf16.mxu0 %v2833_v47  ;;  %v400_v47 = vld [vmem:[%s4844_s1 + $0xba0] sm:$0xff]  ;;  %v2885_v53 = vpack.c.bf16 %v369_v44, %v368_v43  ;;  %v393_v43 = vld [vmem:[%s4844_s1 + $0xb68] sm:$0xff]  ;;  %v378_v44 = vld [vmem:[%s4844_s1 + $0xaf0] sm:$0xff] }
  0x97   :  { %2864 = vmatpush3.bf16.msra.mxu1 %v2863_v46  ;;  %v655_v46 = vcombine.high %v4198_v31, %v4198_v31  ;;  %v2917_v56 = vpack.c.bf16 %v401_v48, %v400_v47  ;;  %v410_v47 = vld [vmem:[%s4844_s1 + $0xbf0] sm:$0xff]  ;;  %v411_v48 = vld [vmem:[%s4844_s1 + $0xbf8] sm:$0xff]  ;;  %v417_v30 = vld [vmem:[%s4844_s1 + $0xc28] sm:$0xff] }
  0x98   :  { %2866 = vmatprep.subr.bf16.mxu1 %v2865_v51  ;;  %v2915_v51 = vpack.c.bf16 %v383_v41, %v382_v39  ;;  %v361_v39 = vld [vmem:[%s4844_s1 + $0xa68] sm:$0xff]  ;;  %v448_v32 = vld [vmem:[%s4844_s1 + $0xd20] sm:$0xff] }
  0x99   :  { %2836 = vmatpush3.bf16.msra.mxu0 %v2835_v58  ;;  %v371_v58 = vld [vmem:[%s4844_s1 + $0xab8] sm:$0xff] }
  0x9a   :  { %2838 = vmatprep.subr.bf16.mxu0 %v2837_v60  ;;  %v403_v60 = vld [vmem:[%s4844_s1 + $0xbb8] sm:$0xff]  ;;  %v2889_v63 = vpack.c.bf16 %v371_v58, %v370_v45  ;;  %v428_v45 = vld [vmem:[%s4844_s1 + $0xc80] sm:$0xff]  ;;  %v429_v58 = vld [vmem:[%s4844_s1 + $0xc88] sm:$0xff] }
  0x9b   :  { %2868 = vmatpush3.bf16.msra.mxu1 %v2867_v59  ;;  %v402_v59 = vld [vmem:[%s4844_s1 + $0xbb0] sm:$0xff] }
  0x9c   :  { %2870 = vmatprep.subr.bf16.mxu1 %v2869_v0  ;;  %v354_v0 = vld [vmem:[%s4844_s1 + $0xa30] sm:$0xff]  ;;  %v2921_v3 = vpack.c.bf16 %v403_v60, %v402_v59  ;;  %v460_v59 = vld [vmem:[%s4844_s1 + $0xd80] sm:$0xff]  ;;  %v461_v60 = vld [vmem:[%s4844_s1 + $0xd88] sm:$0xff] }
  0x9d   :  { %2840 = vmatpush3.bf16.msra.mxu0 %v2839_v6  ;;  %v373_v6 = vld [vmem:[%s4844_s1 + $0xac8] sm:$0xff]  ;;  %v2973_v4 = vpack.c.bf16 %v461_v60, %v460_v59  ;;  %v438_v59 = vld [vmem:[%s4844_s1 + $0xcd0] sm:$0xff]  ;;  %v439_v60 = vld [vmem:[%s4844_s1 + $0xcd8] sm:$0xff] }
  0x9e   :  { %2842 = vmatprep.subr.bf16.mxu0 %v2841_v9  ;;  %v2891_v9 = vpack.c.bf16 %v355_v1, %v354_v0  ;;  %v2893_v10 = vpack.c.bf16 %v373_v6, %v372_v5  ;;  %v2941_v0 = vpack.c.bf16 %v429_v58, %v428_v45  ;;  %v412_v1 = vld [vmem:[%s4844_s1 + $0xc00] sm:$0xff]  ;;  %v445_v5 = vld [vmem:[%s4844_s1 + $0xd08] sm:$0xff]  ;;  %v430_v6 = vld [vmem:[%s4844_s1 + $0xc90] sm:$0xff] }
  0x9f   :  { %2872 = vmatpush3.bf16.msra.mxu1 %v2871_v8  ;;  %v405_v8 = vld [vmem:[%s4844_s1 + $0xbc8] sm:$0xff] }
  0xa0   :  { %2874 = vmatprep.subr.bf16.mxu1 %v2873_v14  ;;  %v357_v14 = vld [vmem:[%s4844_s1 + $0xa48] sm:$0xff]  ;;  %v2925_v16 = vpack.c.bf16 %v405_v8, %v404_v7  ;;  %v431_v7 = vld [vmem:[%s4844_s1 + $0xc98] sm:$0xff] }
  0xa1   :  { %2844 = vmatpush3.bf16.msra.mxu0 %v2843_v21  ;;  %v407_v21 = vld [vmem:[%s4844_s1 + $0xbd8] sm:$0xff]  ;;  %v453_v58 = vld [vmem:[%s4844_s1 + $0xd48] sm:$0xff] }
  0xa2   :  { %2878 = vmatprep.subr.bf16.mxu0 %v2877_v23  ;;  %v2927_v23 = vpack.c.bf16 %v389_v17, %v388_v15  ;;  %v2929_v28 = vpack.c.bf16 %v407_v21, %v406_v20  ;;  %v2945_v15 = vpack.c.bf16 %v431_v7, %v430_v6  ;;  %v415_v17 = vld [vmem:[%s4844_s1 + $0xc18] sm:$0xff]  ;;  %v432_v21 = vld [vmem:[%s4844_s1 + $0xca0] sm:$0xff] }
  0xa3   :  { %2876 = vmatpush3.bf16.msra.mxu1 %v2875_v22  ;;  %v2895_v22 = vpack.c.bf16 %v357_v14, %v356_v12  ;;  %v2943_v12 = vpack.c.bf16 %v413_v2, %v412_v1  ;;  %v447_v20 = vld [vmem:[%s4844_s1 + $0xd18] sm:$0xff]  ;;  %v2961_v1 = vpack.c.bf16 %v439_v60, %v438_v59  ;;  %v422_v2 = vld [vmem:[%s4844_s1 + $0xc50] sm:$0xff]  ;;  %v440_v7 = vld [vmem:[%s4844_s1 + $0xce0] sm:$0xff] }
  0xa4   :  { %2910 = vmatprep.subr.bf16.mxu1 %v2909_v27  ;;  %1348 = vmatmul.mubr.f32.vlgmr.msra.gmra.mrb[8].mxu0 %v3991_v54  ;;  %v352_v54 = vld [vmem:[%s4844_s1 + $0xa20] sm:$0xff]  ;;  %v390_v27 = vld [vmem:[%s4844_s1 + $0xb50] sm:$0xff]  ;;  %v455_v6 = vld [vmem:[%s4844_s1 + $0xd58] sm:$0xff] }
  0xa5   :  { %2880 = vmatpush3.bf16.msra.mxu0 %v2879_v35  ;;  %1487 = vmatprep.mubr.f32.mxu0 %v655_v46  ;;  %v2887_v61 = vpack.c.bf16 %v353_v33, %v352_v54  ;;  %v409_v35 = vld [vmem:[%s4844_s1 + $0xbe8] sm:$0xff]  ;;  %v379_v46 = vld [vmem:[%s4844_s1 + $0xaf8] sm:$0xff]  ;;  %v362_v54 = vld [vmem:[%s4844_s1 + $0xa70] sm:$0xff] }
  0xa6   :  { %1418 = vmatmul.mubr.f32.vlgmr.msra.gmra.mrb[8].mxu1 %v4000_v57  ;;  %2882 = vmatprep.subr.bf16.mxu0 %v2881_v52  ;;  %v385_v57 = vld [vmem:[%s4844_s1 + $0xb28] sm:$0xff]  ;;  %v2931_v52 = vpack.c.bf16 %v391_v29, %v390_v27  ;;  %v2933_v41 = vpack.c.bf16 %v409_v35, %v408_v42  ;;  %v363_v33 = vld [vmem:[%s4844_s1 + $0xa78] sm:$0xff]  ;;  %v434_v35 = vld [vmem:[%s4844_s1 + $0xcb0] sm:$0xff] }
  0xa7   :  { %2912 = vmatpush3.bf16.msra.mxu1 %v2911_v36  ;;  %1557 = vmatprep.mubr.f32.mxu1 %v656_v49  ;;  %v2919_v62 = vpack.c.bf16 %v385_v57, %v384_v55  ;;  %v2899_v36 = vpack.c.bf16 %v359_v26, %v358_v25  ;;  %v2903_v49 = vpack.c.bf16 %v361_v39, %v360_v38  ;;  %v394_v55 = vld [vmem:[%s4844_s1 + $0xb70] sm:$0xff]  ;;  %v395_v57 = vld [vmem:[%s4844_s1 + $0xb78] sm:$0xff]  ;;  %v465_v25 = vld [vmem:[%s4844_s1 + $0xda8] sm:$0xff] }
  0xa8   :  { %2914 = vmatprep.subr.bf16.mxu1 %v2913_v40  ;;  %v392_v40 = vld [vmem:[%s4844_s1 + $0xb60] sm:$0xff]  ;;  %v510_v59 = vld [vmem:[%s4844_s1 + $0xf10] sm:$0xff]  ;;  %v511_v60 = vld [vmem:[%s4844_s1 + $0xf18] sm:$0xff] }
  0xa9   :  { %2884 = vmatpush3.bf16.msra.mxu0 %v2883_v50  ;;  %v26_v50 = vld [vmem:[%s4845_s0 + $0x30] sm:$0xff] }
  0xaa   :  { %2886 = vmatprep.subr.bf16.mxu0 %v2885_v53  ;;  %v2905_v53 = vpack.c.bf16 %v379_v46, %v378_v44  ;;  %v4405_v8 = vrot.slane %v26_v50, %v3289_v13  ;;  %v450_v44 = vld [vmem:[%s4844_s1 + $0xd30] sm:$0xff] }
  0xab   :  { %2916 = vmatpush3.bf16.msra.mxu1 %v2915_v51  ;;  %v2935_v51 = vpack.c.bf16 %v393_v43, %v392_v40  ;;  %v419_v43 = vld [vmem:[%s4844_s1 + $0xc38] sm:$0xff] }
  0xac   :  { %2918 = vmatprep.subr.bf16.mxu1 %v2917_v56  ;;  %v2937_v56 = vpack.c.bf16 %v411_v48, %v410_v47  ;;  %v451_v47 = vld [vmem:[%s4844_s1 + $0xd38] sm:$0xff]  ;;  %v436_v48 = vld [vmem:[%s4844_s1 + $0xcc0] sm:$0xff] }
  0xad   :  { %2888 = vmatpush3.bf16.msra.mxu0 %v2887_v61  ;;  %v657_v61 = vcombine.high %v26_v50, %v26_v50  ;;  %v468_v50 = vld [vmem:[%s4844_s1 + $0xdc0] sm:$0xff] }
  0xae   :  { %2890 = vmatprep.subr.bf16.mxu0 %v2889_v63  ;;  %v2939_v63 = vpack.c.bf16 %v395_v57, %v394_v55  ;;  %v420_v55 = vld [vmem:[%s4844_s1 + $0xc40] sm:$0xff] }
  0xaf   :  { %2920 = vmatpush3.bf16.msra.mxu1 %v2919_v62  ;;  %v2907_v62 = vpack.c.bf16 %v363_v33, %v362_v54  ;;  %v2987_v54 = vpack.c.bf16 %v451_v47, %v450_v44  ;;  %v452_v57 = vld [vmem:[%s4844_s1 + $0xd40] sm:$0xff]  ;;  %v477_v44 = vld [vmem:[%s4844_s1 + $0xe08] sm:$0xff] }
  0xb0   :  { %2922 = vmatprep.subr.bf16.mxu1 %v2921_v3  ;;  %v444_v3 = vld [vmem:[%s4844_s1 + $0xd00] sm:$0xff] }
  0xb1   :  { %2892 = vmatpush3.bf16.msra.mxu0 %v2891_v9  ;;  %v462_v9 = vld [vmem:[%s4844_s1 + $0xd90] sm:$0xff]  ;;  %v2975_v14 = vpack.c.bf16 %v445_v5, %v444_v3  ;;  %v423_v3 = vld [vmem:[%s4844_s1 + $0xc58] sm:$0xff] }
  0xb2   :  { %2894 = vmatprep.subr.bf16.mxu0 %v2893_v10  ;;  %v4414_v10 = vrot.slane %v657_v61, %v3289_v13  ;;  %v470_v61 = vld [vmem:[%s4844_s1 + $0xdd0] sm:$0xff] }
  0xb3   :  { %2924 = vmatpush3.bf16.msra.mxu1 %v2923_v11  ;;  %v463_v11 = vld [vmem:[%s4844_s1 + $0xd98] sm:$0xff] }
  0xb4   :  { %2926 = vmatprep.subr.bf16.mxu1 %v2925_v16  ;;  %v414_v16 = vld [vmem:[%s4844_s1 + $0xc10] sm:$0xff]  ;;  %v2977_v19 = vpack.c.bf16 %v463_v11, %v462_v9  ;;  %v673_v26 = vcombine.high %v4414_v10, %v4414_v10  ;;  %v441_v9 = vld [vmem:[%s4844_s1 + $0xce8] sm:$0xff]  ;;  %v472_v11 = vld [vmem:[%s4844_s1 + $0xde0] sm:$0xff] }
  0xb5   :  { %2896 = vmatpush3.bf16.msra.mxu0 %v2895_v22  ;;  %v433_v22 = vld [vmem:[%s4844_s1 + $0xca8] sm:$0xff]  ;;  %v2947_v27 = vpack.c.bf16 %v415_v17, %v414_v16  ;;  %v2965_v16 = vpack.c.bf16 %v441_v9, %v440_v7  ;;  %v424_v17 = vld [vmem:[%s4844_s1 + $0xc60] sm:$0xff] }
  0xb6   :  { %2898 = vmatprep.subr.bf16.mxu0 %v2897_v24  ;;  %v464_v24 = vld [vmem:[%s4844_s1 + $0xda0] sm:$0xff]  ;;  %v2949_v29 = vpack.c.bf16 %v433_v22, %v432_v21  ;;  %v457_v21 = vld [vmem:[%s4844_s1 + $0xd68] sm:$0xff]  ;;  %v442_v22 = vld [vmem:[%s4844_s1 + $0xcf0] sm:$0xff] }
  0xb7   :  { %2928 = vmatpush3.bf16.msra.mxu1 %v2927_v23  ;;  %v672_v23 = vcombine.high %v4405_v8, %v4405_v8  ;;  %v2981_v42 = vpack.c.bf16 %v465_v25, %v464_v24  ;;  %v474_v24 = vld [vmem:[%s4844_s1 + $0xdf0] sm:$0xff]  ;;  %v475_v25 = vld [vmem:[%s4844_s1 + $0xdf8] sm:$0xff]  ;;  %v512_v7 = vld [vmem:[%s4844_s1 + $0xf20] sm:$0xff] }
  0xb8   :  { %2930 = vmatprep.subr.bf16.mxu1 %v2929_v28  ;;  %v2979_v28 = vpack.c.bf16 %v447_v20, %v446_v18  ;;  %v425_v18 = vld [vmem:[%s4844_s1 + $0xc68] sm:$0xff] }
  0xb9   :  { %2900 = vmatpush3.bf16.msra.mxu0 %v2899_v36  ;;  %v435_v36 = vld [vmem:[%s4844_s1 + $0xcb8] sm:$0xff] }
  0xba   :  { %2902 = vmatprep.subr.bf16.mxu0 %v2901_v37  ;;  %v467_v37 = vld [vmem:[%s4844_s1 + $0xdb8] sm:$0xff]  ;;  %v2953_v40 = vpack.c.bf16 %v435_v36, %v434_v35  ;;  %v492_v35 = vld [vmem:[%s4844_s1 + $0xe80] sm:$0xff]  ;;  %v493_v36 = vld [vmem:[%s4844_s1 + $0xe88] sm:$0xff] }
  0xbb   :  { %2932 = vmatpush3.bf16.msra.mxu1 %v2931_v52  ;;  %v466_v52 = vld [vmem:[%s4844_s1 + $0xdb0] sm:$0xff] }
  0xbc   :  { %2934 = vmatprep.subr.bf16.mxu1 %v2933_v41  ;;  %v418_v41 = vld [vmem:[%s4844_s1 + $0xc30] sm:$0xff]  ;;  %v2985_v46 = vpack.c.bf16 %v467_v37, %v466_v52  ;;  %v524_v52 = vld [vmem:[%s4844_s1 + $0xf80] sm:$0xff]  ;;  %v525_v37 = vld [vmem:[%s4844_s1 + $0xf88] sm:$0xff] }
  0xbd   :  { %2904 = vmatpush3.bf16.msra.mxu0 %v2903_v49  ;;  %v437_v49 = vld [vmem:[%s4844_s1 + $0xcc8] sm:$0xff]  ;;  %v3037_v47 = vpack.c.bf16 %v525_v37, %v524_v52  ;;  %v503_v52 = vld [vmem:[%s4844_s1 + $0xed8] sm:$0xff]  ;;  %v534_v37 = vld [vmem:[%s4844_s1 + $0xfd0] sm:$0xff] }
  0xbe   :  { %2906 = vmatprep.subr.bf16.mxu0 %v2905_v53  ;;  %v2955_v53 = vpack.c.bf16 %v419_v43, %v418_v41  ;;  %v2957_v33 = vpack.c.bf16 %v437_v49, %v436_v48  ;;  %v3005_v41 = vpack.c.bf16 %v493_v36, %v492_v35  ;;  %v476_v43 = vld [vmem:[%s4844_s1 + $0xe00] sm:$0xff]  ;;  %v509_v48 = vld [vmem:[%s4844_s1 + $0xf08] sm:$0xff]  ;;  %v494_v49 = vld [vmem:[%s4844_s1 + $0xe90] sm:$0xff] }
  0xbf   :  { %2936 = vmatpush3.bf16.msra.mxu1 %v2935_v51  ;;  %v469_v51 = vld [vmem:[%s4844_s1 + $0xdc8] sm:$0xff]  ;;  %v502_v36 = vld [vmem:[%s4844_s1 + $0xed0] sm:$0xff] }
  0xc0   :  { %2938 = vmatprep.subr.bf16.mxu1 %v2937_v56  ;;  %v421_v56 = vld [vmem:[%s4844_s1 + $0xc48] sm:$0xff]  ;;  %v2989_v45 = vpack.c.bf16 %v469_v51, %v468_v50  ;;  %v495_v50 = vld [vmem:[%s4844_s1 + $0xe98] sm:$0xff] }
  0xc1   :  { %2908 = vmatpush3.bf16.msra.mxu0 %v2907_v62  ;;  %v471_v62 = vld [vmem:[%s4844_s1 + $0xdd8] sm:$0xff]  ;;  %v517_v35 = vld [vmem:[%s4844_s1 + $0xf48] sm:$0xff] }
  0xc2   :  { %2942 = vmatprep.subr.bf16.mxu0 %v2941_v0  ;;  %v2991_v0 = vpack.c.bf16 %v453_v58, %v452_v57  ;;  %v2993_v5 = vpack.c.bf16 %v471_v62, %v470_v61  ;;  %v3009_v57 = vpack.c.bf16 %v495_v50, %v494_v49  ;;  %v479_v58 = vld [vmem:[%s4844_s1 + $0xe18] sm:$0xff]  ;;  %v496_v61 = vld [vmem:[%s4844_s1 + $0xea0] sm:$0xff]  ;;  %v497_v62 = vld [vmem:[%s4844_s1 + $0xea8] sm:$0xff] }
  0xc3   :  { %2940 = vmatpush3.bf16.msra.mxu1 %v2939_v63  ;;  %v2959_v63 = vpack.c.bf16 %v421_v56, %v420_v55  ;;  %v3007_v55 = vpack.c.bf16 %v477_v44, %v476_v43  ;;  %v486_v43 = vld [vmem:[%s4844_s1 + $0xe50] sm:$0xff]  ;;  %v487_v44 = vld [vmem:[%s4844_s1 + $0xe58] sm:$0xff]  ;;  %v504_v49 = vld [vmem:[%s4844_s1 + $0xee0] sm:$0xff] }
  0xc4   :  { %2974 = vmatprep.subr.bf16.mxu1 %v2973_v4  ;;  %1488 = vmatmul.mubr.f32.vlgmr.msra.gmra.mrb[10].mxu0 %v4198_v31  ;;  %v416_v31 = vld [vmem:[%s4844_s1 + $0xc20] sm:$0xff]  ;;  %v454_v4 = vld [vmem:[%s4844_s1 + $0xd50] sm:$0xff]  ;;  %v505_v50 = vld [vmem:[%s4844_s1 + $0xee8] sm:$0xff] }
  0xc5   :  { %2944 = vmatpush3.bf16.msra.mxu0 %v2943_v12  ;;  %1627 = vmatprep.mubr.f32.mxu0 %v672_v23  ;;  %v2951_v38 = vpack.c.bf16 %v417_v30, %v416_v31  ;;  %v473_v12 = vld [vmem:[%s4844_s1 + $0xde8] sm:$0xff]  ;;  %v443_v23 = vld [vmem:[%s4844_s1 + $0xcf8] sm:$0xff]  ;;  %v426_v31 = vld [vmem:[%s4844_s1 + $0xc70] sm:$0xff] }
  0xc6   :  { %1558 = vmatmul.mubr.f32.vlgmr.msra.gmra.mrb[10].mxu1 %v4207_v34  ;;  %2946 = vmatprep.subr.bf16.mxu0 %v2945_v15  ;;  %v449_v34 = vld [vmem:[%s4844_s1 + $0xd28] sm:$0xff]  ;;  %v2995_v15 = vpack.c.bf16 %v455_v6, %v454_v4  ;;  %v2997_v20 = vpack.c.bf16 %v473_v12, %v472_v11  ;;  %v427_v30 = vld [vmem:[%s4844_s1 + $0xc78] sm:$0xff]  ;;  %v3043_v4 = vpack.c.bf16 %v511_v60, %v510_v59  ;;  %v498_v11 = vld [vmem:[%s4844_s1 + $0xeb0] sm:$0xff] }
  0xc7   :  { %2976 = vmatpush3.bf16.msra.mxu1 %v2975_v14  ;;  %1697 = vmatprep.mubr.f32.mxu1 %v673_v26  ;;  %v2983_v39 = vpack.c.bf16 %v449_v34, %v448_v32  ;;  %v2963_v14 = vpack.c.bf16 %v423_v3, %v422_v2  ;;  %v2967_v26 = vpack.c.bf16 %v425_v18, %v424_v17  ;;  %v458_v32 = vld [vmem:[%s4844_s1 + $0xd70] sm:$0xff]  ;;  %v459_v34 = vld [vmem:[%s4844_s1 + $0xd78] sm:$0xff]  ;;  %v481_v6 = vld [vmem:[%s4844_s1 + $0xe28] sm:$0xff] }
  0xc8   :  { %2978 = vmatprep.subr.bf16.mxu1 %v2977_v19  ;;  %v456_v19 = vld [vmem:[%s4844_s1 + $0xd60] sm:$0xff]  ;;  %v499_v12 = vld [vmem:[%s4844_s1 + $0xeb8] sm:$0xff] }
  0xc9   :  { %2948 = vmatpush3.bf16.msra.mxu0 %v2947_v27  ;;  %v27_v27 = vld [vmem:[%s4845_s0 + $0x38] sm:$0xff]  ;;  %v3017_v18 = vpack.c.bf16 %v499_v12, %v498_v11  ;;  %v520_v59 = vld [vmem:[%s4844_s1 + $0xf60] sm:$0xff]  ;;  %v490_v11 = vld [vmem:[%s4844_s1 + $0xe70] sm:$0xff] }
  0xca   :  { %2950 = vmatprep.subr.bf16.mxu0 %v2949_v29  ;;  %v2969_v29 = vpack.c.bf16 %v443_v23, %v442_v22  ;;  %v4612_v51 = vrot.slane %v27_v27, %v3289_v13  ;;  %v515_v23 = vld [vmem:[%s4844_s1 + $0xf38] sm:$0xff] }
  0xcb   :  { %2980 = vmatpush3.bf16.msra.mxu1 %v2979_v28  ;;  %v2999_v28 = vpack.c.bf16 %v457_v21, %v456_v19  ;;  %v482_v19 = vld [vmem:[%s4844_s1 + $0xe30] sm:$0xff]  ;;  %v491_v12 = vld [vmem:[%s4844_s1 + $0xe78] sm:$0xff] }
  0xcc   :  { %2982 = vmatprep.subr.bf16.mxu1 %v2981_v42  ;;  %v3001_v42 = vpack.c.bf16 %v475_v25, %v474_v24  ;;  %v514_v21 = vld [vmem:[%s4844_s1 + $0xf30] sm:$0xff]  ;;  %v500_v24 = vld [vmem:[%s4844_s1 + $0xec0] sm:$0xff]  ;;  %v501_v25 = vld [vmem:[%s4844_s1 + $0xec8] sm:$0xff] }
  0xcd   :  { %2952 = vmatpush3.bf16.msra.mxu0 %v2951_v38  ;;  %v674_v38 = vcombine.high %v27_v27, %v27_v27  ;;  %v533_v27 = vld [vmem:[%s4844_s1 + $0xfc8] sm:$0xff] }
  0xce   :  { %2954 = vmatprep.subr.bf16.mxu0 %v2953_v40  ;;  %v3003_v40 = vpack.c.bf16 %v459_v34, %v458_v32  ;;  %v485_v32 = vld [vmem:[%s4844_s1 + $0xe48] sm:$0xff] }
  0xcf   :  { %2984 = vmatpush3.bf16.msra.mxu1 %v2983_v39  ;;  %v2971_v39 = vpack.c.bf16 %v427_v30, %v426_v31  ;;  %v3021_v31 = vpack.c.bf16 %v501_v25, %v500_v24  ;;  %v484_v30 = vld [vmem:[%s4844_s1 + $0xe40] sm:$0xff] }
  0xd0   :  { %2986 = vmatprep.subr.bf16.mxu1 %v2985_v46  ;;  %v508_v46 = vld [vmem:[%s4844_s1 + $0xf00] sm:$0xff] }
  0xd1   :  { %2956 = vmatpush3.bf16.msra.mxu0 %v2955_v53  ;;  %v526_v53 = vld [vmem:[%s4844_s1 + $0xf90] sm:$0xff]  ;;  %v3039_v56 = vpack.c.bf16 %v509_v48, %v508_v46  ;;  %v519_v48 = vld [vmem:[%s4844_s1 + $0xf58] sm:$0xff] }
  0xd2   :  { %2958 = vmatprep.subr.bf16.mxu0 %v2957_v33  ;;  %v4621_v33 = vrot.slane %v674_v38, %v3289_v13  ;;  %v535_v38 = vld [vmem:[%s4844_s1 + $0xfd8] sm:$0xff]  ;;  %v518_v46 = vld [vmem:[%s4844_s1 + $0xf50] sm:$0xff] }
  0xd3   :  { %2988 = vmatpush3.bf16.msra.mxu1 %v2987_v54  ;;  %v527_v54 = vld [vmem:[%s4844_s1 + $0xf98] sm:$0xff] }
  0xd4   :  { %2990 = vmatprep.subr.bf16.mxu1 %v2989_v45  ;;  %v478_v45 = vld [vmem:[%s4844_s1 + $0xe10] sm:$0xff]  ;;  %v3041_v13 = vpack.c.bf16 %v527_v54, %v526_v53  ;;  %v690_v2 = vcombine.high %v4621_v33, %v4621_v33  ;;  %v536_v53 = vld [vmem:[%s4844_s1 + $0xfe0] sm:$0xff]  ;;  %v537_v54 = vld [vmem:[%s4844_s1 + $0xfe8] sm:$0xff] }
  0xd5   :  { %2960 = vmatpush3.bf16.msra.mxu0 %v2959_v63  ;;  %v689_v63 = vcombine.high %v4612_v51, %v4612_v51  ;;  %v3011_v3 = vpack.c.bf16 %v479_v58, %v478_v45  ;;  %v488_v45 = vld [vmem:[%s4844_s1 + $0xe60] sm:$0xff]  ;;  %v489_v58 = vld [vmem:[%s4844_s1 + $0xe68] sm:$0xff]  ;;  %v3061_v60 = vpack.c.bf16 %v537_v54, %v536_v53  ;;  %v1854_v54 = vld [vmem:[%s4847_s3 + $0x50] sm:$0xff] }
  0xd6   :  { %2962 = vmatprep.subr.bf16.mxu0 %v2961_v1  ;;  %v529_v1 = vld [vmem:[%s4844_s1 + $0xfa8] sm:$0xff] }
  0xd7   :  { %2992 = vmatpush3.bf16.msra.mxu1 %v2991_v0  ;;  %v528_v0 = vld [vmem:[%s4844_s1 + $0xfa0] sm:$0xff] }
  0xd8   :  { %2994 = vmatprep.subr.bf16.mxu1 %v2993_v5  ;;  %v3013_v5 = vpack.c.bf16 %v497_v62, %v496_v61  ;;  %v3045_v9 = vpack.c.bf16 %v529_v1, %v528_v0  ;;  %v521_v61 = vld [vmem:[%s4844_s1 + $0xf68] sm:$0xff]  ;;  %v506_v62 = vld [vmem:[%s4844_s1 + $0xef0] sm:$0xff]  ;;  %v1943_v0 = vld [vmem:[%s4846_s2] ss:$0 sm:$0xff] }
  0xd9   :  { %2964 = vmatpush3.bf16.msra.mxu0 %v2963_v14  ;;  %v530_v14 = vld [vmem:[%s4844_s1 + $0xfb0] sm:$0xff] }
  0xda   :  { %2966 = vmatprep.subr.bf16.mxu0 %v2965_v16 }
  0xdb   :  { %2996 = vmatpush3.bf16.msra.mxu1 %v2995_v15  ;;  %v531_v15 = vld [vmem:[%s4844_s1 + $0xfb8] sm:$0xff] }
  0xdc   :  { %2998 = vmatprep.subr.bf16.mxu1 %v2997_v20  ;;  %v483_v20 = vld [vmem:[%s4844_s1 + $0xe38] sm:$0xff]  ;;  %v3049_v22 = vpack.c.bf16 %v531_v15, %v530_v14 }
  0xdd   :  { %2968 = vmatpush3.bf16.msra.mxu0 %v2967_v26  ;;  %v532_v26 = vld [vmem:[%s4844_s1 + $0xfc0] sm:$0xff] }
  0xde   :  { %2970 = vmatprep.subr.bf16.mxu0 %v2969_v29  ;;  %v3051_v29 = vpack.c.bf16 %v515_v23, %v514_v21  ;;  %v3053_v34 = vpack.c.bf16 %v533_v27, %v532_v26 }
  0xdf   :  { %3000 = vmatpush3.bf16.msra.mxu1 %v2999_v28  ;;  %v3019_v28 = vpack.c.bf16 %v483_v20, %v482_v19  ;;  %v3035_v19 = vpack.c.bf16 %v491_v12, %v490_v11 }
  0xe0   :  { %3002 = vmatprep.subr.bf16.mxu1 %v3001_v42  ;;  %v516_v42 = vld [vmem:[%s4844_s1 + $0xf40] sm:$0xff] }
  0xe1   :  { %2972 = vmatpush3.bf16.msra.mxu0 %v2971_v39  ;;  %v3023_v39 = vpack.c.bf16 %v485_v32, %v484_v30 }
  0xe2   :  { %3006 = vmatprep.subr.bf16.mxu0 %v3005_v41  ;;  %v3025_v41 = vpack.c.bf16 %v503_v52, %v502_v36  ;;  %v3106_v52 = vmov 0.0|0.0  }
  0xe3   :  { %3004 = vmatpush3.bf16.msra.mxu1 %v3003_v40  ;;  %v3055_v40 = vpack.c.bf16 %v517_v35, %v516_v42 }
  0xe4   :  { %3038 = vmatprep.subr.bf16.mxu1 %v3037_v47  ;;  %1628 = vmatmul.mubr.f32.vlgmr.msra.gmra.mrb[12].mxu0 %v4405_v8  ;;  %v480_v8 = vld [vmem:[%s4844_s1 + $0xe20] sm:$0xff]  ;;  %v3057_v47 = vpack.c.bf16 %v535_v38, %v534_v37  ;;  %v1846_v37 = vld [vmem:[%s4847_s3 + $0x10] sm:$0xff] }
  0xe5   :  { %3008 = vmatpush3.bf16.msra.mxu0 %v3007_v55  ;;  %1767 = vmatprep.mubr.f32.mxu0 %v689_v63  ;;  %v3015_v16 = vpack.c.bf16 %v481_v6, %v480_v8  ;;  %v3027_v55 = vpack.c.bf16 %v487_v44, %v486_v43  ;;  %v507_v63 = vld [vmem:[%s4844_s1 + $0xef8] sm:$0xff]  ;;  %v3031_v6 = vpack.c.bf16 %v489_v58, %v488_v45  ;;  %v1849_v43 = vld [vmem:[%s4847_s3 + $0x28] sm:$0xff]  ;;  %v1856_v45 = vld [vmem:[%s4847_s3 + $0x60] sm:$0xff] }
  0xe6   :  { %1698 = vmatmul.mubr.f32.vlgmr.msra.gmra.mrb[12].mxu1 %v4414_v10  ;;  %3010 = vmatprep.subr.bf16.mxu0 %v3009_v57  ;;  %v513_v10 = vld [vmem:[%s4844_s1 + $0xf28] sm:$0xff]  ;;  %v3029_v57 = vpack.c.bf16 %v505_v50, %v504_v49  ;;  %v1852_v49 = vld [vmem:[%s4847_s3 + $0x40] sm:$0xff] }
  0xe7   :  { %3040 = vmatpush3.bf16.msra.mxu1 %v3039_v56  ;;  %1837 = vmatprep.mubr.f32.mxu1 %v690_v2  ;;  %v3047_v17 = vpack.c.bf16 %v513_v10, %v512_v7  ;;  %v3059_v56 = vpack.c.bf16 %v519_v48, %v518_v46  ;;  %v3033_v10 = vpack.c.bf16 %v507_v63, %v506_v62  ;;  %v1850_v46 = vld [vmem:[%s4847_s3 + $0x30] sm:$0xff]  ;;  %v1853_v50 = vld [vmem:[%s4847_s3 + $0x48] sm:$0xff] }
  0xe8   :  { %3042 = vmatprep.subr.bf16.mxu1 %v3041_v13  ;;  %v3082_v53 = vpack.c.bf16 %v1853_v50, %v1852_v49  ;;  %v1857_v58 = vld [vmem:[%s4847_s3 + $0x68] sm:$0xff] }
  0xe9   :  { %3012 = vmatpush3.bf16.msra.mxu0 %v3011_v3  ;;  %v538_v3 = vld [vmem:[%s4844_s1 + $0xff0] sm:$0xff] }
  0xea   :  { %3014 = vmatprep.subr.bf16.mxu0 %v3013_v5 }
  0xeb   :  { %3044 = vmatpush3.bf16.msra.mxu1 %v3043_v4  ;;  %v539_v4 = vld [vmem:[%s4844_s1 + $0xff8] sm:$0xff] }
  0xec   :  { %3046 = vmatprep.subr.bf16.mxu1 %v3045_v9  ;;  %v3063_v9 = vpack.c.bf16 %v521_v61, %v520_v59  ;;  %v3065_v15 = vpack.c.bf16 %v539_v4, %v538_v3 }
  0xed   :  { %3016 = vmatpush3.bf16.msra.mxu0 %v3015_v16  ;;  %v522_v16 = vld [vmem:[%s4844_s1 + $0xf70] sm:$0xff] }
  0xee   :  { %3018 = vmatprep.subr.bf16.mxu0 %v3017_v18 }
  0xef   :  { %3048 = vmatpush3.bf16.msra.mxu1 %v3047_v17  ;;  %v523_v17 = vld [vmem:[%s4844_s1 + $0xf78] sm:$0xff] }
  0xf0   :  { %3050 = vmatprep.subr.bf16.mxu1 %v3049_v22  ;;  %v3067_v20 = vpack.c.bf16 %v523_v17, %v522_v16 }
  0xf1   :  { %3020 = vmatpush3.bf16.msra.mxu0 %v3019_v28 }
  0xf2   :  { %3022 = vmatprep.subr.bf16.mxu0 %v3021_v31 }
  0xf3   :  { %3052 = vmatpush3.bf16.msra.mxu1 %v3051_v29 }
  0xf4   :  { %3054 = vmatprep.subr.bf16.mxu1 %v3053_v34 }
  0xf5   :  { %3024 = vmatpush3.bf16.msra.mxu0 %v3023_v39  ;;  %v1847_v39 = vld [vmem:[%s4847_s3 + $0x18] sm:$0xff] }
  0xf6   :  { %3026 = vmatprep.subr.bf16.mxu0 %v3025_v41  ;;  %v1848_v41 = vld [vmem:[%s4847_s3 + $0x20] sm:$0xff] }
  0xf7   :  { %3056 = vmatpush3.bf16.msra.mxu1 %v3055_v40  ;;  %v1977_v13 = vpop.f32.mrb[0].mxu0  ;;  %v3073_v40 = vpack.c.bf16 %v1847_v39, %v1846_v37  ;;  %v3076_v44 = vpack.c.bf16 %v1849_v43, %v1848_v41  ;;  %v1944_v37 = vld [vmem:[%s4848_s4] ss:$0 sm:$0xff] }
  0xf8   :  { %3058 = vmatprep.subr.bf16.mxu1 %v3057_v47  ;;  %v1978_v1 = vpop.f32.mrb[1].mxu0  ;;  %v1851_v47 = vld [vmem:[%s4847_s3 + $0x38] sm:$0xff] }
  0xf9   :  { %v2012_v2 = vpop.f32.mrb[0].mxu1  ;;  %v1979_v5 = vadd.f32 %v1978_v1, %v1977_v13  ;;  %3028 = vmatpush3.bf16.msra.mxu0 %v3027_v55  ;;  %v3079_v48 = vpack.c.bf16 %v1851_v47, %v1850_v46  ;;  %v1855_v55 = vld [vmem:[%s4847_s3 + $0x58] sm:$0xff]  ;;  %v1858_v1 = vld [vmem:[%s4847_s3 + $0x70] sm:$0xff] }
  0xfa   :  { %v2013_v8 = vpop.f32.mrb[1].mxu1  ;;  %3030 = vmatprep.subr.bf16.mxu0 %v3029_v57 }
  0xfb   :  { %v2014_v7 = vadd.f32 %v2013_v8, %v2012_v2  ;;  %3060 = vmatpush3.bf16.msra.mxu1 %v3059_v56  ;;  %v790_v14 = vadd.f32 %v1979_v5, %v1943_v0  ;;  %v3085_v56 = vpack.c.bf16 %v1855_v55, %v1854_v54  ;;  %v1859_v2 = vld [vmem:[%s4847_s3 + $0x78] sm:$0xff]  ;;  %v3108_v5 = vmov 0.0  }
  0xfc   :  { %3062 = vmatprep.subr.bf16.mxu1 %v3061_v60  ;;  %v3088_v60 = vpack.c.bf16 %v1857_v58, %v1856_v45  ;;  %v3091_v3 = vpack.c.bf16 %v1859_v2, %v1858_v1 }
  0xfd   :  { %v860_v18 = vadd.f32 %v2014_v7, %v790_v14  ;;  %3032 = vmatpush3.bf16.msra.mxu0 %v3031_v6 }
  0xfe   :  { %3034 = vmatprep.subr.bf16.mxu0 %v3033_v10 }
  0xff   :  { %3064 = vmatpush3.bf16.msra.mxu1 %v3063_v9 }
 0x100   :  { %3066 = vmatprep.subr.bf16.mxu1 %v3065_v15 }
 0x101   :  { %3036 = vmatpush3.bf16.msra.mxu0 %v3035_v19 }
 0x102   :  { %3069 = vmatprep.subr.bf16.mxu0 %v3106_v52 }
 0x103   :  { %3068 = vmatpush3.bf16.msra.mxu1 %v3067_v20 }
 0x104   :  { %1768 = vmatmul.mubr.f32.vlgmr.msra.gmra.mrb[14].mxu0 %v4612_v51  ;;  %v1844_v51 = vld [vmem:[%s4847_s3] sm:$0xff] }
 0x105   :  { %2554 = vmatprep.mubr.msk.f32.mxu0 %vm3107_vm0, %v3108_v5 }
 0x106   :  { %1838 = vmatmul.mubr.f32.vlgmr.msra.gmra.mrb[14].mxu1 %v4621_v33  ;;  %v1845_v33 = vld [vmem:[%s4847_s3 + $0x8] sm:$0xff] }
 0x107   :  { %v3070_v38 = vpack.c.bf16 %v1845_v33, %v1844_v51 }
 0x109   :  { %3071 = vmatpush3.bf16.msra.mxu0 %v3070_v38 }
 0x10a   :  { %3072 = vmatprep.subr.bf16.mxu0 %v3106_v52 }
 0x10d   :  { %3074 = vmatpush3.bf16.msra.mxu0 %v3073_v40 }
 0x10e   :  { %3075 = vmatprep.subr.bf16.mxu0 %v3106_v52 }
 0x111   :  { %3077 = vmatpush3.bf16.msra.mxu0 %v3076_v44 }
 0x112   :  { %3078 = vmatprep.subr.bf16.mxu0 %v3106_v52 }
 0x115   :  { %3080 = vmatpush3.bf16.msra.mxu0 %v3079_v48 }
 0x116   :  { %3081 = vmatprep.subr.bf16.mxu0 %v3106_v52 }
 0x117   :  { %v2047_v21 = vpop.f32.mrb[2].mxu0 }
 0x118   :  { %v2048_v22 = vpop.f32.mrb[3].mxu0 }
 0x119   :  { %v2082_v23 = vpop.f32.mrb[2].mxu1  ;;  %v2049_v24 = vadd.f32 %v2048_v22, %v2047_v21  ;;  %3083 = vmatpush3.bf16.msra.mxu0 %v3082_v53 }
 0x11a   :  { %v2083_v25 = vpop.f32.mrb[3].mxu1  ;;  %3084 = vmatprep.subr.bf16.mxu0 %v3106_v52 }
 0x11b   :  { %v2084_v26 = vadd.f32 %v2083_v25, %v2082_v23  ;;  %v930_v27 = vadd.f32 %v2049_v24, %v860_v18 }
 0x11d   :  { %v1000_v28 = vadd.f32 %v2084_v26, %v930_v27  ;;  %3086 = vmatpush3.bf16.msra.mxu0 %v3085_v56 }
 0x11e   :  { %3087 = vmatprep.subr.bf16.mxu0 %v3106_v52 }
 0x121   :  { %3089 = vmatpush3.bf16.msra.mxu0 %v3088_v60 }
 0x122   :  { %3090 = vmatprep.subr.bf16.mxu0 %v3106_v52 }
 0x125   :  { %3092 = vmatpush3.bf16.msra.mxu0 %v3091_v3 }
 0x137   :  { %v2117_v29 = vpop.f32.mrb[4].mxu0 }
 0x138   :  { %v2118_v31 = vpop.f32.mrb[5].mxu0 }
 0x139   :  { %v2152_v30 = vpop.f32.mrb[4].mxu1  ;;  %v2119_v32 = vadd.f32 %v2118_v31, %v2117_v29 }
 0x13a   :  { %v2153_v42 = vpop.f32.mrb[5].mxu1 }
 0x13b   :  { %v2154_v34 = vadd.f32 %v2153_v42, %v2152_v30  ;;  %v1070_v35 = vadd.f32 %v2119_v32, %v1000_v28 }
 0x13d   :  { %v1140_v36 = vadd.f32 %v2154_v34, %v1070_v35 }
 0x157   :  { %v2187_v57 = vpop.f32.mrb[6].mxu0 }
 0x158   :  { %v2188_v59 = vpop.f32.mrb[7].mxu0 }
 0x159   :  { %v2222_v13 = vpop.f32.mrb[6].mxu1  ;;  %v2189_v61 = vadd.f32 %v2188_v59, %v2187_v57 }
 0x15a   :  { %v2223_v62 = vpop.f32.mrb[7].mxu1 }
 0x15b   :  { %v2224_v63 = vadd.f32 %v2223_v62, %v2222_v13  ;;  %v1210_v0 = vadd.f32 %v2189_v61, %v1140_v36 }
 0x15d   :  { %v1280_v4 = vadd.f32 %v2224_v63, %v1210_v0 }
 0x177   :  { %v2257_v8 = vpop.f32.mrb[8].mxu0 }
 0x178   :  { %v2258_v6 = vpop.f32.mrb[9].mxu0 }
 0x179   :  { %v2292_v7 = vpop.f32.mrb[8].mxu1  ;;  %v2259_v9 = vadd.f32 %v2258_v6, %v2257_v8 }
 0x17a   :  { %v2293_v10 = vpop.f32.mrb[9].mxu1 }
 0x17b   :  { %v2294_v11 = vadd.f32 %v2293_v10, %v2292_v7  ;;  %v1350_v12 = vadd.f32 %v2259_v9, %v1280_v4 }
 0x17d   :  { %v1420_v14 = vadd.f32 %v2294_v11, %v1350_v12 }
 0x197   :  { %v2327_v15 = vpop.f32.mrb[10].mxu0 }
 0x198   :  { %v2328_v16 = vpop.f32.mrb[11].mxu0 }
 0x199   :  { %v2362_v17 = vpop.f32.mrb[10].mxu1  ;;  %v2329_v18 = vadd.f32 %v2328_v16, %v2327_v15 }
 0x19a   :  { %v2363_v19 = vpop.f32.mrb[11].mxu1 }
 0x19b   :  { %v2364_v20 = vadd.f32 %v2363_v19, %v2362_v17  ;;  %v1490_v21 = vadd.f32 %v2329_v18, %v1420_v14 }
 0x19d   :  { %v1560_v22 = vadd.f32 %v2364_v20, %v1490_v21 }
 0x1b7   :  { %v2397_v23 = vpop.f32.mrb[12].mxu0 }
 0x1b8   :  { %v2398_v24 = vpop.f32.mrb[13].mxu0 }
 0x1b9   :  { %v2432_v25 = vpop.f32.mrb[12].mxu1  ;;  %v2399_v26 = vadd.f32 %v2398_v24, %v2397_v23 }
 0x1ba   :  { %v2433_v27 = vpop.f32.mrb[13].mxu1 }
 0x1bb   :  { %v2434_v28 = vadd.f32 %v2433_v27, %v2432_v25  ;;  %v1630_v29 = vadd.f32 %v2399_v26, %v1560_v22 }
 0x1bd   :  { %v1700_v31 = vadd.f32 %v2434_v28, %v1630_v29 }
 0x1d7   :  { %v2467_v30 = vpop.f32.mrb[14].mxu0 }
 0x1d8   :  { %v2468_v32 = vpop.f32.mrb[15].mxu0 }
 0x1d9   :  { %v2502_v42 = vpop.f32.mrb[14].mxu1  ;;  %v2469_v34 = vadd.f32 %v2468_v32, %v2467_v30 }
 0x1da   :  { %v2503_v35 = vpop.f32.mrb[15].mxu1 }
 0x1db   :  { %v2504_v36 = vadd.f32 %v2503_v35, %v2502_v42  ;;  %v1770_v52 = vadd.f32 %v2469_v34, %v1700_v31 }
 0x1dd   :  { %v1840_v51 = vadd.f32 %v2504_v36, %v1770_v52 }
 0x1df   :  { %v1843_v33 = vmax.f32 %v1840_v51, 0.0 }
 0x1e1   :  { %2555 = vmatmul.mubr.f32.vlgmr.msra.gmra.mrb[16].mxu0 %v1843_v33 }
 0x2b4   :  { %v1933_v38 = vpop.f32.mrb[16].mxu0 }
 0x2b5   :  { %v1934_v39 = vadd.f32 %v1944_v37, %v1933_v38  ;;  %v2556_v40 = vpop.f32.mrb[17].mxu0 }
 0x2b7   :  { %1938 = vst.msk [vmem:[%s4849_s5] sm:$0x3] %vm1937_vm1, %v1934_v39 }

</bundles_post_ra>
